<compile_context>
chip_gen: v6e
topology: v6e:2x2x1
jax: 0.10.0
libtpu: 0.0.40
codegen_flags: <defaults>
</compile_context>

<pallas_src>
import functools

import jax
import jax.numpy as jnp
from jax import lax
from jax.experimental import pallas as pl
from jax.experimental.pallas import tpu as pltpu

LANE = 128
SUBLANE = 8
VMEM_LIMIT = 32 * 1024 * 1024  # explicit scoped-VMEM budget; safe on v5e/v6e/v7x


def _round_up(x, m):
    return ((x + m - 1) // m) * m


# ----------------------------------------------------------------------------
# Fused kernel.
#   SAGE layers:  h_{l+1} = relu( (A @ h_l) @ W_l[l] + h_l @ W_r[l] + b[l] )
#   grid = (layer, row-tile, reduction-tile); layer is outermost so every row
#   tile of layer l is finished before layer l+1 reads it.
#   On the very last grid step the Set2Set pooling + MLP head run directly on
#   the VMEM-resident activations and write the single (B, C) output tile.
# ----------------------------------------------------------------------------
def _fused_net_kernel(x_ref, a_ref, wl_ref, wr_ref, b_ref,
                      mem_ref, wiq_ref, wir_ref, whh_ref, bl_ref,
                      w1q_ref, w1r_ref, b1_ref, w2_ref, b2_ref,
                      o_ref, h_buf, acc_ref,
                      *, tile_m, tile_k, num_layers, steps):
    l = pl.program_id(0)
    i = pl.program_id(1)
    k = pl.program_id(2)
    ni = pl.num_programs(1)
    nk = pl.num_programs(2)

    # First grid step: stage the (padded) input features into the ping buffer.
    @pl.when((l == 0) & (i == 0) & (k == 0))
    def _():
        h_buf[0, :, :] = x_ref[...]

    src = lax.rem(l, 2)      # layer-input buffer
    dst = 1 - src            # layer-output buffer

    @pl.when(k == 0)
    def _():
        acc_ref[...] = jnp.zeros_like(acc_ref)

    # acc += A[i, k] @ h_l[k-rows]   (bf16 x bf16 -> f32 accumulate on MXU)
    koff = pl.multiple_of(k * tile_k, tile_k)
    h_k = h_buf[src, pl.ds(koff, tile_k), :]
    acc_ref[...] += jnp.dot(a_ref[...], h_k.astype(jnp.bfloat16),
                            preferred_element_type=jnp.float32)

    # End of the reduction over k: both linear maps + bias + ReLU -> next layer.
    @pl.when(k == nk - 1)
    def _():
        ioff = pl.multiple_of(i * tile_m, tile_m)
        h_i = h_buf[src, pl.ds(ioff, tile_m), :]
        new_h = jnp.maximum(
            jnp.dot(acc_ref[...], wl_ref[...], preferred_element_type=jnp.float32)
            + jnp.dot(h_i, wr_ref[...], preferred_element_type=jnp.float32)
            + b_ref[...],
            0.0)
        h_buf[dst, pl.ds(ioff, tile_m), :] = new_h

    # Very last grid step: Set2Set pooling + MLP head, entirely from VMEM.
    @pl.when((l == num_layers - 1) & (i == ni - 1) & (k == nk - 1))
    def _():
        final = num_layers % 2           # static buffer index of the last layer
        x = h_buf[final, :, :]           # (Npad, Hp) node features
        x_t = x.T                        # hoisted: ONE transpose for all steps
        mem = mem_ref[...]               # (Bp, Npad) one-hot graph membership
        w_ih_q = wiq_ref[...]            # (Hp, 4Hp)
        w_ih_r = wir_ref[...]            # (Hp, 4Hp)
        w_hh = whh_ref[...]              # (Hp, 4Hp)
        b_l = bl_ref[...]                # (1, 4Hp)  (= b_ih + b_hh folded)

        bsz = mem.shape[0]
        hdim = x.shape[-1]               # padded hidden = 128 -> aligned slices
        neg_big = jnp.float32(-1e30)

        q = jnp.zeros((bsz, hdim), jnp.float32)
        r = jnp.zeros((bsz, hdim), jnp.float32)
        h = jnp.zeros((bsz, hdim), jnp.float32)
        c = jnp.zeros((bsz, hdim), jnp.float32)

        for _ in range(steps):
            # LSTM cell on q_star = [q, r] without the concat (W_ih is split).
            gates = (jnp.dot(q, w_ih_q, preferred_element_type=jnp.float32)
                     + jnp.dot(r, w_ih_r, preferred_element_type=jnp.float32)
                     + jnp.dot(h, w_hh, preferred_element_type=jnp.float32)
                     + b_l)
            i_g = jax.nn.sigmoid(gates[:, 0 * hdim:1 * hdim])
            f_g = jax.nn.sigmoid(gates[:, 1 * hdim:2 * hdim])
            g_g = jnp.tanh(gates[:, 2 * hdim:3 * hdim])
            o_g = jax.nn.sigmoid(gates[:, 3 * hdim:4 * hdim])
            c = f_g * c + i_g * g_g
            h = o_g * jnp.tanh(c)
            q = h

            # Attention scores e[b, n] = <q_b, x_n>.
            scores = jnp.dot(q, x_t, preferred_element_type=jnp.float32)  # (B,N)

            # Segment softmax on MASKED scores (no inf*0 NaN; empty padded
            # graphs give alpha = 0 instead of 0/0).
            masked = jnp.where(mem > 0, scores, neg_big)
            max_b = jnp.max(masked, axis=1, keepdims=True)
            p = jnp.exp(masked - max_b) * mem
            sum_b = jnp.sum(p, axis=1, keepdims=True)
            inv = pl.reciprocal(jnp.where(sum_b > 0, sum_b, 1.0), approx=True)
            alpha = p * inv

            # Readout r_b = sum_n alpha[b, n] * x[n].
            r = jnp.dot(alpha, x, preferred_element_type=jnp.float32)

        # MLP head: relu(lin1([q, r])) -> dropout -> lin2 -> log_softmax.
        # TODO(synk): F.dropout(p=0.5) implemented as identity (eval mode).
        hid = jnp.maximum(
            jnp.dot(q, w1q_ref[...], preferred_element_type=jnp.float32)
            + jnp.dot(r, w1r_ref[...], preferred_element_type=jnp.float32)
            + b1_ref[...], 0.0)
        logits = (jnp.dot(hid, w2_ref[...], preferred_element_type=jnp.float32)
                  + b2_ref[...])          # padded classes carry a -1e30 bias
        mx = jnp.max(logits, axis=-1, keepdims=True)
        z = logits - mx
        lse = jnp.log(jnp.sum(jnp.exp(z), axis=-1, keepdims=True))
        o_ref[...] = z - lse


def fused_set2set_net(x_pad, a, mem, params, *, tile_m, tile_k,
                      processing_steps=4):
    num_layers = params["wl"].shape[0]
    npad, hp = x_pad.shape
    bp = mem.shape[0]
    cp = params["w2"].shape[1]
    grid = (num_layers, npad // tile_m, npad // tile_k)

    const2 = lambda l, i, k: (0, 0)       # resident, DMA'd exactly once
    per_layer = lambda l, i, k: (l, 0, 0)  # streamed layer-by-layer

    kernel = functools.partial(_fused_net_kernel, tile_m=tile_m, tile_k=tile_k,
                               num_layers=num_layers, steps=processing_steps)
    # TODO(synk): for very large N, stream x over node tiles with an online
    # segment softmax instead of holding the full (Npad, Hp) activations and
    # (Bp, Npad) score matrix in VMEM.
    return pl.pallas_call(
        kernel,
        out_shape=jax.ShapeDtypeStruct((bp, cp), jnp.float32),
        grid_spec=pltpu.PrefetchScalarGridSpec(
            num_scalar_prefetch=0,
            grid=grid,
            in_specs=[
                pl.BlockSpec((npad, hp), const2),                      # x
                pl.BlockSpec((tile_m, tile_k), lambda l, i, k: (i, k)),  # A tiles
                pl.BlockSpec((None, hp, hp), per_layer),               # W_l
                pl.BlockSpec((None, hp, hp), per_layer),               # W_r
                pl.BlockSpec((None, 1, hp), per_layer),                # conv bias
                pl.BlockSpec((bp, npad), const2),                      # membership
                pl.BlockSpec((hp, 4 * hp), const2),                    # W_ih (q)
                pl.BlockSpec((hp, 4 * hp), const2),                    # W_ih (r)
                pl.BlockSpec((hp, 4 * hp), const2),                    # W_hh
                pl.BlockSpec((1, 4 * hp), const2),                     # LSTM bias
                pl.BlockSpec((hp, hp), const2),                        # lin1 (q)
                pl.BlockSpec((hp, hp), const2),                        # lin1 (r)
                pl.BlockSpec((1, hp), const2),                         # lin1 bias
                pl.BlockSpec((hp, cp), const2),                        # lin2
                pl.BlockSpec((1, cp), const2),                         # lin2 bias
            ],
            out_specs=pl.BlockSpec((bp, cp), const2),   # single HBM writeback
            scratch_shapes=[
                pltpu.VMEM((2, npad, hp), jnp.float32),  # ping-pong activations
                pltpu.VMEM((tile_m, hp), jnp.float32),   # A@h accumulator
            ],
        ),
        compiler_params=pltpu.CompilerParams(
            # The layer fusion creates cross-row-tile dependencies through the
            # shared activation scratch, so no axis can be megacore-sharded.
            dimension_semantics=("arbitrary", "arbitrary", "arbitrary"),
            vmem_limit_bytes=VMEM_LIMIT,
        ),
    )(x_pad, a, params["wl"], params["wr"], params["bconv"],
      mem, params["w_ih_q"], params["w_ih_r"], params["w_hh"],
      params["b_lstm"], params["w1_q"], params["w1_r"], params["b1"],
      params["w2"], params["b2"])


# ----------------------------------------------------------------------------
# Glue: padding plan, dense mean-aggregation matrix, membership one-hot.
# ----------------------------------------------------------------------------
def _plan_node_tiling(n):
    npad = _round_up(max(n, LANE), LANE)
    if npad * npad * 2 <= 4 * 1024 * 1024:   # bf16 A <= 4 MiB: keep resident
        return npad, npad, npad              # (npad, tile_m, tile_k)
    npad = _round_up(n, 512)
    return npad, 512, 512


def build_mean_adjacency(edge_index, num_nodes, n_pad):
    src, dst = edge_index[0], edge_index[1]
    a = jnp.zeros((n_pad, n_pad), jnp.float32).at[dst, src].add(1.0)
    deg = a.sum(axis=1, keepdims=True)
    a = jnp.where(deg > 0, a / jnp.maximum(deg, 1.0), 0.0)
    return a.astype(jnp.bfloat16)            # halves A's HBM / VMEM traffic


def build_membership(batch, b_pad, n_pad):
    n = batch.shape[0]
    m = jnp.zeros((b_pad, n_pad), jnp.float32)
    return m.at[batch, jnp.arange(n)].set(1.0)


# ----------------------------------------------------------------------------
# Parameter init (deterministic, synthetic, pre-padded to lane-dense shapes).
# ----------------------------------------------------------------------------
def init_params(key, in_channels, hidden, num_layers, n_classes=3):
    hp = _round_up(hidden, LANE)
    cp = _round_up(n_classes, LANE)
    s = 0.1
    keys = list(jax.random.split(key, 3 * num_layers + 9))
    ki = iter(keys)

    wl = jnp.zeros((num_layers, hp, hp), jnp.float32)
    wr = jnp.zeros((num_layers, hp, hp), jnp.float32)
    bc = jnp.zeros((num_layers, 1, hp), jnp.float32)
    fin = in_channels
    for l in range(num_layers):
        wl = wl.at[l, :fin, :hidden].set(
            jax.random.normal(next(ki), (fin, hidden), jnp.float32) * s)
        wr = wr.at[l, :fin, :hidden].set(
            jax.random.normal(next(ki), (fin, hidden), jnp.float32) * s)
        bc = bc.at[l, 0, :hidden].set(
            jax.random.normal(next(ki), (hidden,), jnp.float32) * s)
        fin = hidden

    def pad_lstm_w(k):
        # real (hidden, 4*hidden) -> padded (hp, 4*hp); gate g occupies
        # columns [g*hp, g*hp + hidden) so gate slices are vreg-aligned.
        w = jnp.zeros((hp, 4 * hp), jnp.float32)
        real = jax.random.normal(k, (hidden, 4 * hidden), jnp.float32) * s
        for g in range(4):
            w = w.at[:hidden, g * hp:g * hp + hidden].set(
                real[:, g * hidden:(g + 1) * hidden])
        return w

    w_ih_q = pad_lstm_w(next(ki))
    w_ih_r = pad_lstm_w(next(ki))
    w_hh = pad_lstm_w(next(ki))
    b_real = jax.random.normal(next(ki), (4 * hidden,), jnp.float32) * s
    b_lstm = jnp.zeros((1, 4 * hp), jnp.float32)
    for g in range(4):
        b_lstm = b_lstm.at[0, g * hp:g * hp + hidden].set(
            b_real[g * hidden:(g + 1) * hidden])

    w1_q = jnp.zeros((hp, hp), jnp.float32).at[:hidden, :hidden].set(
        jax.random.normal(next(ki), (hidden, hidden), jnp.float32) * s)
    w1_r = jnp.zeros((hp, hp), jnp.float32).at[:hidden, :hidden].set(
        jax.random.normal(next(ki), (hidden, hidden), jnp.float32) * s)
    b1 = jnp.zeros((1, hp), jnp.float32).at[0, :hidden].set(
        jax.random.normal(next(ki), (hidden,), jnp.float32) * s)
    w2 = jnp.zeros((hp, cp), jnp.float32).at[:hidden, :n_classes].set(
        jax.random.normal(next(ki), (hidden, n_classes), jnp.float32) * s)
    # Padded classes get a -1e30 bias so the padded-width log_softmax is exact.
    b2 = jnp.full((1, cp), -1e30, jnp.float32).at[0, :n_classes].set(
        jax.random.normal(next(ki), (n_classes,), jnp.float32) * s)

    return dict(wl=wl, wr=wr, bconv=bc,
                w_ih_q=w_ih_q, w_ih_r=w_ih_r, w_hh=w_hh, b_lstm=b_lstm,
                w1_q=w1_q, w1_r=w1_r, b1=b1, w2=w2, b2=b2,
                hp=hp, cp=cp, hidden=hidden, n_classes=n_classes)


# ----------------------------------------------------------------------------
# Full forward pass (one Pallas kernel launch).
# ----------------------------------------------------------------------------
def set2set_net_forward(params, x, edge_index, batch, num_graphs):
    n, f_in = x.shape
    hp = params["hp"]
    npad, tile_m, tile_k = _plan_node_tiling(n)
    bp = _round_up(max(num_graphs, SUBLANE), SUBLANE)

    a = build_mean_adjacency(edge_index, n, npad)          # (Npad, Npad) bf16
    mem = build_membership(batch, bp, npad)                # (Bp, Npad)
    x_pad = jnp.zeros((npad, hp), jnp.float32).at[:n, :f_in].set(x)

    out_pad = fused_set2set_net(x_pad, a, mem, params,
                                tile_m=tile_m, tile_k=tile_k,
                                processing_steps=4)        # (Bp, Cp)
    return out_pad[:num_graphs, :params["n_classes"]]      # (B, 3)


# ----------------------------------------------------------------------------
if __name__ == "__main__":
    key = jax.random.PRNGKey(0)

    # Small synthetic graph batch: 2 graphs of 8 nodes each (N=16), ring edges.
    N = 16
    B = 2
    HIDDEN = 32
    NUM_LAYERS = 4          # module default is 16; kept small for the demo
    IN_CHANNELS = 1         # SAGEConv(1, hidden)

    nodes_per_graph = N // B
    src_list, dst_list = [], []
    for g in range(B):
        base = g * nodes_per_graph
        for i in range(nodes_per_graph):
            j = (i + 1) % nodes_per_graph
            src_list += [base + i, base + j]
            dst_list += [base + j, base + i]
    edge_index = jnp.array([src_list, dst_list], dtype=jnp.int32)        # (2, 32)
    batch = jnp.repeat(jnp.arange(B, dtype=jnp.int32), nodes_per_graph)  # (16,)

    kx, kp = jax.random.split(key)
    x = jax.random.normal(kx, (N, IN_CHANNELS), jnp.float32)

    params = init_params(kp, IN_CHANNELS, HIDDEN, NUM_LAYERS, n_classes=3)

    out = set2set_net_forward(params, x, edge_index, batch, num_graphs=B)
    out = jax.block_until_ready(out)

    assert out.shape == (B, 3)
    assert bool(jnp.all(jnp.isfinite(out)))
    # log_softmax rows should (approximately) sum to 1 after exp
    assert bool(jnp.allclose(jnp.exp(out).sum(-1), 1.0, atol=1e-4))
    print("KERNEL_OK")
</pallas_src>

<mosaic_0001>
module attributes {stable_mosaic.version = 11 : i64} {
  func.func @_fused_net_kernel(%arg0: i32, %arg1: i32, %arg2: i32, %arg3: memref<128x128xf32, #tpu.memory_space<vmem>>, %arg4: memref<128x128xbf16, #tpu.memory_space<vmem>>, %arg5: memref<1x128x128xf32, #tpu.memory_space<vmem>>, %arg6: memref<1x128x128xf32, #tpu.memory_space<vmem>>, %arg7: memref<1x1x128xf32, #tpu.memory_space<vmem>>, %arg8: memref<8x128xf32, #tpu.memory_space<vmem>>, %arg9: memref<128x512xf32, #tpu.memory_space<vmem>>, %arg10: memref<128x512xf32, #tpu.memory_space<vmem>>, %arg11: memref<128x512xf32, #tpu.memory_space<vmem>>, %arg12: memref<1x512xf32, #tpu.memory_space<vmem>>, %arg13: memref<128x128xf32, #tpu.memory_space<vmem>>, %arg14: memref<128x128xf32, #tpu.memory_space<vmem>>, %arg15: memref<1x128xf32, #tpu.memory_space<vmem>>, %arg16: memref<128x128xf32, #tpu.memory_space<vmem>>, %arg17: memref<1x128xf32, #tpu.memory_space<vmem>>, %arg18: memref<8x128xf32, #tpu.memory_space<vmem>>, %arg19: memref<2x128x128xf32, #tpu.memory_space<vmem>>, %arg20: memref<128x128xf32, #tpu.memory_space<vmem>>) attributes {dimension_semantics = [#tpu.dimension_semantics<arbitrary>, #tpu.dimension_semantics<arbitrary>, #tpu.dimension_semantics<arbitrary>], iteration_bounds = array<i64: 4, 1, 1>, scalar_prefetch = 0 : i64, scratch_operands = 2 : i64, tpu.core_type = #tpu.core_type<tc>, window_params = [{pipeline_mode = #tpu.pipeline_mode<synchronous>, transform_indices = @transform_0, window_bounds = array<i64: 128, 128>}, {transform_indices = @transform_1, window_bounds = array<i64: 128, 128>}, {transform_indices = @transform_2, window_bounds = array<i64: 1, 128, 128>}, {transform_indices = @transform_3, window_bounds = array<i64: 1, 128, 128>}, {transform_indices = @transform_4, window_bounds = array<i64: 1, 1, 128>}, {pipeline_mode = #tpu.pipeline_mode<synchronous>, transform_indices = @transform_5, window_bounds = array<i64: 8, 128>}, {pipeline_mode = #tpu.pipeline_mode<synchronous>, transform_indices = @transform_6, window_bounds = array<i64: 128, 512>}, {pipeline_mode = #tpu.pipeline_mode<synchronous>, transform_indices = @transform_7, window_bounds = array<i64: 128, 512>}, {pipeline_mode = #tpu.pipeline_mode<synchronous>, transform_indices = @transform_8, window_bounds = array<i64: 128, 512>}, {pipeline_mode = #tpu.pipeline_mode<synchronous>, transform_indices = @transform_9, window_bounds = array<i64: 1, 512>}, {pipeline_mode = #tpu.pipeline_mode<synchronous>, transform_indices = @transform_10, window_bounds = array<i64: 128, 128>}, {pipeline_mode = #tpu.pipeline_mode<synchronous>, transform_indices = @transform_11, window_bounds = array<i64: 128, 128>}, {pipeline_mode = #tpu.pipeline_mode<synchronous>, transform_indices = @transform_12, window_bounds = array<i64: 1, 128>}, {pipeline_mode = #tpu.pipeline_mode<synchronous>, transform_indices = @transform_13, window_bounds = array<i64: 128, 128>}, {pipeline_mode = #tpu.pipeline_mode<synchronous>, transform_indices = @transform_14, window_bounds = array<i64: 1, 128>}, {pipeline_mode = #tpu.pipeline_mode<synchronous>, transform_indices = @transform_15, window_bounds = array<i64: 8, 128>}]} {
    %c0_i32 = arith.constant 0 : i32
    %0 = arith.cmpi eq, %arg0, %c0_i32 : i32
    %c0_i32_0 = arith.constant 0 : i32
    %1 = arith.cmpi eq, %arg1, %c0_i32_0 : i32
    %2 = arith.andi %0, %1 : i1
    %c0_i32_1 = arith.constant 0 : i32
    %3 = arith.cmpi eq, %arg2, %c0_i32_1 : i32
    %4 = arith.andi %2, %3 : i1
    %5 = arith.extui %4 : i1 to i32
    %c0_i32_2 = arith.constant 0 : i32
    %6 = arith.cmpi ne, %5, %c0_i32_2 : i32
    scf.if %6 {
      %c0_16 = arith.constant 0 : index
      %c0_17 = arith.constant 0 : index
      %34 = vector.load %arg3[%c0_16, %c0_17] : memref<128x128xf32, #tpu.memory_space<vmem>>, vector<128x128xf32>
      %c0_18 = arith.constant 0 : index
      %c0_19 = arith.constant 0 : index
      %c0_20 = arith.constant 0 : index
      %35 = vector.load %arg19[%c0_18, %c0_19, %c0_20] : memref<2x128x128xf32, #tpu.memory_space<vmem>>, vector<1x128x128xf32>
      %36 = vector.shape_cast %35 : vector<1x128x128xf32> to vector<128x128xf32>
      %37 = vector.shape_cast %34 : vector<128x128xf32> to vector<1x128x128xf32>
      tpu.vector_store %arg19[%c0_18, %c0_19, %c0_20], %37 {strides = array<i32>} : memref<2x128x128xf32, #tpu.memory_space<vmem>>, vector<1x128x128xf32>,
    } else {
    }
    %c2_i32 = arith.constant 2 : i32
    %7 = arith.remsi %arg0, %c2_i32 : i32
    %c1_i32 = arith.constant 1 : i32
    %8 = arith.subi %c1_i32, %7 : i32
    %c0_i32_3 = arith.constant 0 : i32
    %9 = arith.cmpi eq, %arg2, %c0_i32_3 : i32
    %10 = arith.extui %9 : i1 to i32
    %c0_i32_4 = arith.constant 0 : i32
    %11 = arith.cmpi ne, %10, %c0_i32_4 : i32
    scf.if %11 {
      %cst_16 = arith.constant 0.000000e+00 : f32
      %34 = vector.broadcast %cst_16 : f32 to vector<128x128xf32>
      %c0_17 = arith.constant 0 : index
      %c0_18 = arith.constant 0 : index
      %35 = vector.load %arg20[%c0_17, %c0_18] : memref<128x128xf32, #tpu.memory_space<vmem>>, vector<128x128xf32>
      tpu.vector_store %arg20[%c0_17, %c0_18], %34 {strides = array<i32>} : memref<128x128xf32, #tpu.memory_space<vmem>>, vector<128x128xf32>,
    } else {
    }
    %c128_i32 = arith.constant 128 : i32
    %12 = arith.muli %arg2, %c128_i32 : i32
    %13 = tpu.assume_multiple %12, 128 : i32
    %14 = arith.index_cast %7 : i32 to index
    %15 = arith.index_cast %13 : i32 to index
    %c0 = arith.constant 0 : index
    %16 = vector.load %arg19[%14, %15, %c0] : memref<2x128x128xf32, #tpu.memory_space<vmem>>, vector<1x128x128xf32>
    %17 = vector.shape_cast %16 : vector<1x128x128xf32> to vector<128x128xf32>
    %c0_5 = arith.constant 0 : index
    %c0_6 = arith.constant 0 : index
    %18 = vector.load %arg20[%c0_5, %c0_6] : memref<128x128xf32, #tpu.memory_space<vmem>>, vector<128x128xf32>
    %c0_7 = arith.constant 0 : index
    %c0_8 = arith.constant 0 : index
    %19 = vector.load %arg4[%c0_7, %c0_8] : memref<128x128xbf16, #tpu.memory_space<vmem>>, vector<128x128xbf16>
    %20 = arith.truncf %17 : vector<128x128xf32> to vector<128x128xbf16>
    %cst = arith.constant dense<0.000000e+00> : vector<128x128xf32>
    %21 = tpu.matmul %19, %20, %cst {dimension_numbers = #tpu.dot_dimension_numbers<[1], [0], [0], [1], [0, 0, 1, 1], [], []>} : vector<128x128xbf16>, vector<128x128xbf16>, vector<128x128xf32> -> vector<128x128xf32>
    %22 = arith.addf %18, %21 : vector<128x128xf32>
    %c0_9 = arith.constant 0 : index
    %c0_10 = arith.constant 0 : index
    %23 = vector.load %arg20[%c0_9, %c0_10] : memref<128x128xf32, #tpu.memory_space<vmem>>, vector<128x128xf32>
    tpu.vector_store %arg20[%c0_9, %c0_10], %22 {strides = array<i32>} : memref<128x128xf32, #tpu.memory_space<vmem>>, vector<128x128xf32>,
    %c0_i32_11 = arith.constant 0 : i32
    %24 = arith.cmpi eq, %arg2, %c0_i32_11 : i32
    %25 = arith.extui %24 : i1 to i32
    %c0_i32_12 = arith.constant 0 : i32
    %26 = arith.cmpi ne, %25, %c0_i32_12 : i32
    scf.if %26 {
      %c128_i32_16 = arith.constant 128 : i32
      %34 = arith.muli %arg1, %c128_i32_16 : i32
      %35 = tpu.assume_multiple %34, 128 : i32
      %36 = arith.index_cast %7 : i32 to index
      %37 = arith.index_cast %35 : i32 to index
      %c0_17 = arith.constant 0 : index
      %38 = vector.load %arg19[%36, %37, %c0_17] : memref<2x128x128xf32, #tpu.memory_space<vmem>>, vector<1x128x128xf32>
      %39 = vector.shape_cast %38 : vector<1x128x128xf32> to vector<128x128xf32>
      %c0_18 = arith.constant 0 : index
      %c0_19 = arith.constant 0 : index
      %40 = vector.load %arg20[%c0_18, %c0_19] : memref<128x128xf32, #tpu.memory_space<vmem>>, vector<128x128xf32>
      %c0_20 = arith.constant 0 : index
      %c0_21 = arith.constant 0 : index
      %c0_22 = arith.constant 0 : index
      %41 = vector.load %arg5[%c0_20, %c0_21, %c0_22] : memref<1x128x128xf32, #tpu.memory_space<vmem>>, vector<1x128x128xf32>
      %42 = vector.shape_cast %41 : vector<1x128x128xf32> to vector<128x128xf32>
      %cst_23 = arith.constant dense<0.000000e+00> : vector<128x128xf32>
      %43 = tpu.matmul %40, %42, %cst_23 {dimension_numbers = #tpu.dot_dimension_numbers<[1], [0], [0], [1], [0, 0, 1, 1], [], []>} : vector<128x128xf32>, vector<128x128xf32>, vector<128x128xf32> -> vector<128x128xf32>
      %c0_24 = arith.constant 0 : index
      %c0_25 = arith.constant 0 : index
      %c0_26 = arith.constant 0 : index
      %44 = vector.load %arg6[%c0_24, %c0_25, %c0_26] : memref<1x128x128xf32, #tpu.memory_space<vmem>>, vector<1x128x128xf32>
      %45 = vector.shape_cast %44 : vector<1x128x128xf32> to vector<128x128xf32>
      %cst_27 = arith.constant dense<0.000000e+00> : vector<128x128xf32>
      %46 = tpu.matmul %39, %45, %cst_27 {dimension_numbers = #tpu.dot_dimension_numbers<[1], [0], [0], [1], [0, 0, 1, 1], [], []>} : vector<128x128xf32>, vector<128x128xf32>, vector<128x128xf32> -> vector<128x128xf32>
      %47 = arith.addf %43, %46 : vector<128x128xf32>
      %c0_28 = arith.constant 0 : index
      %c0_29 = arith.constant 0 : index
      %c0_30 = arith.constant 0 : index
      %48 = vector.load %arg7[%c0_28, %c0_29, %c0_30] : memref<1x1x128xf32, #tpu.memory_space<vmem>>, vector<1x1x128xf32>
      %49 = vector.shape_cast %48 : vector<1x1x128xf32> to vector<1x128xf32>
      %50 = vector.broadcast %49 : vector<1x128xf32> to vector<128x128xf32>
      %51 = arith.addf %47, %50 : vector<128x128xf32>
      %cst_31 = arith.constant 0.000000e+00 : f32
      %52 = vector.broadcast %cst_31 : f32 to vector<128x128xf32>
      %53 = arith.maximumf %51, %52 : vector<128x128xf32>
      %54 = arith.index_cast %8 : i32 to index
      %55 = arith.index_cast %35 : i32 to index
      %c0_32 = arith.constant 0 : index
      %56 = vector.load %arg19[%54, %55, %c0_32] : memref<2x128x128xf32, #tpu.memory_space<vmem>>, vector<1x128x128xf32>
      %57 = vector.shape_cast %56 : vector<1x128x128xf32> to vector<128x128xf32>
      %58 = vector.shape_cast %53 : vector<128x128xf32> to vector<1x128x128xf32>
      tpu.vector_store %arg19[%54, %55, %c0_32], %58 {strides = array<i32>} : memref<2x128x128xf32, #tpu.memory_space<vmem>>, vector<1x128x128xf32>,
    } else {
    }
    %c3_i32 = arith.constant 3 : i32
    %27 = arith.cmpi eq, %arg0, %c3_i32 : i32
    %c0_i32_13 = arith.constant 0 : i32
    %28 = arith.cmpi eq, %arg1, %c0_i32_13 : i32
    %29 = arith.andi %27, %28 : i1
    %c0_i32_14 = arith.constant 0 : i32
    %30 = arith.cmpi eq, %arg2, %c0_i32_14 : i32
    %31 = arith.andi %29, %30 : i1
    %32 = arith.extui %31 : i1 to i32
    %c0_i32_15 = arith.constant 0 : i32
    %33 = arith.cmpi ne, %32, %c0_i32_15 : i32
    scf.if %33 {
      %c0_16 = arith.constant 0 : index
      %c0_17 = arith.constant 0 : index
      %c0_18 = arith.constant 0 : index
      %34 = vector.load %arg19[%c0_16, %c0_17, %c0_18] : memref<2x128x128xf32, #tpu.memory_space<vmem>>, vector<1x128x128xf32>
      %35 = vector.shape_cast %34 : vector<1x128x128xf32> to vector<128x128xf32>
      %36 = tpu.transpose %35, [1, 0] : vector<128x128xf32> -> vector<128x128xf32>
      %c0_19 = arith.constant 0 : index
      %c0_20 = arith.constant 0 : index
      %37 = vector.load %arg8[%c0_19, %c0_20] : memref<8x128xf32, #tpu.memory_space<vmem>>, vector<8x128xf32>
      %c0_21 = arith.constant 0 : index
      %c0_22 = arith.constant 0 : index
      %38 = vector.load %arg9[%c0_21, %c0_22] : memref<128x512xf32, #tpu.memory_space<vmem>>, vector<128x512xf32>
      %c0_23 = arith.constant 0 : index
      %c0_24 = arith.constant 0 : index
      %39 = vector.load %arg10[%c0_23, %c0_24] : memref<128x512xf32, #tpu.memory_space<vmem>>, vector<128x512xf32>
      %c0_25 = arith.constant 0 : index
      %c0_26 = arith.constant 0 : index
      %40 = vector.load %arg11[%c0_25, %c0_26] : memref<128x512xf32, #tpu.memory_space<vmem>>, vector<128x512xf32>
      %c0_27 = arith.constant 0 : index
      %c0_28 = arith.constant 0 : index
      %41 = vector.load %arg12[%c0_27, %c0_28] : memref<1x512xf32, #tpu.memory_space<vmem>>, vector<1x512xf32>
      %cst_29 = arith.constant 0.000000e+00 : f32
      %42 = vector.broadcast %cst_29 : f32 to vector<8x128xf32>
      %cst_30 = arith.constant 0.000000e+00 : f32
      %43 = vector.broadcast %cst_30 : f32 to vector<8x128xf32>
      %cst_31 = arith.constant 0.000000e+00 : f32
      %44 = vector.broadcast %cst_31 : f32 to vector<8x128xf32>
      %cst_32 = arith.constant 0.000000e+00 : f32
      %45 = vector.broadcast %cst_32 : f32 to vector<8x128xf32>
      %cst_33 = arith.constant dense<0.000000e+00> : vector<8x512xf32>
      %46 = tpu.matmul %42, %38, %cst_33 {dimension_numbers = #tpu.dot_dimension_numbers<[1], [0], [0], [1], [0, 0, 1, 1], [], []>} : vector<8x128xf32>, vector<128x512xf32>, vector<8x512xf32> -> vector<8x512xf32>
      %cst_34 = arith.constant dense<0.000000e+00> : vector<8x512xf32>
      %47 = tpu.matmul %43, %39, %cst_34 {dimension_numbers = #tpu.dot_dimension_numbers<[1], [0], [0], [1], [0, 0, 1, 1], [], []>} : vector<8x128xf32>, vector<128x512xf32>, vector<8x512xf32> -> vector<8x512xf32>
      %48 = arith.addf %46, %47 : vector<8x512xf32>
      %cst_35 = arith.constant dense<0.000000e+00> : vector<8x512xf32>
      %49 = tpu.matmul %44, %40, %cst_35 {dimension_numbers = #tpu.dot_dimension_numbers<[1], [0], [0], [1], [0, 0, 1, 1], [], []>} : vector<8x128xf32>, vector<128x512xf32>, vector<8x512xf32> -> vector<8x512xf32>
      %50 = arith.addf %48, %49 : vector<8x512xf32>
      %51 = vector.broadcast %41 : vector<1x512xf32> to vector<8x512xf32>
      %52 = arith.addf %50, %51 : vector<8x512xf32>
      %53 = vector.extract_strided_slice %52 {offsets = [0, 0], sizes = [8, 128], strides = [1, 1]} : vector<8x512xf32> to vector<8x128xf32>
      %54 = arith.negf %53 : vector<8x128xf32>
      %55 = math.exp %54 : vector<8x128xf32>
      %cst_36 = arith.constant 1.000000e+00 : f32
      %56 = vector.broadcast %cst_36 : f32 to vector<8x128xf32>
      %57 = arith.addf %56, %55 : vector<8x128xf32>
      %58 = arith.divf %56, %57 : vector<8x128xf32>
      %59 = vector.extract_strided_slice %52 {offsets = [0, 128], sizes = [8, 128], strides = [1, 1]} : vector<8x512xf32> to vector<8x128xf32>
      %60 = arith.negf %59 : vector<8x128xf32>
      %61 = math.exp %60 : vector<8x128xf32>
      %cst_37 = arith.constant 1.000000e+00 : f32
      %62 = vector.broadcast %cst_37 : f32 to vector<8x128xf32>
      %63 = arith.addf %62, %61 : vector<8x128xf32>
      %64 = arith.divf %62, %63 : vector<8x128xf32>
      %65 = vector.extract_strided_slice %52 {offsets = [0, 256], sizes = [8, 128], strides = [1, 1]} : vector<8x512xf32> to vector<8x128xf32>
      %66 = math.tanh %65 : vector<8x128xf32>
      %67 = vector.extract_strided_slice %52 {offsets = [0, 384], sizes = [8, 128], strides = [1, 1]} : vector<8x512xf32> to vector<8x128xf32>
      %68 = arith.negf %67 : vector<8x128xf32>
      %69 = math.exp %68 : vector<8x128xf32>
      %cst_38 = arith.constant 1.000000e+00 : f32
      %70 = vector.broadcast %cst_38 : f32 to vector<8x128xf32>
      %71 = arith.addf %70, %69 : vector<8x128xf32>
      %72 = arith.divf %70, %71 : vector<8x128xf32>
      %73 = arith.mulf %64, %45 : vector<8x128xf32>
      %74 = arith.mulf %58, %66 : vector<8x128xf32>
      %75 = arith.addf %73, %74 : vector<8x128xf32>
      %76 = math.tanh %75 : vector<8x128xf32>
      %77 = arith.mulf %72, %76 : vector<8x128xf32>
      %cst_39 = arith.constant dense<0.000000e+00> : vector<8x128xf32>
      %78 = tpu.matmul %77, %36, %cst_39 {dimension_numbers = #tpu.dot_dimension_numbers<[1], [0], [0], [1], [0, 0, 1, 1], [], []>} : vector<8x128xf32>, vector<128x128xf32>, vector<8x128xf32> -> vector<8x128xf32>
      %cst_40 = arith.constant 0.000000e+00 : f32
      %79 = vector.broadcast %cst_40 : f32 to vector<8x128xf32>
      %80 = arith.cmpf ogt, %37, %79 : vector<8x128xf32>
      %cst_41 = arith.constant -1.000000e+30 : f32
      %81 = vector.broadcast %cst_41 : f32 to vector<8x128xf32>
      %82 = arith.select %80, %78, %81 : vector<8x128xi1>, vector<8x128xf32>
      %cst_42 = arith.constant dense<0xFF800000> : vector<8xf32>
      %83 = vector.multi_reduction <maximumf>, %82, %cst_42 [1] : vector<8x128xf32> to vector<8xf32>
      %84 = vector.shape_cast %83 : vector<8xf32> to vector<8x1xf32>
      %85 = vector.broadcast %84 : vector<8x1xf32> to vector<8x128xf32>
      %86 = arith.subf %82, %85 : vector<8x128xf32>
      %87 = math.exp %86 : vector<8x128xf32>
      %88 = arith.mulf %87, %37 : vector<8x128xf32>
      %cst_43 = arith.constant dense<0.000000e+00> : vector<8xf32>
      %89 = vector.multi_reduction <add>, %88, %cst_43 [1] : vector<8x128xf32> to vector<8xf32>
      %90 = vector.shape_cast %89 : vector<8xf32> to vector<8x1xf32>
      %cst_44 = arith.constant 0.000000e+00 : f32
      %91 = vector.broadcast %cst_44 : f32 to vector<8x1xf32>
      %92 = arith.cmpf ogt, %90, %91 : vector<8x1xf32>
      %cst_45 = arith.constant 1.000000e+00 : f32
      %93 = vector.broadcast %cst_45 : f32 to vector<8x1xf32>
      %94 = arith.select %92, %90, %93 : vector<8x1xi1>, vector<8x1xf32>
      %95 = tpu.reciprocal %94 {approx = true} : vector<8x1xf32> -> vector<8x1xf32>
      %96 = vector.broadcast %95 : vector<8x1xf32> to vector<8x128xf32>
      %97 = arith.mulf %88, %96 : vector<8x128xf32>
      %cst_46 = arith.constant dense<0.000000e+00> : vector<8x128xf32>
      %98 = tpu.matmul %97, %35, %cst_46 {dimension_numbers = #tpu.dot_dimension_numbers<[1], [0], [0], [1], [0, 0, 1, 1], [], []>} : vector<8x128xf32>, vector<128x128xf32>, vector<8x128xf32> -> vector<8x128xf32>
      %cst_47 = arith.constant dense<0.000000e+00> : vector<8x512xf32>
      %99 = tpu.matmul %77, %38, %cst_47 {dimension_numbers = #tpu.dot_dimension_numbers<[1], [0], [0], [1], [0, 0, 1, 1], [], []>} : vector<8x128xf32>, vector<128x512xf32>, vector<8x512xf32> -> vector<8x512xf32>
      %cst_48 = arith.constant dense<0.000000e+00> : vector<8x512xf32>
      %100 = tpu.matmul %98, %39, %cst_48 {dimension_numbers = #tpu.dot_dimension_numbers<[1], [0], [0], [1], [0, 0, 1, 1], [], []>} : vector<8x128xf32>, vector<128x512xf32>, vector<8x512xf32> -> vector<8x512xf32>
      %101 = arith.addf %99, %100 : vector<8x512xf32>
      %cst_49 = arith.constant dense<0.000000e+00> : vector<8x512xf32>
      %102 = tpu.matmul %77, %40, %cst_49 {dimension_numbers = #tpu.dot_dimension_numbers<[1], [0], [0], [1], [0, 0, 1, 1], [], []>} : vector<8x128xf32>, vector<128x512xf32>, vector<8x512xf32> -> vector<8x512xf32>
      %103 = arith.addf %101, %102 : vector<8x512xf32>
      %104 = vector.broadcast %41 : vector<1x512xf32> to vector<8x512xf32>
      %105 = arith.addf %103, %104 : vector<8x512xf32>
      %106 = vector.extract_strided_slice %105 {offsets = [0, 0], sizes = [8, 128], strides = [1, 1]} : vector<8x512xf32> to vector<8x128xf32>
      %107 = arith.negf %106 : vector<8x128xf32>
      %108 = math.exp %107 : vector<8x128xf32>
      %cst_50 = arith.constant 1.000000e+00 : f32
      %109 = vector.broadcast %cst_50 : f32 to vector<8x128xf32>
      %110 = arith.addf %109, %108 : vector<8x128xf32>
      %111 = arith.divf %109, %110 : vector<8x128xf32>
      %112 = vector.extract_strided_slice %105 {offsets = [0, 128], sizes = [8, 128], strides = [1, 1]} : vector<8x512xf32> to vector<8x128xf32>
      %113 = arith.negf %112 : vector<8x128xf32>
      %114 = math.exp %113 : vector<8x128xf32>
      %cst_51 = arith.constant 1.000000e+00 : f32
      %115 = vector.broadcast %cst_51 : f32 to vector<8x128xf32>
      %116 = arith.addf %115, %114 : vector<8x128xf32>
      %117 = arith.divf %115, %116 : vector<8x128xf32>
      %118 = vector.extract_strided_slice %105 {offsets = [0, 256], sizes = [8, 128], strides = [1, 1]} : vector<8x512xf32> to vector<8x128xf32>
      %119 = math.tanh %118 : vector<8x128xf32>
      %120 = vector.extract_strided_slice %105 {offsets = [0, 384], sizes = [8, 128], strides = [1, 1]} : vector<8x512xf32> to vector<8x128xf32>
      %121 = arith.negf %120 : vector<8x128xf32>
      %122 = math.exp %121 : vector<8x128xf32>
      %cst_52 = arith.constant 1.000000e+00 : f32
      %123 = vector.broadcast %cst_52 : f32 to vector<8x128xf32>
      %124 = arith.addf %123, %122 : vector<8x128xf32>
      %125 = arith.divf %123, %124 : vector<8x128xf32>
      %126 = arith.mulf %117, %75 : vector<8x128xf32>
      %127 = arith.mulf %111, %119 : vector<8x128xf32>
      %128 = arith.addf %126, %127 : vector<8x128xf32>
      %129 = math.tanh %128 : vector<8x128xf32>
      %130 = arith.mulf %125, %129 : vector<8x128xf32>
      %cst_53 = arith.constant dense<0.000000e+00> : vector<8x128xf32>
      %131 = tpu.matmul %130, %36, %cst_53 {dimension_numbers = #tpu.dot_dimension_numbers<[1], [0], [0], [1], [0, 0, 1, 1], [], []>} : vector<8x128xf32>, vector<128x128xf32>, vector<8x128xf32> -> vector<8x128xf32>
      %cst_54 = arith.constant 0.000000e+00 : f32
      %132 = vector.broadcast %cst_54 : f32 to vector<8x128xf32>
      %133 = arith.cmpf ogt, %37, %132 : vector<8x128xf32>
      %cst_55 = arith.constant -1.000000e+30 : f32
      %134 = vector.broadcast %cst_55 : f32 to vector<8x128xf32>
      %135 = arith.select %133, %131, %134 : vector<8x128xi1>, vector<8x128xf32>
      %cst_56 = arith.constant dense<0xFF800000> : vector<8xf32>
      %136 = vector.multi_reduction <maximumf>, %135, %cst_56 [1] : vector<8x128xf32> to vector<8xf32>
      %137 = vector.shape_cast %136 : vector<8xf32> to vector<8x1xf32>
      %138 = vector.broadcast %137 : vector<8x1xf32> to vector<8x128xf32>
      %139 = arith.subf %135, %138 : vector<8x128xf32>
      %140 = math.exp %139 : vector<8x128xf32>
      %141 = arith.mulf %140, %37 : vector<8x128xf32>
      %cst_57 = arith.constant dense<0.000000e+00> : vector<8xf32>
      %142 = vector.multi_reduction <add>, %141, %cst_57 [1] : vector<8x128xf32> to vector<8xf32>
      %143 = vector.shape_cast %142 : vector<8xf32> to vector<8x1xf32>
      %cst_58 = arith.constant 0.000000e+00 : f32
      %144 = vector.broadcast %cst_58 : f32 to vector<8x1xf32>
      %145 = arith.cmpf ogt, %143, %144 : vector<8x1xf32>
      %cst_59 = arith.constant 1.000000e+00 : f32
      %146 = vector.broadcast %cst_59 : f32 to vector<8x1xf32>
      %147 = arith.select %145, %143, %146 : vector<8x1xi1>, vector<8x1xf32>
      %148 = tpu.reciprocal %147 {approx = true} : vector<8x1xf32> -> vector<8x1xf32>
      %149 = vector.broadcast %148 : vector<8x1xf32> to vector<8x128xf32>
      %150 = arith.mulf %141, %149 : vector<8x128xf32>
      %cst_60 = arith.constant dense<0.000000e+00> : vector<8x128xf32>
      %151 = tpu.matmul %150, %35, %cst_60 {dimension_numbers = #tpu.dot_dimension_numbers<[1], [0], [0], [1], [0, 0, 1, 1], [], []>} : vector<8x128xf32>, vector<128x128xf32>, vector<8x128xf32> -> vector<8x128xf32>
      %cst_61 = arith.constant dense<0.000000e+00> : vector<8x512xf32>
      %152 = tpu.matmul %130, %38, %cst_61 {dimension_numbers = #tpu.dot_dimension_numbers<[1], [0], [0], [1], [0, 0, 1, 1], [], []>} : vector<8x128xf32>, vector<128x512xf32>, vector<8x512xf32> -> vector<8x512xf32>
      %cst_62 = arith.constant dense<0.000000e+00> : vector<8x512xf32>
      %153 = tpu.matmul %151, %39, %cst_62 {dimension_numbers = #tpu.dot_dimension_numbers<[1], [0], [0], [1], [0, 0, 1, 1], [], []>} : vector<8x128xf32>, vector<128x512xf32>, vector<8x512xf32> -> vector<8x512xf32>
      %154 = arith.addf %152, %153 : vector<8x512xf32>
      %cst_63 = arith.constant dense<0.000000e+00> : vector<8x512xf32>
      %155 = tpu.matmul %130, %40, %cst_63 {dimension_numbers = #tpu.dot_dimension_numbers<[1], [0], [0], [1], [0, 0, 1, 1], [], []>} : vector<8x128xf32>, vector<128x512xf32>, vector<8x512xf32> -> vector<8x512xf32>
      %156 = arith.addf %154, %155 : vector<8x512xf32>
      %157 = vector.broadcast %41 : vector<1x512xf32> to vector<8x512xf32>
      %158 = arith.addf %156, %157 : vector<8x512xf32>
      %159 = vector.extract_strided_slice %158 {offsets = [0, 0], sizes = [8, 128], strides = [1, 1]} : vector<8x512xf32> to vector<8x128xf32>
      %160 = arith.negf %159 : vector<8x128xf32>
      %161 = math.exp %160 : vector<8x128xf32>
      %cst_64 = arith.constant 1.000000e+00 : f32
      %162 = vector.broadcast %cst_64 : f32 to vector<8x128xf32>
      %163 = arith.addf %162, %161 : vector<8x128xf32>
      %164 = arith.divf %162, %163 : vector<8x128xf32>
      %165 = vector.extract_strided_slice %158 {offsets = [0, 128], sizes = [8, 128], strides = [1, 1]} : vector<8x512xf32> to vector<8x128xf32>
      %166 = arith.negf %165 : vector<8x128xf32>
      %167 = math.exp %166 : vector<8x128xf32>
      %cst_65 = arith.constant 1.000000e+00 : f32
      %168 = vector.broadcast %cst_65 : f32 to vector<8x128xf32>
      %169 = arith.addf %168, %167 : vector<8x128xf32>
      %170 = arith.divf %168, %169 : vector<8x128xf32>
      %171 = vector.extract_strided_slice %158 {offsets = [0, 256], sizes = [8, 128], strides = [1, 1]} : vector<8x512xf32> to vector<8x128xf32>
      %172 = math.tanh %171 : vector<8x128xf32>
      %173 = vector.extract_strided_slice %158 {offsets = [0, 384], sizes = [8, 128], strides = [1, 1]} : vector<8x512xf32> to vector<8x128xf32>
      %174 = arith.negf %173 : vector<8x128xf32>
      %175 = math.exp %174 : vector<8x128xf32>
      %cst_66 = arith.constant 1.000000e+00 : f32
      %176 = vector.broadcast %cst_66 : f32 to vector<8x128xf32>
      %177 = arith.addf %176, %175 : vector<8x128xf32>
      %178 = arith.divf %176, %177 : vector<8x128xf32>
      %179 = arith.mulf %170, %128 : vector<8x128xf32>
      %180 = arith.mulf %164, %172 : vector<8x128xf32>
      %181 = arith.addf %179, %180 : vector<8x128xf32>
      %182 = math.tanh %181 : vector<8x128xf32>
      %183 = arith.mulf %178, %182 : vector<8x128xf32>
      %cst_67 = arith.constant dense<0.000000e+00> : vector<8x128xf32>
      %184 = tpu.matmul %183, %36, %cst_67 {dimension_numbers = #tpu.dot_dimension_numbers<[1], [0], [0], [1], [0, 0, 1, 1], [], []>} : vector<8x128xf32>, vector<128x128xf32>, vector<8x128xf32> -> vector<8x128xf32>
      %cst_68 = arith.constant 0.000000e+00 : f32
      %185 = vector.broadcast %cst_68 : f32 to vector<8x128xf32>
      %186 = arith.cmpf ogt, %37, %185 : vector<8x128xf32>
      %cst_69 = arith.constant -1.000000e+30 : f32
      %187 = vector.broadcast %cst_69 : f32 to vector<8x128xf32>
      %188 = arith.select %186, %184, %187 : vector<8x128xi1>, vector<8x128xf32>
      %cst_70 = arith.constant dense<0xFF800000> : vector<8xf32>
      %189 = vector.multi_reduction <maximumf>, %188, %cst_70 [1] : vector<8x128xf32> to vector<8xf32>
      %190 = vector.shape_cast %189 : vector<8xf32> to vector<8x1xf32>
      %191 = vector.broadcast %190 : vector<8x1xf32> to vector<8x128xf32>
      %192 = arith.subf %188, %191 : vector<8x128xf32>
      %193 = math.exp %192 : vector<8x128xf32>
      %194 = arith.mulf %193, %37 : vector<8x128xf32>
      %cst_71 = arith.constant dense<0.000000e+00> : vector<8xf32>
      %195 = vector.multi_reduction <add>, %194, %cst_71 [1] : vector<8x128xf32> to vector<8xf32>
      %196 = vector.shape_cast %195 : vector<8xf32> to vector<8x1xf32>
      %cst_72 = arith.constant 0.000000e+00 : f32
      %197 = vector.broadcast %cst_72 : f32 to vector<8x1xf32>
      %198 = arith.cmpf ogt, %196, %197 : vector<8x1xf32>
      %cst_73 = arith.constant 1.000000e+00 : f32
      %199 = vector.broadcast %cst_73 : f32 to vector<8x1xf32>
      %200 = arith.select %198, %196, %199 : vector<8x1xi1>, vector<8x1xf32>
      %201 = tpu.reciprocal %200 {approx = true} : vector<8x1xf32> -> vector<8x1xf32>
      %202 = vector.broadcast %201 : vector<8x1xf32> to vector<8x128xf32>
      %203 = arith.mulf %194, %202 : vector<8x128xf32>
      %cst_74 = arith.constant dense<0.000000e+00> : vector<8x128xf32>
      %204 = tpu.matmul %203, %35, %cst_74 {dimension_numbers = #tpu.dot_dimension_numbers<[1], [0], [0], [1], [0, 0, 1, 1], [], []>} : vector<8x128xf32>, vector<128x128xf32>, vector<8x128xf32> -> vector<8x128xf32>
      %cst_75 = arith.constant dense<0.000000e+00> : vector<8x512xf32>
      %205 = tpu.matmul %183, %38, %cst_75 {dimension_numbers = #tpu.dot_dimension_numbers<[1], [0], [0], [1], [0, 0, 1, 1], [], []>} : vector<8x128xf32>, vector<128x512xf32>, vector<8x512xf32> -> vector<8x512xf32>
      %cst_76 = arith.constant dense<0.000000e+00> : vector<8x512xf32>
      %206 = tpu.matmul %204, %39, %cst_76 {dimension_numbers = #tpu.dot_dimension_numbers<[1], [0], [0], [1], [0, 0, 1, 1], [], []>} : vector<8x128xf32>, vector<128x512xf32>, vector<8x512xf32> -> vector<8x512xf32>
      %207 = arith.addf %205, %206 : vector<8x512xf32>
      %cst_77 = arith.constant dense<0.000000e+00> : vector<8x512xf32>
      %208 = tpu.matmul %183, %40, %cst_77 {dimension_numbers = #tpu.dot_dimension_numbers<[1], [0], [0], [1], [0, 0, 1, 1], [], []>} : vector<8x128xf32>, vector<128x512xf32>, vector<8x512xf32> -> vector<8x512xf32>
      %209 = arith.addf %207, %208 : vector<8x512xf32>
      %210 = vector.broadcast %41 : vector<1x512xf32> to vector<8x512xf32>
      %211 = arith.addf %209, %210 : vector<8x512xf32>
      %212 = vector.extract_strided_slice %211 {offsets = [0, 0], sizes = [8, 128], strides = [1, 1]} : vector<8x512xf32> to vector<8x128xf32>
      %213 = arith.negf %212 : vector<8x128xf32>
      %214 = math.exp %213 : vector<8x128xf32>
      %cst_78 = arith.constant 1.000000e+00 : f32
      %215 = vector.broadcast %cst_78 : f32 to vector<8x128xf32>
      %216 = arith.addf %215, %214 : vector<8x128xf32>
      %217 = arith.divf %215, %216 : vector<8x128xf32>
      %218 = vector.extract_strided_slice %211 {offsets = [0, 128], sizes = [8, 128], strides = [1, 1]} : vector<8x512xf32> to vector<8x128xf32>
      %219 = arith.negf %218 : vector<8x128xf32>
      %220 = math.exp %219 : vector<8x128xf32>
      %cst_79 = arith.constant 1.000000e+00 : f32
      %221 = vector.broadcast %cst_79 : f32 to vector<8x128xf32>
      %222 = arith.addf %221, %220 : vector<8x128xf32>
      %223 = arith.divf %221, %222 : vector<8x128xf32>
      %224 = vector.extract_strided_slice %211 {offsets = [0, 256], sizes = [8, 128], strides = [1, 1]} : vector<8x512xf32> to vector<8x128xf32>
      %225 = math.tanh %224 : vector<8x128xf32>
      %226 = vector.extract_strided_slice %211 {offsets = [0, 384], sizes = [8, 128], strides = [1, 1]} : vector<8x512xf32> to vector<8x128xf32>
      %227 = arith.negf %226 : vector<8x128xf32>
      %228 = math.exp %227 : vector<8x128xf32>
      %cst_80 = arith.constant 1.000000e+00 : f32
      %229 = vector.broadcast %cst_80 : f32 to vector<8x128xf32>
      %230 = arith.addf %229, %228 : vector<8x128xf32>
      %231 = arith.divf %229, %230 : vector<8x128xf32>
      %232 = arith.mulf %223, %181 : vector<8x128xf32>
      %233 = arith.mulf %217, %225 : vector<8x128xf32>
      %234 = arith.addf %232, %233 : vector<8x128xf32>
      %235 = math.tanh %234 : vector<8x128xf32>
      %236 = arith.mulf %231, %235 : vector<8x128xf32>
      %cst_81 = arith.constant dense<0.000000e+00> : vector<8x128xf32>
      %237 = tpu.matmul %236, %36, %cst_81 {dimension_numbers = #tpu.dot_dimension_numbers<[1], [0], [0], [1], [0, 0, 1, 1], [], []>} : vector<8x128xf32>, vector<128x128xf32>, vector<8x128xf32> -> vector<8x128xf32>
      %cst_82 = arith.constant 0.000000e+00 : f32
      %238 = vector.broadcast %cst_82 : f32 to vector<8x128xf32>
      %239 = arith.cmpf ogt, %37, %238 : vector<8x128xf32>
      %cst_83 = arith.constant -1.000000e+30 : f32
      %240 = vector.broadcast %cst_83 : f32 to vector<8x128xf32>
      %241 = arith.select %239, %237, %240 : vector<8x128xi1>, vector<8x128xf32>
      %cst_84 = arith.constant dense<0xFF800000> : vector<8xf32>
      %242 = vector.multi_reduction <maximumf>, %241, %cst_84 [1] : vector<8x128xf32> to vector<8xf32>
      %243 = vector.shape_cast %242 : vector<8xf32> to vector<8x1xf32>
      %244 = vector.broadcast %243 : vector<8x1xf32> to vector<8x128xf32>
      %245 = arith.subf %241, %244 : vector<8x128xf32>
      %246 = math.exp %245 : vector<8x128xf32>
      %247 = arith.mulf %246, %37 : vector<8x128xf32>
      %cst_85 = arith.constant dense<0.000000e+00> : vector<8xf32>
      %248 = vector.multi_reduction <add>, %247, %cst_85 [1] : vector<8x128xf32> to vector<8xf32>
      %249 = vector.shape_cast %248 : vector<8xf32> to vector<8x1xf32>
      %cst_86 = arith.constant 0.000000e+00 : f32
      %250 = vector.broadcast %cst_86 : f32 to vector<8x1xf32>
      %251 = arith.cmpf ogt, %249, %250 : vector<8x1xf32>
      %cst_87 = arith.constant 1.000000e+00 : f32
      %252 = vector.broadcast %cst_87 : f32 to vector<8x1xf32>
      %253 = arith.select %251, %249, %252 : vector<8x1xi1>, vector<8x1xf32>
      %254 = tpu.reciprocal %253 {approx = true} : vector<8x1xf32> -> vector<8x1xf32>
      %255 = vector.broadcast %254 : vector<8x1xf32> to vector<8x128xf32>
      %256 = arith.mulf %247, %255 : vector<8x128xf32>
      %cst_88 = arith.constant dense<0.000000e+00> : vector<8x128xf32>
      %257 = tpu.matmul %256, %35, %cst_88 {dimension_numbers = #tpu.dot_dimension_numbers<[1], [0], [0], [1], [0, 0, 1, 1], [], []>} : vector<8x128xf32>, vector<128x128xf32>, vector<8x128xf32> -> vector<8x128xf32>
      %c0_89 = arith.constant 0 : index
      %c0_90 = arith.constant 0 : index
      %258 = vector.load %arg13[%c0_89, %c0_90] : memref<128x128xf32, #tpu.memory_space<vmem>>, vector<128x128xf32>
      %cst_91 = arith.constant dense<0.000000e+00> : vector<8x128xf32>
      %259 = tpu.matmul %236, %258, %cst_91 {dimension_numbers = #tpu.dot_dimension_numbers<[1], [0], [0], [1], [0, 0, 1, 1], [], []>} : vector<8x128xf32>, vector<128x128xf32>, vector<8x128xf32> -> vector<8x128xf32>
      %c0_92 = arith.constant 0 : index
      %c0_93 = arith.constant 0 : index
      %260 = vector.load %arg14[%c0_92, %c0_93] : memref<128x128xf32, #tpu.memory_space<vmem>>, vector<128x128xf32>
      %cst_94 = arith.constant dense<0.000000e+00> : vector<8x128xf32>
      %261 = tpu.matmul %257, %260, %cst_94 {dimension_numbers = #tpu.dot_dimension_numbers<[1], [0], [0], [1], [0, 0, 1, 1], [], []>} : vector<8x128xf32>, vector<128x128xf32>, vector<8x128xf32> -> vector<8x128xf32>
      %262 = arith.addf %259, %261 : vector<8x128xf32>
      %c0_95 = arith.constant 0 : index
      %c0_96 = arith.constant 0 : index
      %263 = vector.load %arg15[%c0_95, %c0_96] : memref<1x128xf32, #tpu.memory_space<vmem>>, vector<1x128xf32>
      %264 = vector.broadcast %263 : vector<1x128xf32> to vector<8x128xf32>
      %265 = arith.addf %262, %264 : vector<8x128xf32>
      %cst_97 = arith.constant 0.000000e+00 : f32
      %266 = vector.broadcast %cst_97 : f32 to vector<8x128xf32>
      %267 = arith.maximumf %265, %266 : vector<8x128xf32>
      %c0_98 = arith.constant 0 : index
      %c0_99 = arith.constant 0 : index
      %268 = vector.load %arg16[%c0_98, %c0_99] : memref<128x128xf32, #tpu.memory_space<vmem>>, vector<128x128xf32>
      %cst_100 = arith.constant dense<0.000000e+00> : vector<8x128xf32>
      %269 = tpu.matmul %267, %268, %cst_100 {dimension_numbers = #tpu.dot_dimension_numbers<[1], [0], [0], [1], [0, 0, 1, 1], [], []>} : vector<8x128xf32>, vector<128x128xf32>, vector<8x128xf32> -> vector<8x128xf32>
      %c0_101 = arith.constant 0 : index
      %c0_102 = arith.constant 0 : index
      %270 = vector.load %arg17[%c0_101, %c0_102] : memref<1x128xf32, #tpu.memory_space<vmem>>, vector<1x128xf32>
      %271 = vector.broadcast %270 : vector<1x128xf32> to vector<8x128xf32>
      %272 = arith.addf %269, %271 : vector<8x128xf32>
      %cst_103 = arith.constant dense<0xFF800000> : vector<8xf32>
      %273 = vector.multi_reduction <maximumf>, %272, %cst_103 [1] : vector<8x128xf32> to vector<8xf32>
      %274 = vector.shape_cast %273 : vector<8xf32> to vector<8x1xf32>
      %275 = vector.broadcast %274 : vector<8x1xf32> to vector<8x128xf32>
      %276 = arith.subf %272, %275 : vector<8x128xf32>
      %277 = math.exp %276 : vector<8x128xf32>
      %cst_104 = arith.constant dense<0.000000e+00> : vector<8xf32>
      %278 = vector.multi_reduction <add>, %277, %cst_104 [1] : vector<8x128xf32> to vector<8xf32>
      %279 = vector.shape_cast %278 : vector<8xf32> to vector<8x1xf32>
      %280 = math.log %279 : vector<8x1xf32>
      %281 = vector.broadcast %280 : vector<8x1xf32> to vector<8x128xf32>
      %282 = arith.subf %276, %281 : vector<8x128xf32>
      %c0_105 = arith.constant 0 : index
      %c0_106 = arith.constant 0 : index
      %283 = vector.load %arg18[%c0_105, %c0_106] : memref<8x128xf32, #tpu.memory_space<vmem>>, vector<8x128xf32>
      tpu.vector_store %arg18[%c0_105, %c0_106], %282 {strides = array<i32>} : memref<8x128xf32, #tpu.memory_space<vmem>>, vector<8x128xf32>,
    } else {
    }
    return
  }
  func.func @transform_0(%arg0: i32, %arg1: i32, %arg2: i32) -> (i32, i32) {
    %c0_i32 = arith.constant 0 : i32
    %c0_i32_0 = arith.constant 0 : i32
    %c0_i32_1 = arith.constant 0 : i32
    return %c0_i32, %c0_i32_0 : i32, i32
  }
  func.func @transform_1(%arg0: i32, %arg1: i32, %arg2: i32) -> (i32, i32) {
    %c0_i32 = arith.constant 0 : i32
    return %arg1, %arg2 : i32, i32
  }
  func.func @transform_2(%arg0: i32, %arg1: i32, %arg2: i32) -> (i32, i32, i32) {
    %c0_i32 = arith.constant 0 : i32
    %c0_i32_0 = arith.constant 0 : i32
    %c0_i32_1 = arith.constant 0 : i32
    return %arg0, %c0_i32, %c0_i32_0 : i32, i32, i32
  }
  func.func @transform_3(%arg0: i32, %arg1: i32, %arg2: i32) -> (i32, i32, i32) {
    %c0_i32 = arith.constant 0 : i32
    %c0_i32_0 = arith.constant 0 : i32
    %c0_i32_1 = arith.constant 0 : i32
    return %arg0, %c0_i32, %c0_i32_0 : i32, i32, i32
  }
  func.func @transform_4(%arg0: i32, %arg1: i32, %arg2: i32) -> (i32, i32, i32) {
    %c0_i32 = arith.constant 0 : i32
    %c0_i32_0 = arith.constant 0 : i32
    %c0_i32_1 = arith.constant 0 : i32
    return %arg0, %c0_i32, %c0_i32_0 : i32, i32, i32
  }
  func.func @transform_5(%arg0: i32, %arg1: i32, %arg2: i32) -> (i32, i32) {
    %c0_i32 = arith.constant 0 : i32
    %c0_i32_0 = arith.constant 0 : i32
    %c0_i32_1 = arith.constant 0 : i32
    return %c0_i32, %c0_i32_0 : i32, i32
  }
  func.func @transform_6(%arg0: i32, %arg1: i32, %arg2: i32) -> (i32, i32) {
    %c0_i32 = arith.constant 0 : i32
    %c0_i32_0 = arith.constant 0 : i32
    %c0_i32_1 = arith.constant 0 : i32
    return %c0_i32, %c0_i32_0 : i32, i32
  }
  func.func @transform_7(%arg0: i32, %arg1: i32, %arg2: i32) -> (i32, i32) {
    %c0_i32 = arith.constant 0 : i32
    %c0_i32_0 = arith.constant 0 : i32
    %c0_i32_1 = arith.constant 0 : i32
    return %c0_i32, %c0_i32_0 : i32, i32
  }
  func.func @transform_8(%arg0: i32, %arg1: i32, %arg2: i32) -> (i32, i32) {
    %c0_i32 = arith.constant 0 : i32
    %c0_i32_0 = arith.constant 0 : i32
    %c0_i32_1 = arith.constant 0 : i32
    return %c0_i32, %c0_i32_0 : i32, i32
  }
  func.func @transform_9(%arg0: i32, %arg1: i32, %arg2: i32) -> (i32, i32) {
    %c0_i32 = arith.constant 0 : i32
    %c0_i32_0 = arith.constant 0 : i32
    %c0_i32_1 = arith.constant 0 : i32
    return %c0_i32, %c0_i32_0 : i32, i32
  }
  func.func @transform_10(%arg0: i32, %arg1: i32, %arg2: i32) -> (i32, i32) {
    %c0_i32 = arith.constant 0 : i32
    %c0_i32_0 = arith.constant 0 : i32
    %c0_i32_1 = arith.constant 0 : i32
    return %c0_i32, %c0_i32_0 : i32, i32
  }
  func.func @transform_11(%arg0: i32, %arg1: i32, %arg2: i32) -> (i32, i32) {
    %c0_i32 = arith.constant 0 : i32
    %c0_i32_0 = arith.constant 0 : i32
    %c0_i32_1 = arith.constant 0 : i32
    return %c0_i32, %c0_i32_0 : i32, i32
  }
  func.func @transform_12(%arg0: i32, %arg1: i32, %arg2: i32) -> (i32, i32) {
    %c0_i32 = arith.constant 0 : i32
    %c0_i32_0 = arith.constant 0 : i32
    %c0_i32_1 = arith.constant 0 : i32
    return %c0_i32, %c0_i32_0 : i32, i32
  }
  func.func @transform_13(%arg0: i32, %arg1: i32, %arg2: i32) -> (i32, i32) {
    %c0_i32 = arith.constant 0 : i32
    %c0_i32_0 = arith.constant 0 : i32
    %c0_i32_1 = arith.constant 0 : i32
    return %c0_i32, %c0_i32_0 : i32, i32
  }
  func.func @transform_14(%arg0: i32, %arg1: i32, %arg2: i32) -> (i32, i32) {
    %c0_i32 = arith.constant 0 : i32
    %c0_i32_0 = arith.constant 0 : i32
    %c0_i32_1 = arith.constant 0 : i32
    return %c0_i32, %c0_i32_0 : i32, i32
  }
  func.func @transform_15(%arg0: i32, %arg1: i32, %arg2: i32) -> (i32, i32) {
    %c0_i32 = arith.constant 0 : i32
    %c0_i32_0 = arith.constant 0 : i32
    %c0_i32_1 = arith.constant 0 : i32
    return %c0_i32, %c0_i32_0 : i32, i32
  }
}

</mosaic_0001>

<bundles_post_ra>
// kernel: tpu_custom_call.1
= control target key start
LH: loop header
LB: loop body
LE: loop exit
PB: predicated region body
PF: predicated region fallthrough
CT: control target
= control target key end

     0   :  { %s8819_s0 = inlined_call_operand.hbm [shape: f32[128,128], index: 0, kind: input, shape index: {}]   ;;  %s8820_s1 = inlined_call_operand.hbm [shape: bf16[128,128], index: 1, kind: input, shape index: {}]   ;;  %s8821_s2 = inlined_call_operand.hbm [shape: f32[4,128,128], index: 2, kind: input, shape index: {}]   ;;  %s8822_s3 = inlined_call_operand.hbm [shape: f32[4,128,128], index: 3, kind: input, shape index: {}]   ;;  %s8823_s4 = inlined_call_operand.hbm [shape: f32[4,1,128], index: 4, kind: input, shape index: {}]   ;;  %s8824_s5 = inlined_call_operand.vmem [shape: f32[8,128], index: 5, kind: input, shape index: {}]   ;;  %s8825_s6 = inlined_call_operand.hbm [shape: f32[128,512], index: 6, kind: input, shape index: {}]   ;;  %s8826_s7 = inlined_call_operand.hbm [shape: f32[128,512], index: 7, kind: input, shape index: {}]   ;;  %s8827_s8 = inlined_call_operand.hbm [shape: f32[128,512], index: 8, kind: input, shape index: {}]   ;;  %s8828_s9 = inlined_call_operand.vmem [shape: f32[1,512], index: 9, kind: input, shape index: {}]   ;;  %s8829_s10 = inlined_call_operand.hbm [shape: f32[128,128], index: 10, kind: input, shape index: {}]   ;;  %s8830_s11 = inlined_call_operand.hbm [shape: f32[128,128], index: 11, kind: input, shape index: {}]   ;;  %s8831_s12 = inlined_call_operand.vmem [shape: f32[1,128], index: 12, kind: input, shape index: {}]   ;;  %s8832_s13 = inlined_call_operand.hbm [shape: f32[128,128], index: 13, kind: input, shape index: {}]   ;;  %s8833_s14 = inlined_call_operand.vmem [shape: f32[1,128], index: 14, kind: input, shape index: {}]   ;;  %s8834_s15 = inlined_call_operand.hbm [shape: f32[8,128], index: 15, kind: output, shape index: {}]  }
   0x1   :  { %9159 = sst [smem:[#allocation171_spill]] %s8819_s0 }
   0x2   :  { %9160 = sst [smem:[#allocation172_spill]] %s8820_s1 }
   0x3   :  { %9161 = sst [smem:[#allocation173_spill]] %s8821_s2 }
   0x4   :  { %9162 = sst [smem:[#allocation174_spill]] %s8824_s5 }
   0x5   :  { %9163 = sst [smem:[#allocation175_spill]] %s8828_s9 }
   0x6   :  { %9164 = sst [smem:[#allocation176_spill]] %s8831_s12 }
   0x7   :  { %9165 = sst [smem:[#allocation177_spill]] %s8833_s14 }
   0x8   :  { %9166 = sst [smem:[#allocation178_spill]] %s8834_s15 }
   0x9   :  { %20 = vsyncpa [#allocation5], 0 }
   0xa   :  { %21 = vsyncpa [#allocation8], 0 }
   0xb   :  { %22 = vsyncpa [#allocation14], 0 }
   0xc   :  { %23 = vsyncpa [#allocation17], 0 }
   0xd   :  { %24 = vsyncpa [#allocation20], 0 }
   0xe   :  { %25 = vsyncpa [#allocation6], 0  ;;  %s6498_s18 = smov 0   ;;  %s6500_s19 = smov 0  }
   0xf   :  { %s6502_s20 = smov 0   ;;  %s6504_s21 = smov 0  }
  0x10   :  { %s6506_s22 = smov 0   ;;  %s6508_s23 = smov 0  }
  0x11 LB: > { %9167 = sst [smem:[#allocation30_spill]] %s6380_s19  ;;  %s6529_s24 = sadd.s32 4294967295, %s6396_s23   ;;  %s6396_s23 = sphi %s6508_s23, %s31_s23   ;;  %s6392_s22 = sphi %s6506_s22, %s9759_s22   ;;  %s6388_s21 = sphi %s6504_s21, %s9758_s21   ;;  %s6384_s20 = sphi %s6502_s20, %s9757_s20   ;;  %s6380_s19 = sphi %s6500_s19, %s9756_s19   ;;  %s6376_s18 = sphi %s6498_s18, %s9753_s18  }
  0x12   : > { %9168 = sst [smem:[#allocation31_spill]] %s6388_s21  ;;  %p4604_p0 = scmp.ge.s32.totalorder %s6396_s23, 1 }
  0x13   : > { %9169 = sst [smem:[#allocation32_spill]] %s6396_s23  ;;  %p8846_p1 = scmp.eq.s32.totalorder %s6529_s24, 0 }
  0x14   : > { %p413_p2 = scmp.lt.s32.totalorder %s6396_s23, 5  ;;  %s6398_s26 = smov [#allocation4]  }
  0x15   : > { %s425_s27 = sshll.u32 %s6398_s26, 4  ;;  %s426_s27 = int_to_ptr.vmem [resolvable:$true] %s425_s27 }
  0x16   : > { %p6534_p3 = pnand %p4604_p0, %p413_p2  ;;  %s6013_s30 = scalar_lea.vmem %s426_s27, 2048 }
  0x17   : > { %p6014_p7 = scmp.ne.s32.totalorder %s426_s27, %s6013_s30  ;;  %p6021_p10 = scmp.lt.s32.totalorder %s426_s27, %s426_s27 }
  0x18   : > { %s9170_s25 = scalar_select %p6534_p3, 1, 0 }
  0x19   : > { %p5542_p4 = pneg %p6534_p3  ;;  %p6022_p11 = scmp.lt.s32.totalorder %s6013_s30, %s6013_s30 }
  0x1b   : > { %p6542_p5 = pnand %p5542_p4, %p8846_p1  ;;  %p6023_p12 = por %p6022_p11, %p6021_p10 }
  0x1d   : > { %p6548_p6 = pneg %p6542_p5 }
  0x1f   : > { %p6016_p8 = pnand %p6014_p7, %p6548_p6 }
  0x21   : > { %p6017_p9 = pneg %p6016_p8 }
  0x23   : > { %p6024_p13 = pnand %p6023_p12, %p6017_p9 }
  0x25   : > { %6027 = shalt.err (!%p6024_p13)
}
  0x26   : > { %s8835_s16 = smov 128   ;;  %s8837_s17 = smov 8  }
  0x27   : > { %s9173_s0 = sld [smem:[#allocation171_spill]]  ;;  %s50_s15 = sadd.s32 1, %s6392_s22 }
  0x28   : > { %p52_p0 = scmp.ge.s32.totalorder %s50_s15, 4  ;;  %s106_s14 = sadd.s32 1, %s6384_s20 }
  0x29   : > { %p113_p2 = scmp.ne.s32.totalorder %s6384_s20, %s6380_s19  ;;  %p114_p4 = scmp.eq.s32.totalorder %s6396_s23, 0 }
  0x2a   : > { %s9761_s15 = smov (%p52_p0, %s50_s15), 0  ;;  %p119_p8 = scmp.ne.s32.totalorder %s6380_s19, %s6376_s18 }
  0x2b   : > { %9174 = sst [smem:[#allocation33_spill]] %s9761_s15  ;;  %p6569_p7 = por %p114_p4, %p113_p2 }
  0x2c   : > { %s103_s26 = ssub.s32 %s6392_s22, %s9761_s15  ;;  %p5585_p9 = scmp.lt.s32.totalorder %s6396_s23, 4 }
  0x2d   : > { %5545 = dma.hbm_to_vmem [thread:$0]  (!%p6542_p5), %s9173_s0, 2048, %s426_s27, [#allocation5], %s8835_s16, %s8835_s16, %s8837_s17  }
  0x2e   : > { %p104_p10 = scmp.eq.s32.totalorder %s103_s26, 0  ;;  %p6580_p11 = por %p8846_p1, %p119_p8 }
  0x2f   : > { %s546_s30 = sand.u32 1, %s6396_s23   ;;  %s8844_s16 = sand.u32 1, %s6384_s20  }
  0x30   : > { %s9176_s27 = scalar_select %p6580_p11, 1, 0 }
  0x31   : > { %s6587_s17 = scalar_select %p104_p10, %s6384_s20, %s106_s14  }
  0x32   : > { %9177 = sst [smem:[#allocation34_spill]] %s9176_s27  ;;  %s6591_s0 = sshll.u32 %s8844_s16, 7 }
  0x33   : > { %9178 = sst [smem:[#allocation35_spill]] %s6587_s17  ;;  %s8850_s5 = sshll.u32 %s6392_s22, 11 }
  0x34   : > { %s9179_s2 = sld [smem:[#allocation173_spill]]  ;;  %s550_s26 = scalar_lea.vmem [#allocation9], %s6591_s0 }
  0x35   : > { %s557_s21 = sshll.u32 %s550_s26, 4  ;;  %p6602_p12 = pnand %p5585_p9, %p6569_p7  ;;  %s558_s21 = int_to_ptr.vmem [resolvable:$true] %s557_s21 }
  0x36   : > { %s6401_s14 = smov [#allocation7]   ;;  %s6606_s17 = scalar_lea.sflag [#allocation5], %s546_s30 }
  0x37   : > { %s442_s16 = sshll.u32 %s6401_s14, 4  ;;  %p8847_p13 = pneg %p6602_p12  ;;  %s443_s16 = int_to_ptr.vmem [resolvable:$true] %s442_s16 }
  0x38   : > { %s6041_s23 = scalar_lea.vmem %s558_s21, 2048  ;;  %s6402_s9 = smov [#allocation9]  }
  0x39   : > { %p6042_p0 = scmp.ne.s32.totalorder %s558_s21, %s6041_s23  ;;  %s6046_s12 = sshll.u32 %s6402_s9, 4  ;;  %s6047_s12 = int_to_ptr.vmem [resolvable:$false] %s6046_s12 }
  0x3a   : > { %s556_s15 = scalar_lea.hbm %s9179_s2, %s8850_s5  ;;  %s6048_s18 = scalar_lea.vmem %s6047_s12, 4096 }
  0x3b   : > { %p6044_p2 = pnand %p6042_p0, %p8847_p13  ;;  %p6049_p7 = scmp.lt.s32.totalorder %s558_s21, %s6047_s12 }
  0x3c   : > { %p6050_p8 = scmp.lt.s32.totalorder %s6048_s18, %s6041_s23 }
  0x3d   : > { %p6045_p4 = pneg %p6044_p2 }
  0x3e   : > { %p6051_p9 = por %p6050_p8, %p6049_p7 }
  0x40   : > { %p6052_p10 = pnand %p6051_p9, %p6045_p4 }
  0x42   : > { %6055 = shalt.err (!%p6052_p10)
}
  0x43   : > { %s9181_s30 = smov 8   ;;  %s9182_s26 = smov 128  }
  0x44   : > { %5570 = dma.hbm_to_vmem [thread:$0]  (!%p6602_p12), %s556_s15, 2048, %s558_s21, %s6606_s17, %s9182_s26, %s9182_s26, %s9181_s30  }
  0x45   : > { %s6067_s14 = scalar_lea.vmem %s443_s16, 1024  ;;  %p6075_p13 = scmp.lt.s32.totalorder %s443_s16, %s443_s16 }
  0x46   : > { %p6068_p0 = scmp.ne.s32.totalorder %s443_s16, %s6067_s14  ;;  %p6076_p11 = scmp.lt.s32.totalorder %s6067_s14, %s6067_s14 }
  0x48   : > { %p6070_p2 = pnand %p6068_p0, %p6548_p6  ;;  %p6077_p3 = por %p6076_p11, %p6075_p13 }
  0x4a   : > { %p6071_p1 = pneg %p6070_p2 }
  0x4c   : > { %p6078_p7 = pnand %p6077_p3, %p6071_p1 }
  0x4e   : > { %6081 = shalt.err (!%p6078_p7)
}
  0x4f   : > { %s6403_s23 = smov 64   ;;  %s6404_s9 = smov 4  }
  0x50   : > { %s9183_s1 = sld [smem:[#allocation172_spill]]  ;;  %s6405_s15 = smov [#allocation13]  }
  0x51   : > { %s471_s21 = sshll.u32 %s6405_s15, 4  ;;  %s6406_s5 = smov [#allocation16]   ;;  %s472_s21 = int_to_ptr.vmem [resolvable:$true] %s471_s21 }
  0x52   : > { %s500_s2 = sshll.u32 %s6406_s5, 4  ;;  %s6093_s19 = scalar_lea.vmem %s472_s21, 8192  ;;  %s501_s2 = int_to_ptr.vmem [resolvable:$true] %s500_s2 }
  0x53   : > { %p6094_p4 = scmp.ne.s32.totalorder %s472_s21, %s6093_s19  ;;  %p6101_p11 = scmp.lt.s32.totalorder %s472_s21, %s472_s21 }
  0x54   : > { %p6102_p13 = scmp.lt.s32.totalorder %s6093_s19, %s6093_s19 }
  0x55   : > { %p6096_p1 = pnand %p6094_p4, %p6548_p6 }
  0x56   : > { %5548 = dma.hbm_to_vmem [thread:$0]  (!%p6542_p5), %s9183_s1, 1024, %s443_s16, [#allocation8], %s6403_s23, %s6403_s23, %s6404_s9  }
  0x57   : > { %p6097_p3 = pneg %p6096_p1  ;;  %p6103_p8 = por %p6102_p13, %p6101_p11 }
  0x59   : > { %p6104_p9 = pnand %p6103_p8, %p6097_p3 }
  0x5b   : > { %6107 = shalt.err (!%p6104_p9)
}
  0x5c   : > { %s8852_s14 = smov 512   ;;  %s8854_s16 = smov 32  }
  0x5d   : > { %5554 = dma.hbm_to_vmem [thread:$0]  (!%p6542_p5), %s8826_s7, 8192, %s472_s21, [#allocation14], %s8852_s14, %s8852_s14, %s8854_s16  }
  0x5e   : > { %s6119_s9 = scalar_lea.vmem %s501_s2, 2048  ;;  %p6127_p7 = scmp.lt.s32.totalorder %s501_s2, %s501_s2 }
  0x5f   : > { %p6120_p10 = scmp.ne.s32.totalorder %s501_s2, %s6119_s9  ;;  %p6128_p4 = scmp.lt.s32.totalorder %s6119_s9, %s6119_s9 }
  0x61   : > { %p6122_p0 = pnand %p6120_p10, %p6548_p6  ;;  %p6129_p1 = por %p6128_p4, %p6127_p7 }
  0x63   : > { %p6123_p2 = pneg %p6122_p0 }
  0x65   : > { %p6130_p3 = pnand %p6129_p1, %p6123_p2 }
  0x67   : > { %6133 = shalt.err (!%p6130_p3)
}
  0x68   : > { %5560 = dma.hbm_to_vmem [thread:$0]  (!%p6542_p5), %s8829_s10, 2048, %s501_s2, [#allocation17], %s9182_s26, %s9182_s26, %s9181_s30  }
  0x69   : > { %s9184_s18 = sshll.u32 %s6392_s22, 11  ;;  %s571_s23 = scalar_lea.vmem [#allocation10], %s6591_s0 }
  0x6a   : > { %s577_s5 = scalar_lea.hbm %s8822_s3, %s9184_s18  ;;  %s578_s9 = sshll.u32 %s571_s23, 4  ;;  %s579_s9 = int_to_ptr.vmem [resolvable:$true] %s578_s9 }
  0x6b   : > { %s6409_s14 = smov [#allocation12]   ;;  %s6147_s1 = scalar_lea.vmem %s579_s9, 2048 }
  0x6c   : > { %s458_s16 = sshll.u32 %s6409_s14, 4  ;;  %p6148_p11 = scmp.ne.s32.totalorder %s579_s9, %s6147_s1  ;;  %s459_s16 = int_to_ptr.vmem [resolvable:$true] %s458_s16 }
  0x6d   : > { %p9185_p13 = pneg %p6602_p12  ;;  %s6410_s19 = smov [#allocation10]  }
  0x6e   : > { %s6152_s12 = sshll.u32 %s6410_s19, 4  ;;  %s6153_s12 = int_to_ptr.vmem [resolvable:$false] %s6152_s12 }
  0x6f   : > { %p6150_p8 = pnand %p6148_p11, %p9185_p13  ;;  %s6154_s2 = scalar_lea.vmem %s6153_s12, 4096 }
  0x70   : > { %p6155_p10 = scmp.lt.s32.totalorder %s579_s9, %s6153_s12  ;;  %p6156_p0 = scmp.lt.s32.totalorder %s6154_s2, %s6147_s1 }
  0x71   : > { %p6151_p9 = pneg %p6150_p8 }
  0x72   : > { %p6157_p2 = por %p6156_p0, %p6155_p10 }
  0x74   : > { %p6158_p7 = pnand %p6157_p2, %p6151_p9 }
  0x76   : > { %6161 = shalt.err (!%p6158_p7)
}
  0x77   : > { %5573 = dma.hbm_to_vmem [thread:$0]  (!%p6602_p12), %s577_s5, 2048, %s579_s9, %s6606_s17, %s9182_s26, %s9182_s26, %s9181_s30  }
  0x78   : > { %s6173_s0 = scalar_lea.vmem %s459_s16, 8192  ;;  %p6181_p11 = scmp.lt.s32.totalorder %s459_s16, %s459_s16 }
  0x79   : > { %p6174_p4 = scmp.ne.s32.totalorder %s459_s16, %s6173_s0  ;;  %p6182_p13 = scmp.lt.s32.totalorder %s6173_s0, %s6173_s0 }
  0x7b   : > { %p6176_p1 = pnand %p6174_p4, %p6548_p6  ;;  %p6183_p8 = por %p6182_p13, %p6181_p11 }
  0x7d   : > { %p6177_p3 = pneg %p6176_p1 }
  0x7f   : > { %p6184_p10 = pnand %p6183_p8, %p6177_p3 }
  0x81   : > { %6187 = shalt.err (!%p6184_p10)
}
  0x82   : > { %s9186_s1 = smov 32   ;;  %s9187_s14 = smov 512  }
  0x83   : > { %5551 = dma.hbm_to_vmem [thread:$0]  (!%p6542_p5), %s8825_s6, 8192, %s459_s16, [#allocation8], %s9187_s14, %s9187_s14, %s9186_s1  }
  0x84   : > { %s6411_s21 = smov [#allocation15]   ;;  %s6412_s23 = smov [#allocation18]  }
  0x85   : > { %s484_s5 = sshll.u32 %s6411_s21, 4  ;;  %s513_s9 = sshll.u32 %s6412_s23, 4  ;;  %s485_s5 = int_to_ptr.vmem [resolvable:$true] %s484_s5  ;;  %s514_s9 = int_to_ptr.vmem [resolvable:$true] %s513_s9 }
  0x86   : > { %s6199_s19 = scalar_lea.vmem %s485_s5, 8192  ;;  %p6207_p7 = scmp.lt.s32.totalorder %s485_s5, %s485_s5 }
  0x87   : > { %p6200_p9 = scmp.ne.s32.totalorder %s485_s5, %s6199_s19  ;;  %p6208_p4 = scmp.lt.s32.totalorder %s6199_s19, %s6199_s19 }
  0x89   : > { %p6202_p0 = pnand %p6200_p9, %p6548_p6  ;;  %p6209_p1 = por %p6208_p4, %p6207_p7 }
  0x8b   : > { %p6203_p2 = pneg %p6202_p0 }
  0x8d   : > { %p6210_p3 = pnand %p6209_p1, %p6203_p2 }
  0x8f   : > { %6213 = shalt.err (!%p6210_p3)
}
  0x90   : > { %5557 = dma.hbm_to_vmem [thread:$0]  (!%p6542_p5), %s8827_s8, 8192, %s485_s5, [#allocation14], %s9187_s14, %s9187_s14, %s9186_s1  }
  0x91   : > { %s6225_s2 = scalar_lea.vmem %s514_s9, 2048  ;;  %p6233_p10 = scmp.lt.s32.totalorder %s514_s9, %s514_s9 }
  0x92   : > { %p6226_p11 = scmp.ne.s32.totalorder %s514_s9, %s6225_s2  ;;  %p6234_p9 = scmp.lt.s32.totalorder %s6225_s2, %s6225_s2 }
  0x94   : > { %p6228_p13 = pnand %p6226_p11, %p6548_p6  ;;  %p6235_p0 = por %p6234_p9, %p6233_p10 }
  0x96   : > { %p6229_p8 = pneg %p6228_p13 }
  0x98   : > { %p6236_p2 = pnand %p6235_p0, %p6229_p8 }
  0x9a   : > { %6239 = shalt.err (!%p6236_p2)
}
  0x9b   : > { %5563 = dma.hbm_to_vmem [thread:$0]  (!%p6542_p5), %s8830_s11, 2048, %s514_s9, [#allocation17], %s9182_s26, %s9182_s26, %s9181_s30  }
  0x9c   : > { %s6413_s1 = smov [#allocation19]   ;;  %s4620_s15 = sshll.u32 %s6392_s22, 4 }
  0x9d   : > { %s529_s14 = sshll.u32 %s6413_s1, 4  ;;  %s530_s14 = int_to_ptr.vmem [resolvable:$true] %s529_s14 }
  0x9e   : > { %s6251_s21 = scalar_lea.vmem %s530_s14, 2048  ;;  %p6259_p3 = scmp.lt.s32.totalorder %s530_s14, %s530_s14 }
  0x9f   : > { %p6252_p7 = scmp.ne.s32.totalorder %s530_s14, %s6251_s21  ;;  %p6260_p11 = scmp.lt.s32.totalorder %s6251_s21, %s6251_s21 }
  0xa1   : > { %p6254_p4 = pnand %p6252_p7, %p6548_p6  ;;  %p6261_p13 = por %p6260_p11, %p6259_p3 }
  0xa3   : > { %p6255_p1 = pneg %p6254_p4 }
  0xa5   : > { %p6262_p8 = pnand %p6261_p13, %p6255_p1 }
  0xa7   : > { %6265 = shalt.err (!%p6262_p8)
}
  0xa8   : > { %5566 = dma.hbm_to_vmem [thread:$0]  (!%p6542_p5), %s8832_s13, 2048, %s530_s14, [#allocation20], %s9182_s26, %s9182_s26, %s9181_s30  }
  0xa9   : > { %s596_s19 = scalar_lea.hbm %s8823_s4, %s4620_s15  ;;  %s9188_s16 = sand.u32 1, %s6384_s20  }
  0xaa   : > { %s591_s12 = scalar_lea.vmem [#allocation11], %s9188_s16  ;;  %p9189_p10 = pneg %p6602_p12 }
  0xab   : > { %s598_s2 = sshll.u32 %s591_s12, 4  ;;  %s6414_s28 = smov [#allocation11]   ;;  %s599_s2 = int_to_ptr.vmem [resolvable:$true] %s598_s2 }
  0xac   : > { %s6279_s0 = scalar_lea.vmem %s599_s2, 16  ;;  %s6284_s18 = sshll.u32 %s6414_s28, 4  ;;  %s6285_s18 = int_to_ptr.vmem [resolvable:$false] %s6284_s18 }
  0xad   : > { %p6280_p6 = scmp.ne.s32.totalorder %s599_s2, %s6279_s0  ;;  %s6286_s1 = scalar_lea.vmem %s6285_s18, 32 }
  0xae   : > { %p6287_p2 = scmp.lt.s32.totalorder %s599_s2, %s6285_s18  ;;  %p6288_p5 = scmp.lt.s32.totalorder %s6286_s1, %s6279_s0 }
  0xaf   : > { %p6282_p9 = pnand %p6280_p6, %p9189_p10 }
  0xb0   : > { %p6289_p7 = por %p6288_p5, %p6287_p2 }
  0xb1   : > { %p6283_p0 = pneg %p6282_p9 }
  0xb3   : > { %p6290_p4 = pnand %p6289_p7, %p6283_p0 }
  0xb5   : > { %6293 = shalt.err (!%p6290_p4)
}
  0xb6   : > { %5576 = dma.hbm_to_vmem [thread:$0]  (!%p6602_p12), %s596_s19, 16, %s599_s2, %s6606_s17  }
  0xb7   : > { %p9190_p1 = scmp.ne.s32.totalorder %s9170_s25, 0 }
  0xb8   : > { %p9191_p3 = scmp.eq.s32.totalorder (!%p9190_p1), %s6529_s24, 0 }
  0xb9   : > { %607 = sbr.rel (%p9190_p1) target bundleno = 5549 (0x15ad), region = 80 }
  0xbe   : > { %6343 = dma.done.wait (%p9191_p3), [#allocation5], 2048   ;;  %p9192_p11 = pmov %p9191_p3 }
  0xbf   : > { %p9193_p13 = pmov %p9191_p3 }
  0xc0   : > { %6345 = vsyncadd (%p9192_p11), [#allocation5], 4294965248 }
  0xc1   : > { %6347 = dma.done.wait (%p9193_p13), [#allocation8], 1024   ;;  %p9194_p8 = pmov %p9191_p3 }
  0xc2   : > { %s9195_s30 = sld [smem:[#allocation30_spill]]  ;;  %s617_s26 = sand.u32 1, %s6529_s24  }
  0xc3   : > { %6349 = vsyncadd (%p9194_p8), [#allocation8], 4294966272  ;;  %s9196_s27 = sld [smem:[#allocation34_spill]]  ;;  %s618_s25 = scalar_lea.sflag [#allocation5], %s617_s26 }
  0xc8   : > { %s619_s17 = sand.u32 1, %s9195_s30  }
  0xc9   : > { %s4624_s14 = sshll.u32 %s619_s17, 7  ;;  %p9197_p12 = scmp.ne.s32.totalorder %s9196_s27, 0 }
  0xca   : > { %s6725_s15 = scalar_lea.vmem [#allocation9], %s4624_s14 }
  0xcb   : > { %6351 = dma.done.wait (%p9197_p12), %s618_s25, 4112  }
  0xcc   : > { %6353 = vsyncadd (%p9197_p12), %s618_s25, 4294963184  ;;  %s6731_s21 = scalar_lea.vmem [#allocation10], %s4624_s14  ;;  %s6733_s5 = scalar_lea.vmem [#allocation11], %s619_s17 }
  0xcd   : > { %p9198_p6 = pmov %p9191_p3 }
  0xce   : > { %p9199_p10 = pmov %p9191_p3 }
  0xcf   : > { %6355 = dma.done.wait (%p9198_p6), [#allocation8], 8192  }
  0xd0   : > { %6357 = vsyncadd (%p9199_p10), [#allocation8], 4294959104  ;;  %p9200_p9 = pmov %p9191_p3 }
  0xd1   : > { %p9201_p0 = pmov %p9191_p3 }
  0xd2   : > { %6359 = dma.done.wait (%p9200_p9), [#allocation14], 16384  }
  0xd3   : > { %6361 = vsyncadd (%p9201_p0), [#allocation14], 4294950912  ;;  %p9202_p2 = pmov %p9201_p0 }
  0xd4   : > { %p9203_p5 = pmov %p9201_p0 }
  0xd5   : > { %6363 = dma.done.wait (%p9202_p2), [#allocation17], 4096  }
  0xd6   : > { %6365 = vsyncadd (%p9203_p5), [#allocation17], 4294963200  ;;  %p9204_p7 = pmov %p9201_p0 }
  0xd7   : > { %p9205_p4 = pmov %p9201_p0 }
  0xd8   : > { %6367 = dma.done.wait (%p9204_p7), [#allocation20], 2048  }
  0xd9   : > { %6369 = vsyncadd (%p9205_p4), [#allocation20], 4294965248  ;;  %s9206_s23 = sld [smem:[#allocation31_spill]] }
  0xdf   : > { %p715_p1 = scmp.eq.s32.totalorder %s9206_s23, 0 }
  0xe0   : > { %v724_v0 = vld [vmem:[#allocation4] sm:$0xff] (%p715_p1)  ;;  %v725_v1 = vld [vmem:[#allocation4 + $0x8] sm:$0xff] (%p715_p1)  ;;  %v726_v2 = vld [vmem:[#allocation4 + $0x10] sm:$0xff] (%p715_p1) }
  0xe1   : > { %723 = sbr.rel (!%p715_p1) target bundleno = 233 (0xe9), region = 128  ;;  %740 = vst [vmem:[#allocation2] sm:$0xff] (%p715_p1), %v724_v0  ;;  %741 = vst [vmem:[#allocation2 + $0x8] sm:$0xff] (%p715_p1), %v725_v1  ;;  %v727_v3 = vld [vmem:[#allocation4 + $0x18] sm:$0xff] (%p715_p1)  ;;  %v728_v4 = vld [vmem:[#allocation4 + $0x20] sm:$0xff] (%p715_p1) }
  0xe2   : > { %742 = vst [vmem:[#allocation2 + $0x10] sm:$0xff] (%p715_p1), %v726_v2  ;;  %v729_v5 = vld [vmem:[#allocation4 + $0x28] sm:$0xff] (%p715_p1)  ;;  %743 = vst [vmem:[#allocation2 + $0x18] sm:$0xff] (%p715_p1), %v727_v3  ;;  %v730_v6 = vld [vmem:[#allocation4 + $0x30] sm:$0xff] (%p715_p1) }
  0xe3   : > { %744 = vst [vmem:[#allocation2 + $0x20] sm:$0xff] (%p715_p1), %v728_v4  ;;  %745 = vst [vmem:[#allocation2 + $0x28] sm:$0xff] (%p715_p1), %v729_v5  ;;  %v731_v7 = vld [vmem:[#allocation4 + $0x38] sm:$0xff] (%p715_p1)  ;;  %v732_v8 = vld [vmem:[#allocation4 + $0x40] sm:$0xff] (%p715_p1) }
  0xe4   : > { %746 = vst [vmem:[#allocation2 + $0x30] sm:$0xff] (%p715_p1), %v730_v6  ;;  %747 = vst [vmem:[#allocation2 + $0x38] sm:$0xff] (%p715_p1), %v731_v7  ;;  %v733_v9 = vld [vmem:[#allocation4 + $0x48] sm:$0xff] (%p715_p1)  ;;  %v734_v10 = vld [vmem:[#allocation4 + $0x50] sm:$0xff] (%p715_p1) }
  0xe5   : > { %748 = vst [vmem:[#allocation2 + $0x40] sm:$0xff] (%p715_p1), %v732_v8  ;;  %v735_v11 = vld [vmem:[#allocation4 + $0x58] sm:$0xff] (%p715_p1)  ;;  %749 = vst [vmem:[#allocation2 + $0x48] sm:$0xff] (%p715_p1), %v733_v9  ;;  %v736_v12 = vld [vmem:[#allocation4 + $0x60] sm:$0xff] (%p715_p1) }
  0xe6   : > { %750 = vst [vmem:[#allocation2 + $0x50] sm:$0xff] %v734_v10  ;;  %751 = vst [vmem:[#allocation2 + $0x58] sm:$0xff] %v735_v11  ;;  %v737_v13 = vld [vmem:[#allocation4 + $0x68] sm:$0xff]  ;;  %v738_v14 = vld [vmem:[#allocation4 + $0x70] sm:$0xff] }
  0xe7   : > { %752 = vst [vmem:[#allocation2 + $0x60] sm:$0xff] %v736_v12  ;;  %753 = vst [vmem:[#allocation2 + $0x68] sm:$0xff] %v737_v13  ;;  %v739_v15 = vld [vmem:[#allocation4 + $0x78] sm:$0xff] }
  0xe8   : > { %754 = vst [vmem:[#allocation2 + $0x70] sm:$0xff] %v738_v14  ;;  %755 = vst [vmem:[#allocation2 + $0x78] sm:$0xff] %v739_v15 }
  0xe9 PF: > { %s9207_s9 = sld [smem:[#allocation31_spill]]  ;;  %v5661_v16 = vld [vmem:[#allocation7] sm:$0xff]   ;;  %v1088_v27 = vld [vmem:[%s6731_s21 + $0x78] sm:$0xff]  ;;  %v1087_v30 = vld [vmem:[%s6731_s21 + $0x70] sm:$0xff] }
  0xea   : > { %4955 = vmatprep.mubr.bf16.mxu0 %v5661_v16  ;;  %4971 = vmatprep.subr.mxu1 %v1088_v27  ;;  %v1086_v31 = vld [vmem:[%s6731_s21 + $0x68] sm:$0xff]  ;;  %v1085_v33 = vld [vmem:[%s6731_s21 + $0x60] sm:$0xff]  ;;  %v1084_v36 = vld [vmem:[%s6731_s21 + $0x58] sm:$0xff] }
  0xeb   : > { %4972 = vmatpush3.msra.mxu1 %v1088_v27  ;;  %v1083_v38 = vld [vmem:[%s6731_s21 + $0x50] sm:$0xff]  ;;  %v1082_v41 = vld [vmem:[%s6731_s21 + $0x48] sm:$0xff]  ;;  %v1081_v43 = vld [vmem:[%s6731_s21 + $0x40] sm:$0xff] }
  0xec   : > { %4973 = vmatprep.subr.mxu1 %v1087_v30  ;;  %v1080_v46 = vld [vmem:[%s6731_s21 + $0x38] sm:$0xff]  ;;  %v1079_v48 = vld [vmem:[%s6731_s21 + $0x30] sm:$0xff]  ;;  %v1078_v50 = vld [vmem:[%s6731_s21 + $0x28] sm:$0xff] }
  0xed   : > { %4974 = vmatpush3.msra.mxu1 %v1087_v30  ;;  %v1077_v52 = vld [vmem:[%s6731_s21 + $0x20] sm:$0xff]  ;;  %v1076_v53 = vld [vmem:[%s6731_s21 + $0x18] sm:$0xff]  ;;  %v1075_v54 = vld [vmem:[%s6731_s21 + $0x10] sm:$0xff] }
  0xee   : > { %4975 = vmatprep.subr.mxu1 %v1086_v31  ;;  %v1072_v55 = vld [vmem:[%s6725_s15 + $0x78] sm:$0xff]  ;;  %v5662_v56 = vld [vmem:[#allocation7 + $0x8] sm:$0xff]   ;;  %v5663_v58 = vld [vmem:[#allocation7 + $0x10] sm:$0xff]  }
  0xef   : > { %p756_p3 = scmp.lt.s32.totalorder %s9207_s9, 0  ;;  %s757_s29 = ssub.s32 0, %s9207_s9  ;;  %4976 = vmatpush3.msra.mxu1 %v1086_v31  ;;  %v1074_v57 = vld [vmem:[%s6731_s21 + $0x8] sm:$0xff]  ;;  %v1071_v59 = vld [vmem:[%s6725_s15 + $0x70] sm:$0xff]  ;;  %v1073_v60 = vld [vmem:[%s6731_s21] sm:$0xff] }
  0xf0   : > { %s4634_s19 = smin.u32 %s9207_s9, %s757_s29  ;;  %4977 = vmatprep.subr.mxu1 %v1085_v33  ;;  %v1070_v61 = vld [vmem:[%s6725_s15 + $0x68] sm:$0xff]  ;;  %v1069_v62 = vld [vmem:[%s6725_s15 + $0x60] sm:$0xff]  ;;  %v5664_v63 = vld [vmem:[#allocation7 + $0x18] sm:$0xff]   ;;  %p1437_p11 = scmp.eq.s32.totalorder %s9207_s9, 3 }
  0xf1   : > { %s759_s16 = sand.u32 1, %s4634_s19   ;;  %4978 = vmatpush3.msra.mxu1 %v1085_v33  ;;  %v5665_v0 = vld [vmem:[#allocation7 + $0x20] sm:$0xff]   ;;  %v1068_v1 = vld [vmem:[%s6725_s15 + $0x58] sm:$0xff]  ;;  %v1067_v2 = vld [vmem:[%s6725_s15 + $0x50] sm:$0xff] }
  0xf2   : > { %s760_s12 = ssub.s32 0, %s759_s16  ;;  %4979 = vmatprep.subr.mxu1 %v1084_v36  ;;  %v1066_v3 = vld [vmem:[%s6725_s15 + $0x48] sm:$0xff]  ;;  %v1065_v4 = vld [vmem:[%s6725_s15 + $0x40] sm:$0xff]  ;;  %v5667_v6 = vld [vmem:[#allocation7 + $0x30] sm:$0xff]  }
  0xf3   : > { %s9763_s12 = smov (!%p756_p3, %s760_s12), %s759_s16  ;;  %4980 = vmatpush3.msra.mxu1 %v1084_v36  ;;  %v5666_v5 = vld [vmem:[#allocation7 + $0x28] sm:$0xff]   ;;  %v1064_v7 = vld [vmem:[%s6725_s15 + $0x38] sm:$0xff]  ;;  %v1063_v8 = vld [vmem:[%s6725_s15 + $0x30] sm:$0xff] }
  0xf4   : > { %s4635_s2 = sshll.u32 %s9763_s12, 7  ;;  %4981 = vmatprep.subr.mxu1 %v1083_v38  ;;  %v1062_v9 = vld [vmem:[%s6725_s15 + $0x28] sm:$0xff]  ;;  %v1061_v10 = vld [vmem:[%s6725_s15 + $0x20] sm:$0xff]  ;;  %v5668_v11 = vld [vmem:[#allocation7 + $0x38] sm:$0xff]   ;;  %s762_s28 = ssub.s32 1, %s9763_s12 }
  0xf5   : > { %s6758_s0 = scalar_lea.vmem [#allocation2], %s4635_s2  ;;  %4982 = vmatpush3.msra.mxu1 %v1083_v38  ;;  %v1060_v12 = vld [vmem:[%s6725_s15 + $0x18] sm:$0xff]  ;;  %v1059_v13 = vld [vmem:[%s6725_s15 + $0x10] sm:$0xff]  ;;  %v1058_v14 = vld [vmem:[%s6725_s15 + $0x8] sm:$0xff]  ;;  %s4645_s18 = sshll.u32 %s762_s28, 7 }
  0xf6   : > { %v6761_v17 = vld [vmem:[%s6758_s0 + $0x70] sm:$0xff]  ;;  %v6764_v18 = vld [vmem:[%s6758_s0 + $0x78] sm:$0xff]  ;;  %v6767_v19 = vld [vmem:[%s6758_s0 + $0x60] sm:$0xff]  ;;  %4983 = vmatprep.subr.mxu1 %v1082_v41  ;;  %s6867_s1 = scalar_lea.vmem [#allocation2], %s4645_s18 }
  0xf7   : > { %v841_v20 = vpack.c.bf16 %v6764_v18, %v6761_v17  ;;  %v6772_v21 = vld [vmem:[%s6758_s0 + $0x68] sm:$0xff]  ;;  %v6777_v23 = vld [vmem:[%s6758_s0 + $0x50] sm:$0xff]  ;;  %v6780_v24 = vld [vmem:[%s6758_s0 + $0x58] sm:$0xff]  ;;  %4984 = vmatpush3.msra.mxu1 %v1082_v41 }
  0xf8   : > { %v840_v22 = vpack.c.bf16 %v6772_v21, %v6767_v19  ;;  %v786_v25 = vld [vmem:[%s6758_s0] sm:$0xff]  ;;  %v839_v26 = vpack.c.bf16 %v6780_v24, %v6777_v23  ;;  %v6790_v29 = vld [vmem:[%s6758_s0 + $0x48] sm:$0xff]  ;;  %v6798_v34 = vld [vmem:[%s6758_s0 + $0x30] sm:$0xff]  ;;  %4985 = vmatprep.subr.mxu1 %v1081_v43 }
  0xf9   : > { %4939 = vmatprep.subr.bf16.mxu0 %v841_v20  ;;  %5003 = vmatprep.mubr.f32.mxu1 %v786_v25  ;;  %v6787_v28 = vld [vmem:[%s6758_s0 + $0x40] sm:$0xff]  ;;  %v6801_v35 = vld [vmem:[%s6758_s0 + $0x38] sm:$0xff]  ;;  %v6811_v40 = vld [vmem:[%s6758_s0 + $0x28] sm:$0xff] }
  0xfa   : > { %4940 = vmatpush3.bf16.msra.mxu0 %v841_v20  ;;  %v838_v32 = vpack.c.bf16 %v6790_v29, %v6787_v28  ;;  %v837_v37 = vpack.c.bf16 %v6801_v35, %v6798_v34  ;;  %v6808_v39 = vld [vmem:[%s6758_s0 + $0x20] sm:$0xff]  ;;  %v788_v44 = vld [vmem:[%s6758_s0 + $0x10] sm:$0xff]  ;;  %v6819_v45 = vld [vmem:[%s6758_s0 + $0x18] sm:$0xff]  ;;  %4986 = vmatpush3.msra.mxu1 %v1081_v43 }
  0xfb   : > { %4941 = vmatprep.subr.bf16.mxu0 %v840_v22  ;;  %v836_v42 = vpack.c.bf16 %v6811_v40, %v6808_v39  ;;  %v835_v47 = vpack.c.bf16 %v6819_v45, %v788_v44  ;;  %v787_v49 = vld [vmem:[%s6758_s0 + $0x8] sm:$0xff]  ;;  %4987 = vmatprep.subr.mxu1 %v1080_v46  ;;  %v1057_v15 = vld [vmem:[%s6725_s15] sm:$0xff] }
  0xfc   : > { %4988 = vmatpush3.msra.mxu1 %v1080_v46  ;;  %v834_v51 = vpack.c.bf16 %v787_v49, %v786_v25 }
  0xfd   : > { %4989 = vmatprep.subr.mxu1 %v1079_v48 }
  0xfe   : > { %4942 = vmatpush3.bf16.msra.mxu0 %v840_v22  ;;  %4990 = vmatpush3.msra.mxu1 %v1079_v48 }
  0xff   : > { %4943 = vmatprep.subr.bf16.mxu0 %v839_v26  ;;  %4991 = vmatprep.subr.mxu1 %v1078_v50 }
 0x100   : > { %4992 = vmatpush3.msra.mxu1 %v1078_v50 }
 0x101   : > { %4993 = vmatprep.subr.mxu1 %v1077_v52 }
 0x102   : > { %4944 = vmatpush3.bf16.msra.mxu0 %v839_v26  ;;  %4994 = vmatpush3.msra.mxu1 %v1077_v52 }
 0x103   : > { %4945 = vmatprep.subr.bf16.mxu0 %v838_v32  ;;  %4995 = vmatprep.subr.mxu1 %v1076_v53 }
 0x104   : > { %4996 = vmatpush3.msra.mxu1 %v1076_v53 }
 0x105   : > { %4997 = vmatprep.subr.mxu1 %v1075_v54 }
 0x106   : > { %4946 = vmatpush3.bf16.msra.mxu0 %v838_v32  ;;  %4998 = vmatpush3.msra.mxu1 %v1075_v54 }
 0x107   : > { %4947 = vmatprep.subr.bf16.mxu0 %v837_v37  ;;  %4999 = vmatprep.subr.mxu1 %v1074_v57 }
 0x108   : > { %5000 = vmatpush3.msra.mxu1 %v1074_v57 }
 0x109   : > { %5001 = vmatprep.subr.mxu1 %v1073_v60 }
 0x10a   : > { %4948 = vmatpush3.bf16.msra.mxu0 %v837_v37  ;;  %5002 = vmatpush3.msra.mxu1 %v1073_v60 }
 0x10b   : > { %4949 = vmatprep.subr.bf16.mxu0 %v836_v42  ;;  %5004 = vmatmul.mubr.f32.vlgmr.msra.gmra.mxu1 %v787_v49 }
 0x10c   : > { %5468 = vmatprep.subr.mxu1 %v1072_v55  ;;  %5006 = vmatprep.mubr.f32.mxu1 %v788_v44 }
 0x10d   : > { %5484 = vmatpush3.msra.mxu1 %v1072_v55 }
 0x10e   : > { %4950 = vmatpush3.bf16.msra.mxu0 %v836_v42  ;;  %5469 = vmatprep.subr.mxu1 %v1071_v59 }
 0x10f   : > { %4951 = vmatprep.subr.bf16.mxu0 %v835_v47  ;;  %5007 = vmatmul.mubr.f32.gmra.mxu1 %v6819_v45  ;;  %v6863_v45 = vld [vmem:[%s6733_s5] ss:$0 sm:$0xff] }
 0x110   : > { %5485 = vmatpush3.msra.mxu1 %v1071_v59  ;;  %5009 = vmatprep.mubr.f32.mxu1 %v6808_v39 }
 0x111   : > { %5470 = vmatprep.subr.mxu1 %v1070_v61 }
 0x112   : > { %4952 = vmatpush3.bf16.msra.mxu0 %v835_v47  ;;  %5486 = vmatpush3.msra.mxu1 %v1070_v61 }
 0x113   : > { %4953 = vmatprep.subr.bf16.mxu0 %v834_v51  ;;  %5471 = vmatprep.subr.mxu1 %v1069_v62 }
 0x114   : > { %5010 = vmatmul.mubr.f32.gmra.mxu1 %v6811_v40 }
 0x115   : > { %5487 = vmatpush3.msra.mxu1 %v1069_v62  ;;  %5012 = vmatprep.mubr.f32.mxu1 %v6798_v34 }
 0x116   : > { %4954 = vmatpush3.bf16.msra.mxu0 %v834_v51  ;;  %5472 = vmatprep.subr.mxu1 %v1068_v1 }
 0x117   : > { %5027 = vmatprep.subr.mxu0 %v1072_v55  ;;  %5488 = vmatpush3.msra.mxu1 %v1068_v1 }
 0x118   : > { %5473 = vmatprep.subr.mxu1 %v1067_v2  ;;  %5013 = vmatmul.mubr.f32.gmra.mxu1 %v6801_v35 }
 0x119   : > { %4956 = vmatmul.mubr.bf16.vlgmr.msra.gmra.mxu0 %v5662_v56  ;;  %5489 = vmatpush3.msra.mxu1 %v1067_v2 }
 0x11a   : > { %4959 = vmatprep.mubr.bf16.mxu0 %v5663_v58  ;;  %5028 = vmatpush3.msra.mxu0 %v1072_v55 }
 0x11b   : > { %5029 = vmatprep.subr.mxu0 %v1071_v59  ;;  %5015 = vmatprep.mubr.f32.mxu1 %v6787_v28 }
 0x11c   : > { %5030 = vmatpush3.msra.mxu0 %v1071_v59  ;;  %5474 = vmatprep.subr.mxu1 %v1066_v3 }
 0x11d   : > { %5031 = vmatprep.subr.mxu0 %v1070_v61  ;;  %5490 = vmatpush3.msra.mxu1 %v1066_v3 }
 0x11e   : > { %5032 = vmatpush3.msra.mxu0 %v1070_v61  ;;  %5475 = vmatprep.subr.mxu1 %v1065_v4 }
 0x11f   : > { %5033 = vmatprep.subr.mxu0 %v1069_v62  ;;  %5016 = vmatmul.mubr.f32.gmra.mxu1 %v6790_v29 }
 0x120   : > { %5034 = vmatpush3.msra.mxu0 %v1069_v62  ;;  %5491 = vmatpush3.msra.mxu1 %v1065_v4 }
 0x121   : > { %4960 = vmatmul.mubr.bf16.gmra.mxu0 %v5664_v63  ;;  %5035 = vmatprep.subr.mxu0 %v1068_v1 }
 0x122   : > { %4963 = vmatprep.mubr.bf16.mxu0 %v5665_v0  ;;  %5036 = vmatpush3.msra.mxu0 %v1068_v1 }
 0x123   : > { %5037 = vmatprep.subr.mxu0 %v1067_v2  ;;  %5018 = vmatprep.mubr.f32.mxu1 %v6777_v23 }
 0x124   : > { %5038 = vmatpush3.msra.mxu0 %v1067_v2  ;;  %5476 = vmatprep.subr.mxu1 %v1064_v7 }
 0x125   : > { %5039 = vmatprep.subr.mxu0 %v1066_v3  ;;  %5492 = vmatpush3.msra.mxu1 %v1064_v7 }
 0x126   : > { %5040 = vmatpush3.msra.mxu0 %v1066_v3  ;;  %5477 = vmatprep.subr.mxu1 %v1063_v8 }
 0x127   : > { %5041 = vmatprep.subr.mxu0 %v1065_v4  ;;  %5019 = vmatmul.mubr.f32.gmra.mxu1 %v6780_v24 }
 0x128   : > { %5042 = vmatpush3.msra.mxu0 %v1065_v4  ;;  %5493 = vmatpush3.msra.mxu1 %v1063_v8 }
 0x129   : > { %4964 = vmatmul.mubr.bf16.gmra.mxu0 %v5666_v5  ;;  %5043 = vmatprep.subr.mxu0 %v1064_v7 }
 0x12a   : > { %4967 = vmatprep.mubr.bf16.mxu0 %v5667_v6  ;;  %5044 = vmatpush3.msra.mxu0 %v1064_v7 }
 0x12b   : > { %5045 = vmatprep.subr.mxu0 %v1063_v8  ;;  %5021 = vmatprep.mubr.f32.mxu1 %v6767_v19 }
 0x12c   : > { %5046 = vmatpush3.msra.mxu0 %v1063_v8  ;;  %5478 = vmatprep.subr.mxu1 %v1062_v9 }
 0x12d   : > { %5047 = vmatprep.subr.mxu0 %v1062_v9  ;;  %5494 = vmatpush3.msra.mxu1 %v1062_v9 }
 0x12e   : > { %5048 = vmatpush3.msra.mxu0 %v1062_v9  ;;  %5479 = vmatprep.subr.mxu1 %v1061_v10 }
 0x12f   : > { %5049 = vmatprep.subr.mxu0 %v1061_v10  ;;  %5022 = vmatmul.mubr.f32.gmra.mxu1 %v6772_v21 }
 0x130   : > { %5050 = vmatpush3.msra.mxu0 %v1061_v10  ;;  %5495 = vmatpush3.msra.mxu1 %v1061_v10 }
 0x131   : > { %4968 = vmatmul.mubr.bf16.gmra.mxu0 %v5668_v11  ;;  %5051 = vmatprep.subr.mxu0 %v1060_v12 }
 0x132   : > { %5052 = vmatpush3.msra.mxu0 %v1060_v12  ;;  %5024 = vmatprep.mubr.f32.mxu1 %v6761_v17 }
 0x133   : > { %5480 = vmatprep.subr.mxu1 %v1060_v12  ;;  %5025 = vmatmul.mubr.f32.gmra.mxu1 %v6764_v18 }
 0x134   : > { %5496 = vmatpush3.msra.mxu1 %v1060_v12  ;;  %5053 = vmatprep.subr.mxu0 %v1059_v13 }
 0x135   : > { %5481 = vmatprep.subr.mxu1 %v1059_v13  ;;  %5054 = vmatpush3.msra.mxu0 %v1059_v13 }
 0x136   : > { %5497 = vmatpush3.msra.mxu1 %v1059_v13  ;;  %5055 = vmatprep.subr.mxu0 %v1058_v14 }
 0x137   : > { %5482 = vmatprep.subr.mxu1 %v1058_v14  ;;  %5056 = vmatpush3.msra.mxu0 %v1058_v14 }
 0x138   : > { %5498 = vmatpush3.msra.mxu1 %v1058_v14  ;;  %5057 = vmatprep.subr.mxu0 %v1057_v15 }
 0x139   : > { %5483 = vmatprep.subr.mxu1 %v1057_v15  ;;  %5058 = vmatpush3.msra.mxu0 %v1057_v15 }
 0x13a   : > { %5499 = vmatpush3.msra.mxu1 %v1057_v15 }
 0x1cb   : > { %v5005_v32 = vpop.f32.mrf.mxu1 }
 0x1cd   : > { %v1155_v33 = vpop.f32.mrf.mxu1 }
 0x1cf   : > { %v5008_v34 = vpop.f32.mrf.mxu1 }
 0x1d1   : > { %v1165_v35 = vpop.f32.mrf.mxu1 }
 0x1d4   : > { %v5011_v36 = vpop.f32.mrf.mxu1 }
 0x1d6   : > { %v1175_v37 = vpop.f32.mrf.mxu1 }
 0x1d8   : > { %v5014_v38 = vpop.f32.mrf.mxu1 }
 0x1d9   : > { %v4957_v16 = vpop.f32.mrf.mxu0 }
 0x1da   : > { %v1185_v39 = vpop.f32.mrf.mxu1 }
 0x1db   : > { %v924_v17 = vpop.f32.mrf.mxu0 }
 0x1dc   : > { %5059 = vmatprep.mubr.f32.mxu0 %v924_v17 }
 0x1dd   : > { %v4958_v19 = vpop.f32.mrf.mxu0 }
 0x1df   : > { %v927_v18 = vpop.f32.mrf.mxu0  ;;  %v5017_v40 = vpop.f32.mrf.mxu1 }
 0x1e0   : > { %5060 = vmatmul.mubr.f32.vlgmr.msra.gmra.mxu0 %v927_v18 }
 0x1e1   : > { %v4961_v20 = vpop.f32.mrf.mxu0  ;;  %5062 = vmatprep.mubr.f32.mxu0 %v4957_v16  ;;  %v1195_v41 = vpop.f32.mrf.mxu1 }
 0x1e3   : > { %v940_v21 = vpop.f32.mrf.mxu0 }
 0x1e4   : > { %5063 = vmatmul.mubr.f32.gmra.mxu0 %v4958_v19 }
 0x1e5   : > { %v4962_v22 = vpop.f32.mrf.mxu0  ;;  %5065 = vmatprep.mubr.f32.mxu0 %v940_v21 }
 0x1e7   : > { %v943_v23 = vpop.f32.mrf.mxu0  ;;  %v5020_v42 = vpop.f32.mrf.mxu1 }
 0x1e8   : > { %5066 = vmatmul.mubr.f32.gmra.mxu0 %v943_v23 }
 0x1e9   : > { %v4965_v24 = vpop.f32.mrf.mxu0  ;;  %5068 = vmatprep.mubr.f32.mxu0 %v4961_v20  ;;  %v1205_v43 = vpop.f32.mrf.mxu1 }
 0x1eb   : > { %v956_v25 = vpop.f32.mrf.mxu0 }
 0x1ec   : > { %5069 = vmatmul.mubr.f32.gmra.mxu0 %v4962_v22  ;;  %5071 = vmatprep.mubr.f32.mxu1 %v956_v25 }
 0x1ed   : > { %v4966_v26 = vpop.f32.mrf.mxu0 }
 0x1ef   : > { %v959_v27 = vpop.f32.mrf.mxu0  ;;  %v5023_v48 = vpop.f32.mrf.mxu1 }
 0x1f0   : > { %5072 = vmatmul.mubr.f32.vlgmr.msra.gmra.mxu1 %v959_v27 }
 0x1f1   : > { %v4969_v28 = vpop.f32.mrf.mxu0  ;;  %5074 = vmatprep.mubr.f32.mxu1 %v4965_v24  ;;  %v1215_v56 = vpop.f32.mrf.mxu1 }
 0x1f3   : > { %v972_v29 = vpop.f32.mrf.mxu0  ;;  %v5026_v0 = vpop.f32.mrf.mxu1 }
 0x1f4   : > { %5075 = vmatmul.mubr.f32.gmra.mxu1 %v4966_v26 }
 0x1f5   : > { %v4970_v30 = vpop.f32.mrf.mxu0  ;;  %5077 = vmatprep.mubr.f32.mxu1 %v972_v29  ;;  %v1225_v9 = vpop.f32.mrf.mxu1 }
 0x1f7   : > { %v975_v31 = vpop.f32.mrf.mxu0 }
 0x1f8   : > { %5078 = vmatmul.mubr.f32.gmra.mxu1 %v975_v31 }
 0x1f9   : > { %5080 = vmatprep.mubr.f32.mxu1 %v4969_v28 }
 0x1fc   : > { %5081 = vmatmul.mubr.f32.gmra.mxu1 %v4970_v30 }
 0x2a0   : > { %v5061_v44 = vpop.f32.mrf.mxu0 }
 0x2a1   : > { %v1306_v46 = vadd.f32 %v5061_v44, %v5005_v32 }
 0x2a2   : > { %v1300_v47 = vpop.f32.mrf.mxu0 }
 0x2a3   : > { %v1387_v49 = vadd.f32 %v6863_v45, %v1306_v46  ;;  %v1301_v50 = vadd.f32 %v1300_v47, %v1155_v33 }
 0x2a4   : > { %v5064_v51 = vpop.f32.mrf.mxu0 }
 0x2a5   : > { %v1403_v52 = vmax.f32 %v1387_v49, 0.0  ;;  %v1386_v53 = vadd.f32 %v6863_v45, %v1301_v50  ;;  %v1316_v54 = vadd.f32 %v5064_v51, %v5008_v34 }
 0x2a6   : > { %v1310_v55 = vpop.f32.mrf.mxu0 }
 0x2a7   : > { %1422 = vst [vmem:[%s6867_s1 + $0x8] sm:$0xff] %v1403_v52  ;;  %v1402_v57 = vmax.f32 %v1386_v53, 0.0  ;;  %v1389_v58 = vadd.f32 %v6863_v45, %v1316_v54  ;;  %v1311_v59 = vadd.f32 %v1310_v55, %v1165_v35 }
 0x2a8   : > { %v5067_v60 = vpop.f32.mrf.mxu0 }
 0x2a9   : > { %1421 = vst [vmem:[%s6867_s1] sm:$0xff] %v1402_v57  ;;  %v1405_v61 = vmax.f32 %v1389_v58, 0.0  ;;  %v1388_v62 = vadd.f32 %v6863_v45, %v1311_v59  ;;  %v1326_v63 = vadd.f32 %v5067_v60, %v5011_v36 }
 0x2aa   : > { %v1320_v1 = vpop.f32.mrf.mxu0 }
 0x2ab   : > { %1424 = vst [vmem:[%s6867_s1 + $0x18] sm:$0xff] %v1405_v61  ;;  %v1404_v2 = vmax.f32 %v1388_v62, 0.0  ;;  %v1391_v3 = vadd.f32 %v6863_v45, %v1326_v63  ;;  %v1321_v4 = vadd.f32 %v1320_v1, %v1175_v37 }
 0x2ac   : > { %v5070_v5 = vpop.f32.mrf.mxu0 }
 0x2ad   : > { %1423 = vst [vmem:[%s6867_s1 + $0x10] sm:$0xff] %v1404_v2  ;;  %v1407_v6 = vmax.f32 %v1391_v3, 0.0  ;;  %v1390_v7 = vadd.f32 %v6863_v45, %v1321_v4  ;;  %v1336_v8 = vadd.f32 %v5070_v5, %v5014_v38 }
 0x2ae   : > { %v1330_v10 = vpop.f32.mrf.mxu0 }
 0x2af   : > { %1426 = vst [vmem:[%s6867_s1 + $0x28] sm:$0xff] %v1407_v6  ;;  %v1406_v11 = vmax.f32 %v1390_v7, 0.0  ;;  %v1393_v12 = vadd.f32 %v6863_v45, %v1336_v8  ;;  %v1331_v13 = vadd.f32 %v1330_v10, %v1185_v39 }
 0x2b0   : > { %v5073_v14 = vpop.f32.mrf.mxu1 }
 0x2b1   : > { %1425 = vst [vmem:[%s6867_s1 + $0x20] sm:$0xff] %v1406_v11  ;;  %v1409_v15 = vmax.f32 %v1393_v12, 0.0  ;;  %v1392_v16 = vadd.f32 %v6863_v45, %v1331_v13  ;;  %v1346_v17 = vadd.f32 %v5073_v14, %v5017_v40 }
 0x2b2   : > { %v1340_v19 = vpop.f32.mrf.mxu1 }
 0x2b3   : > { %1428 = vst [vmem:[%s6867_s1 + $0x38] sm:$0xff] %v1409_v15  ;;  %v1408_v18 = vmax.f32 %v1392_v16, 0.0  ;;  %v1395_v20 = vadd.f32 %v6863_v45, %v1346_v17  ;;  %v1341_v21 = vadd.f32 %v1340_v19, %v1195_v41 }
 0x2b4   : > { %v5076_v22 = vpop.f32.mrf.mxu1 }
 0x2b5   : > { %1427 = vst [vmem:[%s6867_s1 + $0x30] sm:$0xff] %v1408_v18  ;;  %v1411_v23 = vmax.f32 %v1395_v20, 0.0  ;;  %v1394_v24 = vadd.f32 %v6863_v45, %v1341_v21  ;;  %v1356_v25 = vadd.f32 %v5076_v22, %v5020_v42 }
 0x2b6   : > { %v1350_v26 = vpop.f32.mrf.mxu1 }
 0x2b7   : > { %1430 = vst [vmem:[%s6867_s1 + $0x48] sm:$0xff] %v1411_v23  ;;  %v1410_v27 = vmax.f32 %v1394_v24, 0.0  ;;  %v1397_v28 = vadd.f32 %v6863_v45, %v1356_v25  ;;  %v1351_v29 = vadd.f32 %v1350_v26, %v1205_v43 }
 0x2b8   : > { %v5079_v30 = vpop.f32.mrf.mxu1 }
 0x2b9   : > { %1429 = vst [vmem:[%s6867_s1 + $0x40] sm:$0xff] %v1410_v27  ;;  %v1413_v31 = vmax.f32 %v1397_v28, 0.0  ;;  %v1396_v32 = vadd.f32 %v6863_v45, %v1351_v29  ;;  %v1366_v33 = vadd.f32 %v5079_v30, %v5023_v48 }
 0x2ba   : > { %v1360_v34 = vpop.f32.mrf.mxu1 }
 0x2bb   : > { %1432 = vst [vmem:[%s6867_s1 + $0x58] sm:$0xff] %v1413_v31  ;;  %v1412_v35 = vmax.f32 %v1396_v32, 0.0  ;;  %v1399_v36 = vadd.f32 %v6863_v45, %v1366_v33  ;;  %v1361_v37 = vadd.f32 %v1360_v34, %v1215_v56 }
 0x2bc   : > { %v5082_v38 = vpop.f32.mrf.mxu1 }
 0x2bd   : > { %1431 = vst [vmem:[%s6867_s1 + $0x50] sm:$0xff] %v1412_v35  ;;  %v1415_v39 = vmax.f32 %v1399_v36, 0.0  ;;  %v1398_v40 = vadd.f32 %v6863_v45, %v1361_v37  ;;  %v1376_v41 = vadd.f32 %v5082_v38, %v5026_v0 }
 0x2be   : > { %v1370_v42 = vpop.f32.mrf.mxu1 }
 0x2bf   : > { %1434 = vst [vmem:[%s6867_s1 + $0x68] sm:$0xff] %v1415_v39  ;;  %v1414_v43 = vmax.f32 %v1398_v40, 0.0  ;;  %v1401_v44 = vadd.f32 %v6863_v45, %v1376_v41  ;;  %v1371_v46 = vadd.f32 %v1370_v42, %v1225_v9 }
 0x2c1   : > { %1433 = vst [vmem:[%s6867_s1 + $0x60] sm:$0xff] %v1414_v43  ;;  %v1417_v47 = vmax.f32 %v1401_v44, 0.0  ;;  %v1400_v48 = vadd.f32 %v6863_v45, %v1371_v46  ;;  %1443 = sbr.rel (!%p1437_p11) target bundleno = 5528 (0x1598), region = 140 }
 0x2c3   : > { %1436 = vst [vmem:[%s6867_s1 + $0x78] sm:$0xff] %v1417_v47  ;;  %v1416_v49 = vmax.f32 %v1400_v48, 0.0 }
 0x2c5   : > { %1435 = vst [vmem:[%s6867_s1 + $0x70] sm:$0xff] %v1416_v49 }
 0x2c6   : > { %v6901_v50 = vld [vmem:[#allocation13 + $0x1e8] sm:$0xff]  ;;  %v6903_v51 = vld [vmem:[#allocation13 + $0x1f8] sm:$0xff]  ;;  %v1585_v52 = vld [vmem:[#allocation13 + $0x1e0] sm:$0xff]  ;;  %vm6416_vm0 = vmmov 0   ;;  %s9338_s26 = sld [smem:[#allocation175_spill]] }
 0x2c7   : > { %1654 = vmatprep.subr.mxu0 %v6901_v50  ;;  %1725 = vmatprep.subr.mxu1 %v6903_v51  ;;  %v1587_v53 = vld [vmem:[#allocation13 + $0x1f0] sm:$0xff]  ;;  %v1582_v54 = vld [vmem:[#allocation13 + $0x1c8] sm:$0xff]  ;;  %v1584_v55 = vld [vmem:[#allocation13 + $0x1d8] sm:$0xff]  ;;  %s9339_s25 = sld [smem:[#allocation174_spill]] }
 0x2c8   : > { %1655 = vmatpush1.msra.mxu0 %v1585_v52  ;;  %1726 = vmatpush1.msra.mxu1 %v1587_v53  ;;  %v1581_v45 = vld [vmem:[#allocation13 + $0x1c0] sm:$0xff]  ;;  %v1583_v56 = vld [vmem:[#allocation13 + $0x1d0] sm:$0xff]  ;;  %v1578_v57 = vld [vmem:[#allocation13 + $0x1a8] sm:$0xff]  ;;  %v8856_v53 = vmov 0.0   ;;  %s9749_s9 = sld [smem:[#allocation176_spill]] }
 0x2c9   : > { %1656 = vmatprep.subr.mxu0 %v1582_v54  ;;  %1727 = vmatprep.subr.mxu1 %v1584_v55  ;;  %v1580_v58 = vld [vmem:[#allocation13 + $0x1b8] sm:$0xff]  ;;  %v1577_v59 = vld [vmem:[#allocation13 + $0x1a0] sm:$0xff]  ;;  %v1579_v60 = vld [vmem:[#allocation13 + $0x1b0] sm:$0xff]  ;;  %s9750_s16 = sld [smem:[#allocation177_spill]] }
 0x2ca   : > { %1657 = vmatpush1.msra.mxu0 %v1581_v45  ;;  %1728 = vmatpush1.msra.mxu1 %v1583_v56  ;;  %v1574_v61 = vld [vmem:[#allocation13 + $0x188] sm:$0xff]  ;;  %v1576_v62 = vld [vmem:[#allocation13 + $0x198] sm:$0xff]  ;;  %v1573_v63 = vld [vmem:[#allocation13 + $0x180] sm:$0xff] }
 0x2cb   : > { %1658 = vmatprep.subr.mxu0 %v1578_v57  ;;  %1729 = vmatprep.subr.mxu1 %v1580_v58  ;;  %v1575_v0 = vld [vmem:[#allocation13 + $0x190] sm:$0xff]  ;;  %v1570_v1 = vld [vmem:[#allocation13 + $0x168] sm:$0xff]  ;;  %v1572_v2 = vld [vmem:[#allocation13 + $0x178] sm:$0xff] }
 0x2cc   : > { %1659 = vmatpush1.msra.mxu0 %v1577_v59  ;;  %1730 = vmatpush1.msra.mxu1 %v1579_v60  ;;  %v1569_v3 = vld [vmem:[#allocation13 + $0x160] sm:$0xff]  ;;  %v1571_v4 = vld [vmem:[#allocation13 + $0x170] sm:$0xff]  ;;  %v1566_v5 = vld [vmem:[#allocation13 + $0x148] sm:$0xff] }
 0x2cd   : > { %1660 = vmatprep.subr.mxu0 %v1574_v61  ;;  %1731 = vmatprep.subr.mxu1 %v1576_v62  ;;  %v1568_v6 = vld [vmem:[#allocation13 + $0x158] sm:$0xff]  ;;  %v1565_v7 = vld [vmem:[#allocation13 + $0x140] sm:$0xff]  ;;  %v1567_v8 = vld [vmem:[#allocation13 + $0x150] sm:$0xff] }
 0x2ce   : > { %1661 = vmatpush1.msra.mxu0 %v1573_v63  ;;  %1732 = vmatpush1.msra.mxu1 %v1575_v0  ;;  %v1562_v9 = vld [vmem:[#allocation13 + $0x128] sm:$0xff]  ;;  %v6907_v10 = vld [vmem:[#allocation13 + $0x138] sm:$0xff]  ;;  %v1561_v11 = vld [vmem:[#allocation13 + $0x120] sm:$0xff] }
 0x2cf   : > { %1662 = vmatprep.subr.mxu0 %v1570_v1  ;;  %1733 = vmatprep.subr.mxu1 %v1572_v2  ;;  %v6909_v12 = vld [vmem:[#allocation13 + $0x130] sm:$0xff]  ;;  %v1558_v13 = vld [vmem:[#allocation13 + $0x108] sm:$0xff]  ;;  %v6911_v14 = vld [vmem:[#allocation13 + $0x118] sm:$0xff] }
 0x2d0   : > { %1663 = vmatpush1.msra.mxu0 %v1569_v3  ;;  %1734 = vmatpush1.msra.mxu1 %v1571_v4  ;;  %v1557_v15 = vld [vmem:[#allocation13 + $0x100] sm:$0xff]  ;;  %v6914_v16 = vld [vmem:[#allocation13 + $0x110] sm:$0xff]  ;;  %v1554_v17 = vld [vmem:[#allocation13 + $0xe8] sm:$0xff] }
 0x2d1   : > { %1664 = vmatprep.subr.mxu0 %v1566_v5  ;;  %1735 = vmatprep.subr.mxu1 %v1568_v6  ;;  %v6917_v19 = vld [vmem:[#allocation13 + $0xf8] sm:$0xff]  ;;  %v1553_v18 = vld [vmem:[#allocation13 + $0xe0] sm:$0xff]  ;;  %v6920_v20 = vld [vmem:[#allocation13 + $0xf0] sm:$0xff] }
 0x2d2   : > { %1665 = vmatpush1.msra.mxu0 %v1565_v7  ;;  %1736 = vmatpush1.msra.mxu1 %v1567_v8  ;;  %v1550_v21 = vld [vmem:[#allocation13 + $0xc8] sm:$0xff]  ;;  %v6923_v22 = vld [vmem:[#allocation13 + $0xd8] sm:$0xff]  ;;  %v1549_v23 = vld [vmem:[#allocation13 + $0xc0] sm:$0xff] }
 0x2d3   : > { %1666 = vmatprep.subr.mxu0 %v1562_v9  ;;  %1737 = vmatprep.subr.mxu1 %v6907_v10  ;;  %v6926_v24 = vld [vmem:[#allocation13 + $0xd0] sm:$0xff]  ;;  %v1546_v25 = vld [vmem:[#allocation13 + $0xa8] sm:$0xff]  ;;  %v6929_v26 = vld [vmem:[#allocation13 + $0xb8] sm:$0xff] }
 0x2d4   : > { %1667 = vmatpush1.msra.mxu0 %v1561_v11  ;;  %1738 = vmatpush1.msra.mxu1 %v6909_v12  ;;  %v1545_v27 = vld [vmem:[#allocation13 + $0xa0] sm:$0xff]  ;;  %v6932_v28 = vld [vmem:[#allocation13 + $0xb0] sm:$0xff]  ;;  %v1542_v29 = vld [vmem:[#allocation13 + $0x88] sm:$0xff] }
 0x2d5   : > { %1668 = vmatprep.subr.mxu0 %v1558_v13  ;;  %1739 = vmatprep.subr.mxu1 %v6911_v14  ;;  %v6935_v30 = vld [vmem:[#allocation13 + $0x98] sm:$0xff]  ;;  %v1541_v31 = vld [vmem:[#allocation13 + $0x80] sm:$0xff]  ;;  %v6938_v32 = vld [vmem:[#allocation13 + $0x90] sm:$0xff] }
 0x2d6   : > { %1669 = vmatpush1.msra.mxu0 %v1557_v15  ;;  %1740 = vmatpush1.msra.mxu1 %v6914_v16  ;;  %v1538_v33 = vld [vmem:[#allocation13 + $0x68] sm:$0xff]  ;;  %v6941_v34 = vld [vmem:[#allocation13 + $0x78] sm:$0xff]  ;;  %v1537_v35 = vld [vmem:[#allocation13 + $0x60] sm:$0xff] }
 0x2d7   : > { %1670 = vmatprep.subr.mxu0 %v1554_v17  ;;  %1741 = vmatprep.subr.mxu1 %v6917_v19  ;;  %v6944_v36 = vld [vmem:[#allocation13 + $0x70] sm:$0xff]  ;;  %v1534_v37 = vld [vmem:[#allocation13 + $0x48] sm:$0xff]  ;;  %v6947_v38 = vld [vmem:[#allocation13 + $0x58] sm:$0xff] }
 0x2d8   : > { %1671 = vmatpush1.msra.mxu0 %v1553_v18  ;;  %1742 = vmatpush1.msra.mxu1 %v6920_v20  ;;  %v1533_v39 = vld [vmem:[#allocation13 + $0x40] sm:$0xff]  ;;  %v6950_v40 = vld [vmem:[#allocation13 + $0x50] sm:$0xff]  ;;  %v1530_v41 = vld [vmem:[#allocation13 + $0x28] sm:$0xff] }
 0x2d9   : > { %1672 = vmatprep.subr.mxu0 %v1550_v21  ;;  %1743 = vmatprep.subr.mxu1 %v6923_v22  ;;  %v6953_v42 = vld [vmem:[#allocation13 + $0x38] sm:$0xff]  ;;  %v1529_v43 = vld [vmem:[#allocation13 + $0x20] sm:$0xff]  ;;  %v6956_v44 = vld [vmem:[#allocation13 + $0x30] sm:$0xff] }
 0x2da   : > { %1673 = vmatpush1.msra.mxu0 %v1549_v23  ;;  %1744 = vmatpush1.msra.mxu1 %v6926_v24  ;;  %v6959_v46 = vld [vmem:[#allocation13 + $0x8] sm:$0xff]  ;;  %v6961_v47 = vld [vmem:[#allocation13 + $0x18] sm:$0xff]  ;;  %v6964_v48 = vld [vmem:[#allocation13] sm:$0xff] }
 0x2db   : > { %1674 = vmatprep.subr.mxu0 %v1546_v25  ;;  %1745 = vmatprep.subr.mxu1 %v6929_v26  ;;  %v6967_v49 = vld [vmem:[#allocation13 + $0x10] sm:$0xff]  ;;  %v6971_v52 = vld [vmem:[#allocation12 + $0x1e8] sm:$0xff]  ;;  %v6975_v54 = vld [vmem:[#allocation12 + $0x1f8] sm:$0xff] }
 0x2dc   : > { %1675 = vmatpush1.msra.mxu0 %v1545_v27  ;;  %1746 = vmatpush1.msra.mxu1 %v6932_v28  ;;  %v6979_v55 = vld [vmem:[#allocation12 + $0x1e0] sm:$0xff]  ;;  %v6981_v45 = vld [vmem:[#allocation12 + $0x1f0] sm:$0xff]  ;;  %v6985_v56 = vld [vmem:[#allocation12 + $0x1c8] sm:$0xff] }
 0x2dd   : > { %1676 = vmatprep.subr.mxu0 %v1542_v29  ;;  %1747 = vmatprep.subr.mxu1 %v6935_v30  ;;  %v6987_v57 = vld [vmem:[#allocation12 + $0x1d8] sm:$0xff]  ;;  %v6991_v58 = vld [vmem:[#allocation12 + $0x1c0] sm:$0xff]  ;;  %v6993_v59 = vld [vmem:[#allocation12 + $0x1d0] sm:$0xff] }
 0x2de   : > { %1677 = vmatpush1.msra.mxu0 %v1541_v31  ;;  %1748 = vmatpush1.msra.mxu1 %v6938_v32  ;;  %v6997_v60 = vld [vmem:[#allocation12 + $0x1a8] sm:$0xff]  ;;  %v6999_v61 = vld [vmem:[#allocation12 + $0x1b8] sm:$0xff]  ;;  %v7003_v62 = vld [vmem:[#allocation12 + $0x1a0] sm:$0xff] }
 0x2df   : > { %1678 = vmatprep.subr.mxu0 %v1538_v33  ;;  %1749 = vmatprep.subr.mxu1 %v6941_v34  ;;  %v7005_v63 = vld [vmem:[#allocation12 + $0x1b0] sm:$0xff]  ;;  %v7009_v0 = vld [vmem:[#allocation12 + $0x188] sm:$0xff]  ;;  %v7011_v1 = vld [vmem:[#allocation12 + $0x198] sm:$0xff] }
 0x2e0   : > { %1679 = vmatpush1.msra.mxu0 %v1537_v35  ;;  %1750 = vmatpush1.msra.mxu1 %v6944_v36  ;;  %v7015_v2 = vld [vmem:[#allocation12 + $0x180] sm:$0xff]  ;;  %v7017_v3 = vld [vmem:[#allocation12 + $0x190] sm:$0xff]  ;;  %v7021_v4 = vld [vmem:[#allocation12 + $0x168] sm:$0xff] }
 0x2e1   : > { %1680 = vmatprep.subr.mxu0 %v1534_v37  ;;  %1751 = vmatprep.subr.mxu1 %v6947_v38  ;;  %9208 = vst [vmem:[#allocation36_spill] sm:$0xff] %v7017_v3  ;;  %9209 = vst [vmem:[#allocation37_spill] sm:$0xff] %v7021_v4  ;;  %v7023_v5 = vld [vmem:[#allocation12 + $0x178] sm:$0xff]  ;;  %v7027_v6 = vld [vmem:[#allocation12 + $0x160] sm:$0xff] }
 0x2e2   : > { %1681 = vmatpush1.msra.mxu0 %v1533_v39  ;;  %1752 = vmatpush1.msra.mxu1 %v6950_v40  ;;  %9210 = vst [vmem:[#allocation38_spill] sm:$0xff] %v7023_v5  ;;  %9211 = vst [vmem:[#allocation39_spill] sm:$0xff] %v7027_v6  ;;  %v7029_v7 = vld [vmem:[#allocation12 + $0x170] sm:$0xff]  ;;  %v7033_v8 = vld [vmem:[#allocation12 + $0x148] sm:$0xff] }
 0x2e3   : > { %1682 = vmatprep.subr.mxu0 %v1530_v41  ;;  %1753 = vmatprep.subr.mxu1 %v6953_v42  ;;  %9212 = vst [vmem:[#allocation40_spill] sm:$0xff] %v7029_v7  ;;  %9213 = vst [vmem:[#allocation41_spill] sm:$0xff] %v7033_v8  ;;  %v7035_v9 = vld [vmem:[#allocation12 + $0x158] sm:$0xff]  ;;  %v7039_v11 = vld [vmem:[#allocation12 + $0x140] sm:$0xff] }
 0x2e4   : > { %1683 = vmatpush1.msra.mxu0 %v1529_v43  ;;  %1754 = vmatpush1.msra.mxu1 %v6956_v44  ;;  %9214 = vst [vmem:[#allocation42_spill] sm:$0xff] %v7035_v9  ;;  %9215 = vst [vmem:[#allocation43_spill] sm:$0xff] %v7039_v11  ;;  %v7041_v13 = vld [vmem:[#allocation12 + $0x150] sm:$0xff]  ;;  %v7045_v15 = vld [vmem:[#allocation12 + $0x128] sm:$0xff] }
 0x2e5   : > { %1684 = vmatprep.subr.mxu0 %v6959_v46  ;;  %1755 = vmatprep.subr.mxu1 %v6961_v47  ;;  %9216 = vst [vmem:[#allocation44_spill] sm:$0xff] %v7041_v13  ;;  %9217 = vst [vmem:[#allocation45_spill] sm:$0xff] %v7045_v15  ;;  %v7047_v17 = vld [vmem:[#allocation12 + $0x138] sm:$0xff]  ;;  %v7051_v18 = vld [vmem:[#allocation12 + $0x120] sm:$0xff] }
 0x2e6   : > { %1685 = vmatpush1.msra.mxu0 %v6964_v48  ;;  %1718 = vmatprep.mubr.f32.mxu0 %v8856_v53  ;;  %9218 = vst [vmem:[#allocation46_spill] sm:$0xff] %v7047_v17  ;;  %9219 = vst [vmem:[#allocation47_spill] sm:$0xff] %v7051_v18  ;;  %v7053_v21 = vld [vmem:[#allocation12 + $0x130] sm:$0xff]  ;;  %v7057_v23 = vld [vmem:[#allocation12 + $0x108] sm:$0xff] }
 0x2e7   : > { %1756 = vmatpush1.msra.mxu1 %v6967_v49  ;;  %1719 = vmatmul.mubr.f32.vlgmr.msra.gmra.mxu0 %v8856_v53  ;;  %9220 = vst [vmem:[#allocation48_spill] sm:$0xff] %v7053_v21  ;;  %9221 = vst [vmem:[#allocation49_spill] sm:$0xff] %v7057_v23  ;;  %v7059_v25 = vld [vmem:[#allocation12 + $0x118] sm:$0xff]  ;;  %v7063_v27 = vld [vmem:[#allocation12 + $0x100] sm:$0xff] }
 0x2e8   : > { %1789 = vmatprep.mubr.f32.mxu1 %v8856_v53  ;;  %1796 = vmatprep.subr.mxu0 %v6971_v52  ;;  %9222 = vst [vmem:[#allocation50_spill] sm:$0xff] %v7059_v25  ;;  %9223 = vst [vmem:[#allocation51_spill] sm:$0xff] %v7063_v27  ;;  %v7065_v29 = vld [vmem:[#allocation12 + $0x110] sm:$0xff]  ;;  %v7069_v31 = vld [vmem:[#allocation12 + $0xe8] sm:$0xff] }
 0x2e9   : > { %1867 = vmatprep.subr.mxu1 %v6975_v54  ;;  %1790 = vmatmul.mubr.f32.vlgmr.msra.gmra.mxu1 %v8856_v53  ;;  %9224 = vst [vmem:[#allocation52_spill] sm:$0xff] %v7065_v29  ;;  %9225 = vst [vmem:[#allocation53_spill] sm:$0xff] %v7069_v31  ;;  %v7071_v33 = vld [vmem:[#allocation12 + $0xf8] sm:$0xff]  ;;  %v7075_v35 = vld [vmem:[#allocation12 + $0xe0] sm:$0xff] }
 0x2ea   : > { %1797 = vmatpush1.msra.mxu0 %v6979_v55  ;;  %1868 = vmatpush1.msra.mxu1 %v6981_v45  ;;  %9226 = vst [vmem:[#allocation54_spill] sm:$0xff] %v7071_v33  ;;  %9227 = vst [vmem:[#allocation55_spill] sm:$0xff] %v7075_v35  ;;  %v7077_v37 = vld [vmem:[#allocation12 + $0xf0] sm:$0xff]  ;;  %v7081_v39 = vld [vmem:[#allocation12 + $0xc8] sm:$0xff] }
 0x2eb   : > { %1798 = vmatprep.subr.mxu0 %v6985_v56  ;;  %1869 = vmatprep.subr.mxu1 %v6987_v57  ;;  %9228 = vst [vmem:[#allocation56_spill] sm:$0xff] %v7077_v37  ;;  %9229 = vst [vmem:[#allocation57_spill] sm:$0xff] %v7081_v39  ;;  %v7083_v41 = vld [vmem:[#allocation12 + $0xd8] sm:$0xff]  ;;  %v7087_v43 = vld [vmem:[#allocation12 + $0xc0] sm:$0xff] }
 0x2ec   : > { %1799 = vmatpush1.msra.mxu0 %v6991_v58  ;;  %1870 = vmatpush1.msra.mxu1 %v6993_v59  ;;  %9230 = vst [vmem:[#allocation58_spill] sm:$0xff] %v7083_v41  ;;  %9231 = vst [vmem:[#allocation59_spill] sm:$0xff] %v7087_v43  ;;  %v7089_v53 = vld [vmem:[#allocation12 + $0xd0] sm:$0xff] }
 0x2ed   : > { %1800 = vmatprep.subr.mxu0 %v6997_v60  ;;  %1871 = vmatprep.subr.mxu1 %v6999_v61  ;;  %9232 = vst [vmem:[#allocation60_spill] sm:$0xff] %v7089_v53 }
 0x2ee   : > { %1801 = vmatpush1.msra.mxu0 %v7003_v62  ;;  %1872 = vmatpush1.msra.mxu1 %v7005_v63 }
 0x2ef   : > { %1802 = vmatprep.subr.mxu0 %v7009_v0  ;;  %1873 = vmatprep.subr.mxu1 %v7011_v1 }
 0x2f0   : > { %1803 = vmatpush1.msra.mxu0 %v7015_v2  ;;  %1874 = vmatpush1.msra.mxu1 %v7017_v3 }
 0x2f1   : > { %1804 = vmatprep.subr.mxu0 %v7021_v4  ;;  %1875 = vmatprep.subr.mxu1 %v7023_v5 }
 0x2f2   : > { %1805 = vmatpush1.msra.mxu0 %v7027_v6  ;;  %1876 = vmatpush1.msra.mxu1 %v7029_v7 }
 0x2f3   : > { %1806 = vmatprep.subr.mxu0 %v7033_v8  ;;  %1877 = vmatprep.subr.mxu1 %v7035_v9 }
 0x2f4   : > { %1807 = vmatpush1.msra.mxu0 %v7039_v11  ;;  %1878 = vmatpush1.msra.mxu1 %v7041_v13 }
 0x2f5   : > { %1808 = vmatprep.subr.mxu0 %v7045_v15  ;;  %1879 = vmatprep.subr.mxu1 %v7047_v17 }
 0x2f6   : > { %1809 = vmatpush1.msra.mxu0 %v7051_v18  ;;  %1880 = vmatpush1.msra.mxu1 %v7053_v21 }
 0x2f7   : > { %1810 = vmatprep.subr.mxu0 %v7057_v23  ;;  %1881 = vmatprep.subr.mxu1 %v7059_v25  ;;  %v7093_v25 = vld [vmem:[#allocation12 + $0xa8] sm:$0xff]  ;;  %v7199_v23 = vld [vmem:[#allocation15 + $0x1a0] sm:$0xff] }
 0x2f8   : > { %1811 = vmatpush1.msra.mxu0 %v7063_v27  ;;  %1882 = vmatpush1.msra.mxu1 %v7065_v29  ;;  %9233 = vst [vmem:[#allocation61_spill] sm:$0xff] %v7093_v25  ;;  %v7095_v27 = vld [vmem:[#allocation12 + $0xb8] sm:$0xff]  ;;  %v7099_v29 = vld [vmem:[#allocation12 + $0xa0] sm:$0xff]  ;;  %9268 = vst [vmem:[#allocation95_spill] sm:$0xff] %v7199_v23 }
 0x2f9   : > { %1812 = vmatprep.subr.mxu0 %v7069_v31  ;;  %1883 = vmatprep.subr.mxu1 %v7071_v33  ;;  %9234 = vst [vmem:[#allocation62_spill] sm:$0xff] %v7095_v27  ;;  %9235 = vst [vmem:[#allocation63_spill] sm:$0xff] %v7099_v29  ;;  %v7101_v31 = vld [vmem:[#allocation12 + $0xb0] sm:$0xff]  ;;  %v7105_v33 = vld [vmem:[#allocation12 + $0x88] sm:$0xff] }
 0x2fa   : > { %1813 = vmatpush1.msra.mxu0 %v7075_v35  ;;  %1884 = vmatpush1.msra.mxu1 %v7077_v37  ;;  %9236 = vst [vmem:[#allocation64_spill] sm:$0xff] %v7101_v31  ;;  %9237 = vst [vmem:[#allocation65_spill] sm:$0xff] %v7105_v33  ;;  %v7107_v35 = vld [vmem:[#allocation12 + $0x98] sm:$0xff]  ;;  %v7111_v37 = vld [vmem:[#allocation12 + $0x80] sm:$0xff] }
 0x2fb   : > { %1814 = vmatprep.subr.mxu0 %v7081_v39  ;;  %1885 = vmatprep.subr.mxu1 %v7083_v41  ;;  %9238 = vst [vmem:[#allocation66_spill] sm:$0xff] %v7107_v35  ;;  %9239 = vst [vmem:[#allocation67_spill] sm:$0xff] %v7111_v37  ;;  %v7113_v39 = vld [vmem:[#allocation12 + $0x90] sm:$0xff]  ;;  %v7117_v41 = vld [vmem:[#allocation12 + $0x68] sm:$0xff] }
 0x2fc   : > { %1815 = vmatpush1.msra.mxu0 %v7087_v43  ;;  %1886 = vmatpush1.msra.mxu1 %v7089_v53  ;;  %9240 = vst [vmem:[#allocation68_spill] sm:$0xff] %v7113_v39  ;;  %9241 = vst [vmem:[#allocation69_spill] sm:$0xff] %v7117_v41  ;;  %v7119_v43 = vld [vmem:[#allocation12 + $0x78] sm:$0xff]  ;;  %v7123_v53 = vld [vmem:[#allocation12 + $0x60] sm:$0xff] }
 0x2fd   : > { %1816 = vmatprep.subr.mxu0 %v7093_v25  ;;  %1887 = vmatprep.subr.mxu1 %v7095_v27  ;;  %9242 = vst [vmem:[#allocation70_spill] sm:$0xff] %v7119_v43  ;;  %9243 = vst [vmem:[#allocation71_spill] sm:$0xff] %v7123_v53  ;;  %v7125_v25 = vld [vmem:[#allocation12 + $0x70] sm:$0xff]  ;;  %v7129_v27 = vld [vmem:[#allocation12 + $0x48] sm:$0xff] }
 0x2fe   : > { %1817 = vmatpush1.msra.mxu0 %v7099_v29  ;;  %1888 = vmatpush1.msra.mxu1 %v7101_v31  ;;  %9244 = vst [vmem:[#allocation72_spill] sm:$0xff] %v7125_v25  ;;  %9245 = vst [vmem:[#allocation73_spill] sm:$0xff] %v7129_v27  ;;  %v7131_v29 = vld [vmem:[#allocation12 + $0x58] sm:$0xff]  ;;  %v7135_v31 = vld [vmem:[#allocation12 + $0x40] sm:$0xff] }
 0x2ff   : > { %1818 = vmatprep.subr.mxu0 %v7105_v33  ;;  %1889 = vmatprep.subr.mxu1 %v7107_v35  ;;  %9246 = vst [vmem:[#allocation74_spill] sm:$0xff] %v7131_v29  ;;  %9247 = vst [vmem:[#allocation75_spill] sm:$0xff] %v7135_v31  ;;  %v7137_v33 = vld [vmem:[#allocation12 + $0x50] sm:$0xff]  ;;  %v7141_v35 = vld [vmem:[#allocation12 + $0x28] sm:$0xff] }
 0x300   : > { %1819 = vmatpush1.msra.mxu0 %v7111_v37  ;;  %1890 = vmatpush1.msra.mxu1 %v7113_v39  ;;  %9248 = vst [vmem:[#allocation76_spill] sm:$0xff] %v7137_v33  ;;  %9249 = vst [vmem:[#allocation77_spill] sm:$0xff] %v7141_v35  ;;  %v7143_v37 = vld [vmem:[#allocation12 + $0x38] sm:$0xff]  ;;  %v7147_v39 = vld [vmem:[#allocation12 + $0x20] sm:$0xff] }
 0x301   : > { %1820 = vmatprep.subr.mxu0 %v7117_v41  ;;  %1891 = vmatprep.subr.mxu1 %v7119_v43  ;;  %9250 = vst [vmem:[#allocation78_spill] sm:$0xff] %v7143_v37  ;;  %9251 = vst [vmem:[#allocation79_spill] sm:$0xff] %v7147_v39  ;;  %v7149_v41 = vld [vmem:[#allocation12 + $0x30] sm:$0xff]  ;;  %v7153_v43 = vld [vmem:[#allocation12 + $0x8] sm:$0xff] }
 0x302   : > { %1821 = vmatpush1.msra.mxu0 %v7123_v53  ;;  %1892 = vmatpush1.msra.mxu1 %v7125_v25  ;;  %9252 = vst [vmem:[#allocation80_spill] sm:$0xff] %v7149_v41  ;;  %9253 = vst [vmem:[#allocation81_spill] sm:$0xff] %v7153_v43  ;;  %v7155_v53 = vld [vmem:[#allocation12 + $0x18] sm:$0xff]  ;;  %v7159_v25 = vld [vmem:[#allocation12] sm:$0xff] }
 0x303   : > { %1822 = vmatprep.subr.mxu0 %v7129_v27  ;;  %1893 = vmatprep.subr.mxu1 %v7131_v29  ;;  %9254 = vst [vmem:[#allocation82_spill] sm:$0xff] %v7155_v53  ;;  %9255 = vst [vmem:[#allocation83_spill] sm:$0xff] %v7159_v25  ;;  %v7163_v29 = vld [vmem:[#allocation12 + $0x10] sm:$0xff]  ;;  %v7195_v27 = vld [vmem:[#allocation15 + $0x1b8] sm:$0xff] }
 0x304   : > { %1823 = vmatpush1.msra.mxu0 %v7135_v31  ;;  %1894 = vmatpush1.msra.mxu1 %v7137_v33  ;;  %9256 = vst [vmem:[#allocation84_spill] sm:$0xff] %v7163_v29  ;;  %v9257_v33 = vmov 0.0   ;;  %v7169_v31 = vld [vmem:[#allocation15 + $0x1e8] sm:$0xff]  ;;  %9267 = vst [vmem:[#allocation94_spill] sm:$0xff] %v7195_v27 }
 0x305   : > { %1824 = vmatprep.subr.mxu0 %v7141_v35  ;;  %1895 = vmatprep.subr.mxu1 %v7143_v37  ;;  %9258 = vst [vmem:[#allocation85_spill] sm:$0xff] %v7169_v31  ;;  %v7171_v35 = vld [vmem:[#allocation15 + $0x1f8] sm:$0xff]  ;;  %v7193_v37 = vld [vmem:[#allocation15 + $0x1a8] sm:$0xff] }
 0x306   : > { %1825 = vmatpush1.msra.mxu0 %v7147_v39  ;;  %1896 = vmatpush1.msra.mxu1 %v7149_v41  ;;  %9259 = vst [vmem:[#allocation86_spill] sm:$0xff] %v7171_v35  ;;  %v7175_v39 = vld [vmem:[#allocation15 + $0x1e0] sm:$0xff]  ;;  %v7177_v41 = vld [vmem:[#allocation15 + $0x1f0] sm:$0xff]  ;;  %9266 = vst [vmem:[#allocation93_spill] sm:$0xff] %v7193_v37 }
 0x307   : > { %1826 = vmatprep.subr.mxu0 %v7153_v43  ;;  %1897 = vmatprep.subr.mxu1 %v7155_v53  ;;  %9260 = vst [vmem:[#allocation87_spill] sm:$0xff] %v7175_v39  ;;  %9261 = vst [vmem:[#allocation88_spill] sm:$0xff] %v7177_v41  ;;  %v7181_v53 = vld [vmem:[#allocation15 + $0x1c8] sm:$0xff]  ;;  %v7187_v43 = vld [vmem:[#allocation15 + $0x1c0] sm:$0xff] }
 0x308   : > { %1827 = vmatpush1.msra.mxu0 %v7159_v25  ;;  %1860 = vmatprep.mubr.f32.mxu0 %v9257_v33  ;;  %9262 = vst [vmem:[#allocation89_spill] sm:$0xff] %v7181_v53  ;;  %v7183_v25 = vld [vmem:[#allocation15 + $0x1d8] sm:$0xff]  ;;  %9264 = vst [vmem:[#allocation91_spill] sm:$0xff] %v7187_v43 }
 0x309   : > { %1898 = vmatpush1.msra.mxu1 %v7163_v29  ;;  %1931 = vmatprep.mubr.f32.mxu1 %v9257_v33  ;;  %9263 = vst [vmem:[#allocation90_spill] sm:$0xff] %v7183_v25  ;;  %v7189_v29 = vld [vmem:[#allocation15 + $0x1d0] sm:$0xff] }
 0x30a   : > { %1861 = vmatmul.mubr.f32.vlgmr.msra.gmra.mxu0 %v9257_v33  ;;  %1932 = vmatmul.mubr.f32.vlgmr.msra.gmra.mxu1 %v9257_v33  ;;  %9265 = vst [vmem:[#allocation92_spill] sm:$0xff] %v7189_v29 }
 0x30b   : > { %1938 = vmatprep.subr.mxu0 %v7169_v31  ;;  %2009 = vmatprep.subr.mxu1 %v7171_v35  ;;  %v7201_v31 = vld [vmem:[#allocation15 + $0x1b0] sm:$0xff]  ;;  %v7205_v35 = vld [vmem:[#allocation15 + $0x188] sm:$0xff] }
 0x30c   : > { %1939 = vmatpush1.msra.mxu0 %v7175_v39  ;;  %2010 = vmatpush1.msra.mxu1 %v7177_v41  ;;  %9269 = vst [vmem:[#allocation96_spill] sm:$0xff] %v7201_v31  ;;  %9270 = vst [vmem:[#allocation97_spill] sm:$0xff] %v7205_v35  ;;  %v7207_v39 = vld [vmem:[#allocation15 + $0x198] sm:$0xff]  ;;  %v7211_v41 = vld [vmem:[#allocation15 + $0x180] sm:$0xff] }
 0x30d   : > { %1940 = vmatprep.subr.mxu0 %v7181_v53  ;;  %2011 = vmatprep.subr.mxu1 %v7183_v25  ;;  %9271 = vst [vmem:[#allocation98_spill] sm:$0xff] %v7207_v39  ;;  %9272 = vst [vmem:[#allocation99_spill] sm:$0xff] %v7211_v41  ;;  %v7213_v53 = vld [vmem:[#allocation15 + $0x190] sm:$0xff]  ;;  %v7217_v25 = vld [vmem:[#allocation15 + $0x168] sm:$0xff] }
 0x30e   : > { %1941 = vmatpush1.msra.mxu0 %v7187_v43  ;;  %2012 = vmatpush1.msra.mxu1 %v7189_v29  ;;  %9273 = vst [vmem:[#allocation100_spill] sm:$0xff] %v7213_v53  ;;  %9274 = vst [vmem:[#allocation101_spill] sm:$0xff] %v7217_v25  ;;  %v7219_v43 = vld [vmem:[#allocation15 + $0x178] sm:$0xff]  ;;  %v7223_v29 = vld [vmem:[#allocation15 + $0x160] sm:$0xff] }
 0x30f   : > { %1942 = vmatprep.subr.mxu0 %v7193_v37  ;;  %2013 = vmatprep.subr.mxu1 %v7195_v27  ;;  %9275 = vst [vmem:[#allocation102_spill] sm:$0xff] %v7219_v43  ;;  %9276 = vst [vmem:[#allocation103_spill] sm:$0xff] %v7223_v29  ;;  %v7225_v37 = vld [vmem:[#allocation15 + $0x170] sm:$0xff]  ;;  %v7229_v27 = vld [vmem:[#allocation15 + $0x148] sm:$0xff] }
 0x310   : > { %1943 = vmatpush1.msra.mxu0 %v7199_v23  ;;  %2014 = vmatpush1.msra.mxu1 %v7201_v31  ;;  %9277 = vst [vmem:[#allocation104_spill] sm:$0xff] %v7225_v37  ;;  %9278 = vst [vmem:[#allocation105_spill] sm:$0xff] %v7229_v27  ;;  %v7231_v23 = vld [vmem:[#allocation15 + $0x158] sm:$0xff]  ;;  %v7235_v31 = vld [vmem:[#allocation15 + $0x140] sm:$0xff] }
 0x311   : > { %1944 = vmatprep.subr.mxu0 %v7205_v35  ;;  %2015 = vmatprep.subr.mxu1 %v7207_v39  ;;  %9279 = vst [vmem:[#allocation106_spill] sm:$0xff] %v7231_v23  ;;  %9280 = vst [vmem:[#allocation107_spill] sm:$0xff] %v7235_v31  ;;  %v7237_v35 = vld [vmem:[#allocation15 + $0x150] sm:$0xff]  ;;  %v7241_v39 = vld [vmem:[#allocation15 + $0x128] sm:$0xff] }
 0x312   : > { %1945 = vmatpush1.msra.mxu0 %v7211_v41  ;;  %2016 = vmatpush1.msra.mxu1 %v7213_v53  ;;  %9281 = vst [vmem:[#allocation108_spill] sm:$0xff] %v7237_v35  ;;  %9282 = vst [vmem:[#allocation109_spill] sm:$0xff] %v7241_v39  ;;  %v7243_v41 = vld [vmem:[#allocation15 + $0x138] sm:$0xff]  ;;  %v7247_v53 = vld [vmem:[#allocation15 + $0x120] sm:$0xff] }
 0x313   : > { %1946 = vmatprep.subr.mxu0 %v7217_v25  ;;  %2017 = vmatprep.subr.mxu1 %v7219_v43  ;;  %9283 = vst [vmem:[#allocation110_spill] sm:$0xff] %v7243_v41  ;;  %9284 = vst [vmem:[#allocation111_spill] sm:$0xff] %v7247_v53  ;;  %v7249_v25 = vld [vmem:[#allocation15 + $0x130] sm:$0xff]  ;;  %v7253_v43 = vld [vmem:[#allocation15 + $0x108] sm:$0xff] }
 0x314   : > { %1947 = vmatpush1.msra.mxu0 %v7223_v29  ;;  %2018 = vmatpush1.msra.mxu1 %v7225_v37  ;;  %9285 = vst [vmem:[#allocation112_spill] sm:$0xff] %v7249_v25  ;;  %9286 = vst [vmem:[#allocation113_spill] sm:$0xff] %v7253_v43  ;;  %v7255_v29 = vld [vmem:[#allocation15 + $0x118] sm:$0xff]  ;;  %v7259_v37 = vld [vmem:[#allocation15 + $0x100] sm:$0xff] }
 0x315   : > { %1948 = vmatprep.subr.mxu0 %v7229_v27  ;;  %2019 = vmatprep.subr.mxu1 %v7231_v23  ;;  %9287 = vst [vmem:[#allocation114_spill] sm:$0xff] %v7255_v29  ;;  %9288 = vst [vmem:[#allocation115_spill] sm:$0xff] %v7259_v37  ;;  %v7261_v27 = vld [vmem:[#allocation15 + $0x110] sm:$0xff]  ;;  %v7265_v23 = vld [vmem:[#allocation15 + $0xe8] sm:$0xff] }
 0x316   : > { %1949 = vmatpush1.msra.mxu0 %v7235_v31  ;;  %2020 = vmatpush1.msra.mxu1 %v7237_v35  ;;  %9289 = vst [vmem:[#allocation116_spill] sm:$0xff] %v7261_v27  ;;  %9290 = vst [vmem:[#allocation117_spill] sm:$0xff] %v7265_v23  ;;  %v7267_v31 = vld [vmem:[#allocation15 + $0xf8] sm:$0xff]  ;;  %v7271_v35 = vld [vmem:[#allocation15 + $0xe0] sm:$0xff] }
 0x317   : > { %1950 = vmatprep.subr.mxu0 %v7241_v39  ;;  %2021 = vmatprep.subr.mxu1 %v7243_v41  ;;  %9291 = vst [vmem:[#allocation118_spill] sm:$0xff] %v7267_v31  ;;  %9292 = vst [vmem:[#allocation119_spill] sm:$0xff] %v7271_v35  ;;  %v7273_v39 = vld [vmem:[#allocation15 + $0xf0] sm:$0xff]  ;;  %v7277_v41 = vld [vmem:[#allocation15 + $0xc8] sm:$0xff] }
 0x318   : > { %1951 = vmatpush1.msra.mxu0 %v7247_v53  ;;  %2022 = vmatpush1.msra.mxu1 %v7249_v25  ;;  %9293 = vst [vmem:[#allocation120_spill] sm:$0xff] %v7273_v39  ;;  %9294 = vst [vmem:[#allocation121_spill] sm:$0xff] %v7277_v41  ;;  %v7279_v53 = vld [vmem:[#allocation15 + $0xd8] sm:$0xff]  ;;  %v7283_v25 = vld [vmem:[#allocation15 + $0xc0] sm:$0xff] }
 0x319   : > { %1952 = vmatprep.subr.mxu0 %v7253_v43  ;;  %2023 = vmatprep.subr.mxu1 %v7255_v29  ;;  %9295 = vst [vmem:[#allocation122_spill] sm:$0xff] %v7279_v53  ;;  %9296 = vst [vmem:[#allocation123_spill] sm:$0xff] %v7283_v25  ;;  %v7285_v43 = vld [vmem:[#allocation15 + $0xd0] sm:$0xff]  ;;  %v7289_v29 = vld [vmem:[#allocation15 + $0xa8] sm:$0xff] }
 0x31a   : > { %1953 = vmatpush1.msra.mxu0 %v7259_v37  ;;  %2024 = vmatpush1.msra.mxu1 %v7261_v27  ;;  %9297 = vst [vmem:[#allocation124_spill] sm:$0xff] %v7285_v43  ;;  %9298 = vst [vmem:[#allocation125_spill] sm:$0xff] %v7289_v29  ;;  %v7291_v37 = vld [vmem:[#allocation15 + $0xb8] sm:$0xff]  ;;  %v7295_v27 = vld [vmem:[#allocation15 + $0xa0] sm:$0xff] }
 0x31b   : > { %1954 = vmatprep.subr.mxu0 %v7265_v23  ;;  %2025 = vmatprep.subr.mxu1 %v7267_v31  ;;  %9299 = vst [vmem:[#allocation126_spill] sm:$0xff] %v7291_v37  ;;  %9300 = vst [vmem:[#allocation127_spill] sm:$0xff] %v7295_v27  ;;  %v7297_v23 = vld [vmem:[#allocation15 + $0xb0] sm:$0xff]  ;;  %v7301_v31 = vld [vmem:[#allocation15 + $0x88] sm:$0xff] }
 0x31c   : > { %1955 = vmatpush1.msra.mxu0 %v7271_v35  ;;  %2026 = vmatpush1.msra.mxu1 %v7273_v39  ;;  %9301 = vst [vmem:[#allocation128_spill] sm:$0xff] %v7297_v23  ;;  %9302 = vst [vmem:[#allocation129_spill] sm:$0xff] %v7301_v31  ;;  %v7303_v35 = vld [vmem:[#allocation15 + $0x98] sm:$0xff]  ;;  %v7307_v39 = vld [vmem:[#allocation15 + $0x80] sm:$0xff] }
 0x31d   : > { %1956 = vmatprep.subr.mxu0 %v7277_v41  ;;  %2027 = vmatprep.subr.mxu1 %v7279_v53  ;;  %9303 = vst [vmem:[#allocation130_spill] sm:$0xff] %v7303_v35  ;;  %9304 = vst [vmem:[#allocation131_spill] sm:$0xff] %v7307_v39  ;;  %v7309_v41 = vld [vmem:[#allocation15 + $0x90] sm:$0xff]  ;;  %v7313_v53 = vld [vmem:[#allocation15 + $0x68] sm:$0xff] }
 0x31e   : > { %1957 = vmatpush1.msra.mxu0 %v7283_v25  ;;  %2028 = vmatpush1.msra.mxu1 %v7285_v43  ;;  %9305 = vst [vmem:[#allocation132_spill] sm:$0xff] %v7309_v41  ;;  %9306 = vst [vmem:[#allocation133_spill] sm:$0xff] %v7313_v53  ;;  %v7315_v25 = vld [vmem:[#allocation15 + $0x78] sm:$0xff]  ;;  %v7319_v43 = vld [vmem:[#allocation15 + $0x60] sm:$0xff] }
 0x31f   : > { %1958 = vmatprep.subr.mxu0 %v7289_v29  ;;  %2029 = vmatprep.subr.mxu1 %v7291_v37  ;;  %9307 = vst [vmem:[#allocation134_spill] sm:$0xff] %v7315_v25  ;;  %9308 = vst [vmem:[#allocation135_spill] sm:$0xff] %v7319_v43  ;;  %v7321_v29 = vld [vmem:[#allocation15 + $0x70] sm:$0xff]  ;;  %v7325_v37 = vld [vmem:[#allocation15 + $0x48] sm:$0xff] }
 0x320   : > { %1959 = vmatpush1.msra.mxu0 %v7295_v27  ;;  %2030 = vmatpush1.msra.mxu1 %v7297_v23  ;;  %9309 = vst [vmem:[#allocation136_spill] sm:$0xff] %v7321_v29  ;;  %9310 = vst [vmem:[#allocation137_spill] sm:$0xff] %v7325_v37  ;;  %v7327_v27 = vld [vmem:[#allocation15 + $0x58] sm:$0xff]  ;;  %v7331_v23 = vld [vmem:[#allocation15 + $0x40] sm:$0xff] }
 0x321   : > { %1960 = vmatprep.subr.mxu0 %v7301_v31  ;;  %2031 = vmatprep.subr.mxu1 %v7303_v35  ;;  %9311 = vst [vmem:[#allocation138_spill] sm:$0xff] %v7327_v27  ;;  %9312 = vst [vmem:[#allocation139_spill] sm:$0xff] %v7331_v23  ;;  %v7333_v31 = vld [vmem:[#allocation15 + $0x50] sm:$0xff]  ;;  %v7337_v35 = vld [vmem:[#allocation15 + $0x28] sm:$0xff] }
 0x322   : > { %1961 = vmatpush1.msra.mxu0 %v7307_v39  ;;  %2032 = vmatpush1.msra.mxu1 %v7309_v41  ;;  %9313 = vst [vmem:[#allocation140_spill] sm:$0xff] %v7333_v31  ;;  %9314 = vst [vmem:[#allocation141_spill] sm:$0xff] %v7337_v35  ;;  %v7339_v39 = vld [vmem:[#allocation15 + $0x38] sm:$0xff]  ;;  %v7343_v41 = vld [vmem:[#allocation15 + $0x20] sm:$0xff] }
 0x323   : > { %1962 = vmatprep.subr.mxu0 %v7313_v53  ;;  %2033 = vmatprep.subr.mxu1 %v7315_v25  ;;  %9315 = vst [vmem:[#allocation142_spill] sm:$0xff] %v7339_v39  ;;  %9316 = vst [vmem:[#allocation143_spill] sm:$0xff] %v7343_v41  ;;  %v7345_v53 = vld [vmem:[#allocation15 + $0x30] sm:$0xff]  ;;  %v7349_v25 = vld [vmem:[#allocation15 + $0x8] sm:$0xff] }
 0x324   : > { %1963 = vmatpush1.msra.mxu0 %v7319_v43  ;;  %2034 = vmatpush1.msra.mxu1 %v7321_v29  ;;  %9317 = vst [vmem:[#allocation144_spill] sm:$0xff] %v7345_v53  ;;  %9318 = vst [vmem:[#allocation145_spill] sm:$0xff] %v7349_v25  ;;  %v7351_v43 = vld [vmem:[#allocation15 + $0x18] sm:$0xff]  ;;  %v7355_v29 = vld [vmem:[#allocation15] sm:$0xff] }
 0x325   : > { %1964 = vmatprep.subr.mxu0 %v7325_v37  ;;  %2035 = vmatprep.subr.mxu1 %v7327_v27  ;;  %9319 = vst [vmem:[#allocation146_spill] sm:$0xff] %v7351_v43  ;;  %9320 = vst [vmem:[#allocation147_spill] sm:$0xff] %v7355_v29  ;;  %v7359_v27 = vld [vmem:[#allocation15 + $0x10] sm:$0xff] }
 0x326   : > { %1965 = vmatpush1.msra.mxu0 %v7331_v23  ;;  %2036 = vmatpush1.msra.mxu1 %v7333_v31  ;;  %9321 = vst [vmem:[#allocation148_spill] sm:$0xff] %v7359_v27 }
 0x327   : > { %1966 = vmatprep.subr.mxu0 %v7337_v35  ;;  %2037 = vmatprep.subr.mxu1 %v7339_v39 }
 0x328   : > { %1967 = vmatpush1.msra.mxu0 %v7343_v41  ;;  %2038 = vmatpush1.msra.mxu1 %v7345_v53  ;;  %v7371_v53 = vld [vmem:[#allocation2 + $0x78] sm:$0xff] }
 0x329   : > { %1968 = vmatprep.subr.mxu0 %v7349_v25  ;;  %2039 = vmatprep.subr.mxu1 %v7351_v43  ;;  %9322 = vst [vmem:[#allocation149_spill] sm:$0xff] %v7371_v53  ;;  %v2085_v43 = vlaneseq }
 0x32a   : > { %1969 = vmatpush1.msra.mxu0 %v7355_v29  ;;  %2002 = vmatprep.mubr.f32.mxu0 %v9257_v33  ;;  %v7383_v29 = vld [vmem:[#allocation2 + $0x68] sm:$0xff] }
 0x32b   : > { %2040 = vmatpush1.msra.mxu1 %v7359_v27  ;;  %2073 = vmatprep.mubr.f32.mxu1 %v9257_v33  ;;  %v7377_v27 = vld [vmem:[#allocation2 + $0x70] sm:$0xff]  ;;  %9324 = vst [vmem:[#allocation151_spill] sm:$0xff] %v7383_v29  ;;  %v2086_v41 = vshrl.u32 %v2085_v43, 7 }
 0x32c   : > { %2003 = vmatmul.mubr.f32.vlgmr.msra.gmra.mxu0 %v9257_v33  ;;  %2074 = vmatmul.mubr.f32.vlgmr.msra.gmra.mxu1 %v9257_v33  ;;  %9323 = vst [vmem:[#allocation150_spill] sm:$0xff] %v7377_v27 }
 0x32d   : > { %5083 = vmatprep.subr.mxu0 %v9257_v33  ;;  %5118 = vmatprep.subr.mxu1 %v9257_v33  ;;  %v2087_v23 = vsub.s32 0, %v2086_v41  ;;  %v2099_v4 = vsub.s32 3, %v2086_v41 }
 0x32e   : > { %5084 = vmatpush3.xpose.msra.mxu0 %v7371_v53  ;;  %5119 = vmatpush3.msra.mxu1 %v7371_v53  ;;  %v7389_v53 = vld [vmem:[#allocation2 + $0x60] sm:$0xff] }
 0x32f   : > { %5085 = vmatprep.subr.mxu0 %v9257_v33  ;;  %5120 = vmatprep.subr.mxu1 %v9257_v33  ;;  %9325 = vst [vmem:[#allocation152_spill] sm:$0xff] %v7389_v53 }
 0x330   : > { %5121 = vmatpush3.msra.mxu1 %v7377_v27  ;;  %5115 = vmatprep.mubr.msk.f32.mxu0 %vm6416_vm0, %v9257_v33 }
 0x331   : > { %5122 = vmatprep.subr.mxu1 %v9257_v33  ;;  %5150 = vmatprep.mubr.msk.f32.mxu1 %vm6416_vm0, %v9257_v33 }
 0x332   : > { %5086 = vmatpush3.xpose.msra.mxu0 %v7377_v27  ;;  %5123 = vmatpush3.msra.mxu1 %v7383_v29  ;;  %v7395_v27 = vld [vmem:[#allocation2 + $0x58] sm:$0xff] }
 0x333   : > { %5087 = vmatprep.subr.mxu0 %v9257_v33  ;;  %5124 = vmatprep.subr.mxu1 %v9257_v33  ;;  %9326 = vst [vmem:[#allocation153_spill] sm:$0xff] %v7395_v27 }
 0x334   : > { %5125 = vmatpush3.msra.mxu1 %v7389_v53 }
 0x335   : > { %5126 = vmatprep.subr.mxu1 %v9257_v33 }
 0x336   : > { %5088 = vmatpush3.xpose.msra.mxu0 %v7383_v29  ;;  %5127 = vmatpush3.msra.mxu1 %v7395_v27  ;;  %v7401_v29 = vld [vmem:[#allocation2 + $0x50] sm:$0xff] }
 0x337   : > { %5089 = vmatprep.subr.mxu0 %v9257_v33  ;;  %5128 = vmatprep.subr.mxu1 %v9257_v33  ;;  %9327 = vst [vmem:[#allocation154_spill] sm:$0xff] %v7401_v29 }
 0x338   : > { %5129 = vmatpush3.msra.mxu1 %v7401_v29 }
 0x339   : > { %5130 = vmatprep.subr.mxu1 %v9257_v33 }
 0x33a   : > { %5090 = vmatpush3.xpose.msra.mxu0 %v7389_v53  ;;  %v7407_v53 = vld [vmem:[#allocation2 + $0x48] sm:$0xff] }
 0x33b   : > { %5091 = vmatprep.subr.mxu0 %v9257_v33  ;;  %9328 = vst [vmem:[#allocation155_spill] sm:$0xff] %v7407_v53  ;;  %5131 = vmatpush3.msra.mxu1 %v7407_v53 }
 0x33c   : > { %5132 = vmatprep.subr.mxu1 %v9257_v33 }
 0x33e   : > { %5092 = vmatpush3.xpose.msra.mxu0 %v7395_v27  ;;  %v7413_v27 = vld [vmem:[#allocation2 + $0x40] sm:$0xff] }
 0x33f   : > { %5093 = vmatprep.subr.mxu0 %v9257_v33  ;;  %9329 = vst [vmem:[#allocation156_spill] sm:$0xff] %v7413_v27  ;;  %5133 = vmatpush3.msra.mxu1 %v7413_v27 }
 0x340   : > { %5134 = vmatprep.subr.mxu1 %v9257_v33 }
 0x342   : > { %5094 = vmatpush3.xpose.msra.mxu0 %v7401_v29  ;;  %v7419_v29 = vld [vmem:[#allocation2 + $0x38] sm:$0xff] }
 0x343   : > { %5095 = vmatprep.subr.mxu0 %v9257_v33  ;;  %9330 = vst [vmem:[#allocation157_spill] sm:$0xff] %v7419_v29  ;;  %5135 = vmatpush3.msra.mxu1 %v7419_v29 }
 0x344   : > { %5136 = vmatprep.subr.mxu1 %v9257_v33 }
 0x346   : > { %5096 = vmatpush3.xpose.msra.mxu0 %v7407_v53  ;;  %v7425_v53 = vld [vmem:[#allocation2 + $0x30] sm:$0xff] }
 0x347   : > { %5097 = vmatprep.subr.mxu0 %v9257_v33  ;;  %9331 = vst [vmem:[#allocation158_spill] sm:$0xff] %v7425_v53  ;;  %5137 = vmatpush3.msra.mxu1 %v7425_v53 }
 0x348   : > { %5138 = vmatprep.subr.mxu1 %v9257_v33 }
 0x34a   : > { %5098 = vmatpush3.xpose.msra.mxu0 %v7413_v27  ;;  %v7431_v27 = vld [vmem:[#allocation2 + $0x28] sm:$0xff] }
 0x34b   : > { %5099 = vmatprep.subr.mxu0 %v9257_v33  ;;  %9332 = vst [vmem:[#allocation159_spill] sm:$0xff] %v7431_v27  ;;  %5139 = vmatpush3.msra.mxu1 %v7431_v27 }
 0x34c   : > { %5140 = vmatprep.subr.mxu1 %v9257_v33 }
 0x34e   : > { %5100 = vmatpush3.xpose.msra.mxu0 %v7419_v29  ;;  %v7437_v29 = vld [vmem:[#allocation2 + $0x20] sm:$0xff] }
 0x34f   : > { %5101 = vmatprep.subr.mxu0 %v9257_v33  ;;  %9333 = vst [vmem:[#allocation160_spill] sm:$0xff] %v7437_v29  ;;  %5141 = vmatpush3.msra.mxu1 %v7437_v29 }
 0x350   : > { %5142 = vmatprep.subr.mxu1 %v9257_v33 }
 0x352   : > { %5102 = vmatpush3.xpose.msra.mxu0 %v7425_v53  ;;  %v7443_v53 = vld [vmem:[#allocation2 + $0x18] sm:$0xff] }
 0x353   : > { %5103 = vmatprep.subr.mxu0 %v9257_v33  ;;  %9334 = vst [vmem:[#allocation161_spill] sm:$0xff] %v7443_v53  ;;  %5143 = vmatpush3.msra.mxu1 %v7443_v53 }
 0x354   : > { %5144 = vmatprep.subr.mxu1 %v9257_v33 }
 0x356   : > { %5104 = vmatpush3.xpose.msra.mxu0 %v7431_v27  ;;  %v7449_v27 = vld [vmem:[#allocation2 + $0x10] sm:$0xff] }
 0x357   : > { %5105 = vmatprep.subr.mxu0 %v9257_v33  ;;  %9335 = vst [vmem:[#allocation162_spill] sm:$0xff] %v7449_v27  ;;  %5145 = vmatpush3.msra.mxu1 %v7449_v27 }
 0x358   : > { %5146 = vmatprep.subr.mxu1 %v9257_v33 }
 0x35a   : > { %5106 = vmatpush3.xpose.msra.mxu0 %v7437_v29  ;;  %v7454_v29 = vld [vmem:[#allocation2 + $0x8] sm:$0xff] }
 0x35b   : > { %5107 = vmatprep.subr.mxu0 %v9257_v33  ;;  %9336 = vst [vmem:[#allocation163_spill] sm:$0xff] %v7454_v29  ;;  %5147 = vmatpush3.msra.mxu1 %v7454_v29 }
 0x35c   : > { %5148 = vmatprep.subr.mxu1 %v9257_v33 }
 0x35e   : > { %5108 = vmatpush3.xpose.msra.mxu0 %v7443_v53  ;;  %v7461_v53 = vld [vmem:[#allocation2] sm:$0xff] }
 0x35f   : > { %5109 = vmatprep.subr.mxu0 %v9257_v33  ;;  %9337 = vst [vmem:[#allocation164_spill] sm:$0xff] %v7461_v53  ;;  %5149 = vmatpush3.msra.mxu1 %v7461_v53 }
 0x360   : > { %2287 = vmatprep.subr.mxu1 %v6901_v50  ;;  %v1653_v50 = vld [vmem:[%s9338_s26] sm:$0xf] }
 0x361   : > { %v7474_v17 = vrot.slane %v1653_v50, %v2087_v23 }
 0x362   : > { %5110 = vmatpush3.xpose.msra.mxu0 %v7449_v27 }
 0x363   : > { %5111 = vmatprep.subr.mxu0 %v9257_v33 }
 0x366   : > { %5112 = vmatpush3.xpose.msra.mxu0 %v7454_v29  ;;  %v2091_v29 = vsub.s32 1, %v2086_v41 }
 0x367   : > { %5113 = vmatprep.subr.mxu0 %v9257_v33 }
 0x368   : > { %v7476_v11 = vrot.slane %v1653_v50, %v2091_v29 }
 0x36a   : > { %5114 = vmatpush3.xpose.msra.mxu0 %v7461_v53 }
 0x36b   : > { %2358 = vmatprep.subr.mxu0 %v6903_v51 }
 0x3a7   : > { %v1720_v27 = vpop.f32.mrf.mxu0 }
 0x3a9   : > { %v1791_v25 = vpop.f32.mrf.mxu1  ;;  %v1722_v39 = vpop.f32.mrf.mxu0 }
 0x3ab   : > { %v1793_v31 = vpop.f32.mrf.mxu1 }
 0x3ca   : > { %v1862_v35 = vpop.f32.mrf.mxu0  ;;  %v1933_v37 = vpop.f32.mrf.mxu1 }
 0x3cb   : > { %v1863_v18 = vadd.f32 %v1862_v35, %v1720_v27 }
 0x3cc   : > { %v1864_v21 = vpop.f32.mrf.mxu0  ;;  %v1935_v15 = vpop.f32.mrf.mxu1 }
 0x3cd   : > { %v1865_v51 = vadd.f32 %v1864_v21, %v1722_v39  ;;  %v1936_v23 = vadd.f32 %v1935_v15, %v1793_v31  ;;  %v7480_v21 = vrot.slane %v1653_v50, %v2099_v4 }
 0x3ec   : > { %v2004_v53 = vpop.f32.mrf.mxu0  ;;  %v2075_v8 = vpop.f32.mrf.mxu1 }
 0x3ed   : > { %v2080_v13 = vadd.f32 %v2004_v53, %v1863_v18  ;;  %v2095_v53 = vsub.s32 2, %v2086_v41  ;;  %v1934_v18 = vadd.f32 %v1933_v37, %v1791_v25 }
 0x3ee   : > { %v2006_v43 = vpop.f32.mrf.mxu0  ;;  %v2077_v27 = vpop.f32.mrf.mxu1 }
 0x3ef   : > { %v2105_v9 = vadd.f32 %v7474_v17, %v2080_v13  ;;  %v2081_v7 = vadd.f32 %v2006_v43, %v1865_v51  ;;  %v2083_v35 = vadd.f32 %v2077_v27, %v1936_v23  ;;  %v2082_v39 = vadd.f32 %v2075_v8, %v1934_v18  ;;  %v7499_v18 = vld [vmem:[#allocation13 + $0x1d0] sm:$0xff] }
 0x3f0   : > { %v7483_v13 = vrot.slane %v1653_v50, %v2095_v53  ;;  %v7496_v53 = vld [vmem:[#allocation13 + $0x1d8] sm:$0xff] }
 0x3f1   : > { %v4648_v6 = vmul.f32 -1.442695, %v2105_v9  ;;  %v2106_v5 = vadd.f32 %v7476_v11, %v2081_v7  ;;  %v2108_v29 = vadd.f32 %v7480_v21, %v2083_v35  ;;  %v7492_v35 = vld [vmem:[#allocation13 + $0x1f0] sm:$0xff] }
 0x3f2   : > { %v2107_v7 = vadd.f32 %v7483_v13, %v2082_v39  ;;  %v7505_v39 = vld [vmem:[#allocation13 + $0x1b0] sm:$0xff] }
 0x3f3   : > { %5669 = vpow2.f32 %v4648_v6  ;;  %v4649_v3 = vmul.f32 -1.442695, %v2106_v5  ;;  %v4650_v51 = vmul.f32 -1.442695, %v2108_v29  ;;  %v7502_v29 = vld [vmem:[#allocation13 + $0x1b8] sm:$0xff] }
 0x3f5   : > { %5671 = vpow2.f32 %v4649_v3 }
 0x3f6   : > { %5673 = vpow2.f32 %v4650_v51  ;;  %v7508_v51 = vld [vmem:[#allocation13 + $0x198] sm:$0xff] }
 0x400   : > { %v5670_v9 = vpop.eup %5669 }
 0x401   : > { %v2112_v43 = vadd.f32 1.0, %v5670_v9  ;;  %v7511_v9 = vld [vmem:[#allocation13 + $0x190] sm:$0xff] }
 0x402   : > { %v5672_v6 = vpop.eup %5671 }
 0x403   : > { %5675 = vrcp.f32 %v2112_v43  ;;  %v2118_v5 = vadd.f32 1.0, %v5672_v6  ;;  %v5674_v3 = vpop.eup %5673  ;;  %v7517_v43 = vld [vmem:[#allocation13 + $0x170] sm:$0xff]  ;;  %v7520_v6 = vld [vmem:[#allocation13 + $0x158] sm:$0xff] }
 0x404   : > { %5677 = vtanh.f32 %v2107_v7  ;;  %v2125_v31 = vadd.f32 1.0, %v5674_v3  ;;  %v7514_v7 = vld [vmem:[#allocation13 + $0x178] sm:$0xff]  ;;  %v7581_v3 = vld [vmem:[#allocation13 + $0x160] sm:$0xff] }
 0x405   : > { %5679 = vrcp.f32 %v2118_v5  ;;  %v7523_v5 = vld [vmem:[#allocation13 + $0x150] sm:$0xff] }
 0x406   : > { %5681 = vrcp.f32 %v2125_v31  ;;  %v7593_v31 = vld [vmem:[#allocation13 + $0x120] sm:$0xff] }
 0x410   : > { %v5676_v4 = vpop.eup %5675 }
 0x411   : > { %v5678_v15 = vpop.eup %5677 }
 0x412   : > { %v5680_v25 = vpop.eup %5679  ;;  %v2129_v8 = vmul.f32 %v5678_v15, %v5676_v4  ;;  %v7584_v4 = vld [vmem:[#allocation13 + $0x148] sm:$0xff]  ;;  %v7587_v15 = vld [vmem:[#allocation13 + $0x140] sm:$0xff] }
 0x413   : > { %v2128_v37 = vmul.f32 0.0, %v5680_v25  ;;  %v5682_v50 = vpop.eup %5681  ;;  %v7590_v25 = vld [vmem:[#allocation13 + $0x128] sm:$0xff] }
 0x415   : > { %v7486_v41 = vadd.f32 %v2129_v8, %v2128_v37  ;;  %v7596_v37 = vld [vmem:[#allocation13 + $0x108] sm:$0xff]  ;;  %v7599_v8 = vld [vmem:[#allocation13 + $0x100] sm:$0xff] }
 0x417   : > { %5683 = vtanh.f32 %v7486_v41 }
 0x424   : > { %v5684_v27 = vpop.eup %5683 }
 0x425   : > { %v7489_v23 = vmul.f32 %v5684_v27, %v5682_v50  ;;  %v7602_v50 = vld [vmem:[#allocation13 + $0xe8] sm:$0xff]  ;;  %v7605_v27 = vld [vmem:[#allocation13 + $0xe0] sm:$0xff] }
 0x427   : > { %5116 = vmatmul.mubr.f32.vlgmr.msra.gmra.mxu0 %v7489_v23 }
 0x428   : > { %2359 = vmatpush1.msra.mxu0 %v7492_v35  ;;  %2422 = vmatprep.mubr.f32.mxu0 %v9257_v33 }
 0x429   : > { %2360 = vmatprep.subr.mxu0 %v7496_v53 }
 0x42a   : > { %2361 = vmatpush1.msra.mxu0 %v7499_v18 }
 0x42b   : > { %2362 = vmatprep.subr.mxu0 %v7502_v29 }
 0x42c   : > { %2363 = vmatpush1.msra.mxu0 %v7505_v39 }
 0x42d   : > { %2364 = vmatprep.subr.mxu0 %v7508_v51 }
 0x42e   : > { %2365 = vmatpush1.msra.mxu0 %v7511_v9 }
 0x42f   : > { %2366 = vmatprep.subr.mxu0 %v7514_v7 }
 0x430   : > { %2367 = vmatpush1.msra.mxu0 %v7517_v43 }
 0x431   : > { %2368 = vmatprep.subr.mxu0 %v7520_v6 }
 0x432   : > { %2369 = vmatpush1.msra.mxu0 %v7523_v5 }
 0x433   : > { %2370 = vmatprep.subr.mxu0 %v6907_v10  ;;  %v7550_v10 = vld [vmem:[%s9339_s25] sm:$0xff] }
 0x434   : > { %2371 = vmatpush1.msra.mxu0 %v6909_v12  ;;  %vm2203_vm1 = vcmp.gt.f32.partialorder %v7550_v10, 0.0 }
 0x435   : > { %2372 = vmatprep.subr.mxu0 %v6911_v14 }
 0x436   : > { %2373 = vmatpush1.msra.mxu0 %v6914_v16 }
 0x437   : > { %2374 = vmatprep.subr.mxu0 %v6917_v19 }
 0x438   : > { %2375 = vmatpush1.msra.mxu0 %v6920_v20 }
 0x439   : > { %2376 = vmatprep.subr.mxu0 %v6923_v22 }
 0x43a   : > { %2377 = vmatpush1.msra.mxu0 %v6926_v24 }
 0x43b   : > { %2378 = vmatprep.subr.mxu0 %v6929_v26 }
 0x43c   : > { %2379 = vmatpush1.msra.mxu0 %v6932_v28 }
 0x43d   : > { %2380 = vmatprep.subr.mxu0 %v6935_v30 }
 0x43e   : > { %2381 = vmatpush1.msra.mxu0 %v6938_v32 }
 0x43f   : > { %2382 = vmatprep.subr.mxu0 %v6941_v34 }
 0x440   : > { %2383 = vmatpush1.msra.mxu0 %v6944_v36  ;;  %v7556_v36 = vld [vmem:[#allocation13 + $0x1e0] sm:$0xff] }
 0x441   : > { %2384 = vmatprep.subr.mxu0 %v6947_v38  ;;  %v7560_v38 = vld [vmem:[#allocation13 + $0x1c8] sm:$0xff] }
 0x442   : > { %2385 = vmatpush1.msra.mxu0 %v6950_v40  ;;  %v7563_v40 = vld [vmem:[#allocation13 + $0x1c0] sm:$0xff] }
 0x443   : > { %2386 = vmatprep.subr.mxu0 %v6953_v42  ;;  %v7566_v42 = vld [vmem:[#allocation13 + $0x1a8] sm:$0xff] }
 0x444   : > { %2387 = vmatpush1.msra.mxu0 %v6956_v44  ;;  %v7569_v44 = vld [vmem:[#allocation13 + $0x1a0] sm:$0xff] }
 0x445   : > { %2388 = vmatprep.subr.mxu0 %v6961_v47  ;;  %v7572_v47 = vld [vmem:[#allocation13 + $0x188] sm:$0xff] }
 0x446   : > { %2389 = vmatpush1.msra.mxu0 %v6967_v49  ;;  %v7575_v49 = vld [vmem:[#allocation13 + $0x180] sm:$0xff] }
 0x447   : > { %2500 = vmatprep.subr.mxu0 %v6975_v54  ;;  %v7578_v54 = vld [vmem:[#allocation13 + $0x168] sm:$0xff] }
 0x4e7   : > { %v2199_v12 = vpop.f32.mrf.mxu0 }
 0x4e8   : > { %v2204_v14 = vsel %vm2203_vm1, %v2199_v12, -1e+30  ;;  %v7608_v12 = vld [vmem:[#allocation13 + $0xc8] sm:$0xff] }
 0x4e9   : > { %2205 = vmax.xlane.f32.xlu0 %v2204_v14  ;;  %v5117_v16 = vpop.f32.mrf.mxu0 }
 0x4ea   : > { %v7614_v16 = vld [vmem:[#allocation13 + $0xa8] sm:$0xff] }
 0x572   : > { %v2206_v19 = vpop.xlane.xlu0 %2205 }
 0x573   : > { %v2207_v20 = vsub.f32 %v2204_v14, %v2206_v19  ;;  %v7611_v14 = vld [vmem:[#allocation13 + $0xc0] sm:$0xff] }
 0x574   : > { %v7617_v19 = vld [vmem:[#allocation13 + $0xa0] sm:$0xff] }
 0x575   : > { %v2208_v22 = vmul.f32 1.442695, %v2207_v20  ;;  %v7620_v20 = vld [vmem:[#allocation13 + $0x88] sm:$0xff] }
 0x577   : > { %5685 = vpow2.f32 %v2208_v22  ;;  %v7623_v22 = vld [vmem:[#allocation13 + $0x80] sm:$0xff] }
 0x584   : > { %v5686_v24 = vpop.eup %5685 }
 0x585   : > { %v2210_v26 = vmul.f32 %v5686_v24, %v7550_v10  ;;  %v7626_v24 = vld [vmem:[#allocation13 + $0x68] sm:$0xff] }
 0x586   : > { %9340 = vst [vmem:[#allocation165_spill] sm:$0xff] %v7626_v24 }
 0x587   : > { %2211 = vadd.xlane.f32.xlu0 %v2210_v26 }
 0x610   : > { %v2212_v28 = vpop.xlane.xlu0 %2211 }
 0x611   : > { %vm2213_vm2 = vcmp.gt.f32.partialorder %v2212_v28, 0.0 }
 0x612   : > { %v2214_v30 = vsel %vm2213_vm2, %v2212_v28, 1.0  ;;  %v7632_v28 = vld [vmem:[#allocation13 + $0x48] sm:$0xff] }
 0x613   : > { %5687 = vrcp.f32 %v2214_v30  ;;  %9342 = vst [vmem:[#allocation167_spill] sm:$0xff] %v7632_v28  ;;  %v7635_v30 = vld [vmem:[#allocation13 + $0x40] sm:$0xff] }
 0x614   : > { %9343 = vst [vmem:[#allocation168_spill] sm:$0xff] %v7635_v30 }
 0x620   : > { %v5688_v32 = vpop.eup %5687 }
 0x621   : > { %v2216_v34 = vmul.f32 %v5688_v32, %v2210_v26  ;;  %v7629_v26 = vld [vmem:[#allocation13 + $0x60] sm:$0xff]  ;;  %v7638_v32 = vld [vmem:[#allocation13 + $0x28] sm:$0xff] }
 0x622   : > { %9341 = vst [vmem:[#allocation166_spill] sm:$0xff] %v7629_v26  ;;  %9344 = vst [vmem:[#allocation169_spill] sm:$0xff] %v7638_v32 }
 0x623   : > { %5151 = vmatmul.mubr.f32.vlgmr.msra.gmra.mxu1 %v2216_v34  ;;  %v7641_v34 = vld [vmem:[#allocation13 + $0x20] sm:$0xff] }
 0x624   : > { %2288 = vmatpush1.msra.mxu1 %v7556_v36  ;;  %2351 = vmatprep.mubr.f32.mxu1 %v9257_v33  ;;  %9345 = vst [vmem:[#allocation170_spill] sm:$0xff] %v7641_v34 }
 0x625   : > { %2289 = vmatprep.subr.mxu1 %v7560_v38 }
 0x626   : > { %2290 = vmatpush1.msra.mxu1 %v7563_v40 }
 0x627   : > { %2291 = vmatprep.subr.mxu1 %v7566_v42 }
 0x628   : > { %2292 = vmatpush1.msra.mxu1 %v7569_v44 }
 0x629   : > { %2293 = vmatprep.subr.mxu1 %v7572_v47 }
 0x62a   : > { %2294 = vmatpush1.msra.mxu1 %v7575_v49 }
 0x62b   : > { %2295 = vmatprep.subr.mxu1 %v7578_v54 }
 0x62c   : > { %2296 = vmatpush1.msra.mxu1 %v7581_v3 }
 0x62d   : > { %2297 = vmatprep.subr.mxu1 %v7584_v4 }
 0x62e   : > { %2298 = vmatpush1.msra.mxu1 %v7587_v15 }
 0x62f   : > { %2299 = vmatprep.subr.mxu1 %v7590_v25 }
 0x630   : > { %2300 = vmatpush1.msra.mxu1 %v7593_v31 }
 0x631   : > { %2301 = vmatprep.subr.mxu1 %v7596_v37 }
 0x632   : > { %2302 = vmatpush1.msra.mxu1 %v7599_v8 }
 0x633   : > { %2303 = vmatprep.subr.mxu1 %v7602_v50 }
 0x634   : > { %2304 = vmatpush1.msra.mxu1 %v7605_v27 }
 0x635   : > { %2305 = vmatprep.subr.mxu1 %v7608_v12 }
 0x636   : > { %2306 = vmatpush1.msra.mxu1 %v7611_v14 }
 0x637   : > { %2307 = vmatprep.subr.mxu1 %v7614_v16 }
 0x638   : > { %2308 = vmatpush1.msra.mxu1 %v7617_v19 }
 0x639   : > { %2309 = vmatprep.subr.mxu1 %v7620_v20 }
 0x63a   : > { %2310 = vmatpush1.msra.mxu1 %v7623_v22 }
 0x63b   : > { %2311 = vmatprep.subr.mxu1 %v7626_v24 }
 0x63c   : > { %2312 = vmatpush1.msra.mxu1 %v7629_v26 }
 0x63d   : > { %2313 = vmatprep.subr.mxu1 %v7632_v28 }
 0x63e   : > { %2314 = vmatpush1.msra.mxu1 %v7635_v30 }
 0x63f   : > { %2315 = vmatprep.subr.mxu1 %v7638_v32 }
 0x640   : > { %2316 = vmatpush1.msra.mxu1 %v7641_v34 }
 0x641   : > { %2317 = vmatprep.subr.mxu1 %v6959_v46  ;;  %v9346_v46 = vld [vmem:[#allocation36_spill] sm:$0xff] }
 0x642   : > { %2318 = vmatpush1.msra.mxu1 %v6964_v48  ;;  %v9347_v48 = vld [vmem:[#allocation37_spill] sm:$0xff] }
 0x643   : > { %2429 = vmatprep.subr.mxu1 %v6971_v52  ;;  %v9348_v52 = vld [vmem:[#allocation38_spill] sm:$0xff] }
 0x6e3   : > { %v2283_v26 = vpop.f32.mrf.mxu1 }
 0x6e4   : > { %2352 = vmatmul.mubr.f32.vlgmr.msra.gmra.mxu1 %v2283_v26  ;;  %2423 = vmatmul.mubr.f32.vlgmr.msra.gmra.mxu0 %v2283_v26  ;;  %v9362_v26 = vld [vmem:[#allocation52_spill] sm:$0xff] }
 0x6e5   : > { %2430 = vmatpush1.msra.mxu1 %v6979_v55  ;;  %2501 = vmatpush1.msra.mxu0 %v6981_v45  ;;  %v5152_v30 = vpop.f32.mrf.mxu1  ;;  %v9349_v55 = vld [vmem:[#allocation39_spill] sm:$0xff]  ;;  %v9350_v45 = vld [vmem:[#allocation40_spill] sm:$0xff] }
 0x6e6   : > { %2431 = vmatprep.subr.mxu1 %v6985_v56  ;;  %2502 = vmatprep.subr.mxu0 %v6987_v57  ;;  %v9351_v56 = vld [vmem:[#allocation41_spill] sm:$0xff]  ;;  %v9352_v57 = vld [vmem:[#allocation42_spill] sm:$0xff] }
 0x6e7   : > { %2432 = vmatpush1.msra.mxu1 %v6991_v58  ;;  %2503 = vmatpush1.msra.mxu0 %v6993_v59  ;;  %v9353_v58 = vld [vmem:[#allocation43_spill] sm:$0xff]  ;;  %v9354_v59 = vld [vmem:[#allocation44_spill] sm:$0xff]  ;;  %v9363_v30 = vld [vmem:[#allocation53_spill] sm:$0xff] }
 0x6e8   : > { %2433 = vmatprep.subr.mxu1 %v6997_v60  ;;  %2504 = vmatprep.subr.mxu0 %v6999_v61  ;;  %v9355_v60 = vld [vmem:[#allocation45_spill] sm:$0xff]  ;;  %v9356_v61 = vld [vmem:[#allocation46_spill] sm:$0xff] }
 0x6e9   : > { %2434 = vmatpush1.msra.mxu1 %v7003_v62  ;;  %2505 = vmatpush1.msra.mxu0 %v7005_v63  ;;  %v9357_v62 = vld [vmem:[#allocation47_spill] sm:$0xff]  ;;  %v9358_v63 = vld [vmem:[#allocation48_spill] sm:$0xff] }
 0x6ea   : > { %2435 = vmatprep.subr.mxu1 %v7009_v0  ;;  %2506 = vmatprep.subr.mxu0 %v7011_v1  ;;  %v9359_v0 = vld [vmem:[#allocation49_spill] sm:$0xff]  ;;  %v9360_v1 = vld [vmem:[#allocation50_spill] sm:$0xff] }
 0x6eb   : > { %2436 = vmatpush1.msra.mxu1 %v7015_v2  ;;  %2507 = vmatpush1.msra.mxu0 %v9346_v46  ;;  %v9361_v2 = vld [vmem:[#allocation51_spill] sm:$0xff]  ;;  %v9364_v46 = vld [vmem:[#allocation54_spill] sm:$0xff] }
 0x6ec   : > { %2437 = vmatprep.subr.mxu1 %v9347_v48  ;;  %2508 = vmatprep.subr.mxu0 %v9348_v52  ;;  %v9365_v48 = vld [vmem:[#allocation55_spill] sm:$0xff]  ;;  %v9366_v52 = vld [vmem:[#allocation56_spill] sm:$0xff] }
 0x6ed   : > { %2438 = vmatpush1.msra.mxu1 %v9349_v55  ;;  %2509 = vmatpush1.msra.mxu0 %v9350_v45  ;;  %v9367_v55 = vld [vmem:[#allocation57_spill] sm:$0xff]  ;;  %v9368_v45 = vld [vmem:[#allocation58_spill] sm:$0xff] }
 0x6ee   : > { %2439 = vmatprep.subr.mxu1 %v9351_v56  ;;  %2510 = vmatprep.subr.mxu0 %v9352_v57  ;;  %v9369_v56 = vld [vmem:[#allocation59_spill] sm:$0xff]  ;;  %v9370_v57 = vld [vmem:[#allocation60_spill] sm:$0xff] }
 0x6ef   : > { %2440 = vmatpush1.msra.mxu1 %v9353_v58  ;;  %2511 = vmatpush1.msra.mxu0 %v9354_v59  ;;  %v9371_v58 = vld [vmem:[#allocation61_spill] sm:$0xff]  ;;  %v9372_v59 = vld [vmem:[#allocation62_spill] sm:$0xff] }
 0x6f0   : > { %2441 = vmatprep.subr.mxu1 %v9355_v60  ;;  %2512 = vmatprep.subr.mxu0 %v9356_v61  ;;  %v9373_v60 = vld [vmem:[#allocation63_spill] sm:$0xff]  ;;  %v9374_v61 = vld [vmem:[#allocation64_spill] sm:$0xff] }
 0x6f1   : > { %2442 = vmatpush1.msra.mxu1 %v9357_v62  ;;  %2513 = vmatpush1.msra.mxu0 %v9358_v63  ;;  %v9375_v62 = vld [vmem:[#allocation65_spill] sm:$0xff]  ;;  %v9376_v63 = vld [vmem:[#allocation66_spill] sm:$0xff] }
 0x6f2   : > { %2443 = vmatprep.subr.mxu1 %v9359_v0  ;;  %2514 = vmatprep.subr.mxu0 %v9360_v1  ;;  %v9377_v0 = vld [vmem:[#allocation67_spill] sm:$0xff]  ;;  %v9378_v1 = vld [vmem:[#allocation68_spill] sm:$0xff] }
 0x6f3   : > { %2444 = vmatpush1.msra.mxu1 %v9361_v2  ;;  %2515 = vmatpush1.msra.mxu0 %v9362_v26  ;;  %v9379_v2 = vld [vmem:[#allocation69_spill] sm:$0xff]  ;;  %v9380_v26 = vld [vmem:[#allocation70_spill] sm:$0xff] }
 0x6f4   : > { %2445 = vmatprep.subr.mxu1 %v9363_v30  ;;  %2516 = vmatprep.subr.mxu0 %v9364_v46  ;;  %v9381_v30 = vld [vmem:[#allocation71_spill] sm:$0xff]  ;;  %v9382_v46 = vld [vmem:[#allocation72_spill] sm:$0xff] }
 0x6f5   : > { %2446 = vmatpush1.msra.mxu1 %v9365_v48  ;;  %2517 = vmatpush1.msra.mxu0 %v9366_v52  ;;  %v9383_v48 = vld [vmem:[#allocation73_spill] sm:$0xff]  ;;  %v9384_v52 = vld [vmem:[#allocation74_spill] sm:$0xff] }
 0x6f6   : > { %2447 = vmatprep.subr.mxu1 %v9367_v55  ;;  %2518 = vmatprep.subr.mxu0 %v9368_v45  ;;  %v9385_v55 = vld [vmem:[#allocation75_spill] sm:$0xff]  ;;  %v9386_v45 = vld [vmem:[#allocation76_spill] sm:$0xff] }
 0x6f7   : > { %2448 = vmatpush1.msra.mxu1 %v9369_v56  ;;  %2519 = vmatpush1.msra.mxu0 %v9370_v57  ;;  %v9387_v56 = vld [vmem:[#allocation77_spill] sm:$0xff]  ;;  %v9388_v57 = vld [vmem:[#allocation78_spill] sm:$0xff] }
 0x6f8   : > { %2449 = vmatprep.subr.mxu1 %v9371_v58  ;;  %2520 = vmatprep.subr.mxu0 %v9372_v59  ;;  %v9389_v58 = vld [vmem:[#allocation79_spill] sm:$0xff]  ;;  %v9390_v59 = vld [vmem:[#allocation80_spill] sm:$0xff] }
 0x6f9   : > { %2450 = vmatpush1.msra.mxu1 %v9373_v60  ;;  %2521 = vmatpush1.msra.mxu0 %v9374_v61  ;;  %v9391_v60 = vld [vmem:[#allocation81_spill] sm:$0xff]  ;;  %v9392_v61 = vld [vmem:[#allocation82_spill] sm:$0xff] }
 0x6fa   : > { %2451 = vmatprep.subr.mxu1 %v9375_v62  ;;  %2522 = vmatprep.subr.mxu0 %v9376_v63  ;;  %v9393_v62 = vld [vmem:[#allocation83_spill] sm:$0xff]  ;;  %v9394_v63 = vld [vmem:[#allocation84_spill] sm:$0xff] }
 0x6fb   : > { %2452 = vmatpush1.msra.mxu1 %v9377_v0  ;;  %2523 = vmatpush1.msra.mxu0 %v9378_v1  ;;  %v9395_v0 = vld [vmem:[#allocation85_spill] sm:$0xff]  ;;  %v9396_v1 = vld [vmem:[#allocation86_spill] sm:$0xff] }
 0x6fc   : > { %2453 = vmatprep.subr.mxu1 %v9379_v2  ;;  %2524 = vmatprep.subr.mxu0 %v9380_v26  ;;  %v9397_v2 = vld [vmem:[#allocation87_spill] sm:$0xff]  ;;  %v9398_v26 = vld [vmem:[#allocation88_spill] sm:$0xff] }
 0x6fd   : > { %2454 = vmatpush1.msra.mxu1 %v9381_v30  ;;  %2525 = vmatpush1.msra.mxu0 %v9382_v46  ;;  %v9399_v30 = vld [vmem:[#allocation89_spill] sm:$0xff]  ;;  %v9400_v46 = vld [vmem:[#allocation90_spill] sm:$0xff] }
 0x6fe   : > { %2455 = vmatprep.subr.mxu1 %v9383_v48  ;;  %2526 = vmatprep.subr.mxu0 %v9384_v52  ;;  %v9401_v48 = vld [vmem:[#allocation91_spill] sm:$0xff]  ;;  %v9402_v52 = vld [vmem:[#allocation92_spill] sm:$0xff] }
 0x6ff   : > { %2456 = vmatpush1.msra.mxu1 %v9385_v55  ;;  %2527 = vmatpush1.msra.mxu0 %v9386_v45  ;;  %v9403_v55 = vld [vmem:[#allocation93_spill] sm:$0xff]  ;;  %v9404_v45 = vld [vmem:[#allocation94_spill] sm:$0xff] }
 0x700   : > { %2457 = vmatprep.subr.mxu1 %v9387_v56  ;;  %2528 = vmatprep.subr.mxu0 %v9388_v57  ;;  %v9405_v56 = vld [vmem:[#allocation95_spill] sm:$0xff]  ;;  %v9406_v57 = vld [vmem:[#allocation96_spill] sm:$0xff] }
 0x701   : > { %2458 = vmatpush1.msra.mxu1 %v9389_v58  ;;  %2529 = vmatpush1.msra.mxu0 %v9390_v59  ;;  %v9407_v58 = vld [vmem:[#allocation97_spill] sm:$0xff]  ;;  %v9408_v59 = vld [vmem:[#allocation98_spill] sm:$0xff] }
 0x702   : > { %2459 = vmatprep.subr.mxu1 %v9391_v60  ;;  %2530 = vmatprep.subr.mxu0 %v9392_v61  ;;  %v9409_v60 = vld [vmem:[#allocation99_spill] sm:$0xff]  ;;  %v9410_v61 = vld [vmem:[#allocation100_spill] sm:$0xff] }
 0x703   : > { %2460 = vmatpush1.msra.mxu1 %v9393_v62  ;;  %2493 = vmatprep.mubr.f32.mxu1 %v9257_v33  ;;  %v9411_v62 = vld [vmem:[#allocation101_spill] sm:$0xff] }
 0x704   : > { %2531 = vmatpush1.msra.mxu0 %v9394_v63  ;;  %2564 = vmatprep.mubr.f32.mxu0 %v9257_v33  ;;  %v9412_v63 = vld [vmem:[#allocation102_spill] sm:$0xff] }
 0x705   : > { %2494 = vmatmul.mubr.f32.vlgmr.msra.gmra.mxu1 %v7489_v23  ;;  %2565 = vmatmul.mubr.f32.vlgmr.msra.gmra.mxu0 %v7489_v23 }
 0x706   : > { %2571 = vmatprep.subr.mxu1 %v9395_v0  ;;  %2642 = vmatprep.subr.mxu0 %v9396_v1  ;;  %v9413_v0 = vld [vmem:[#allocation103_spill] sm:$0xff]  ;;  %v9414_v1 = vld [vmem:[#allocation104_spill] sm:$0xff] }
 0x707   : > { %2572 = vmatpush1.msra.mxu1 %v9397_v2  ;;  %2643 = vmatpush1.msra.mxu0 %v9398_v26  ;;  %v9415_v2 = vld [vmem:[#allocation105_spill] sm:$0xff]  ;;  %v9416_v26 = vld [vmem:[#allocation106_spill] sm:$0xff] }
 0x708   : > { %2573 = vmatprep.subr.mxu1 %v9399_v30  ;;  %2644 = vmatprep.subr.mxu0 %v9400_v46  ;;  %v9417_v30 = vld [vmem:[#allocation107_spill] sm:$0xff]  ;;  %v9418_v46 = vld [vmem:[#allocation108_spill] sm:$0xff] }
 0x709   : > { %2574 = vmatpush1.msra.mxu1 %v9401_v48  ;;  %2645 = vmatpush1.msra.mxu0 %v9402_v52  ;;  %v9419_v48 = vld [vmem:[#allocation109_spill] sm:$0xff]  ;;  %v9420_v52 = vld [vmem:[#allocation110_spill] sm:$0xff] }
 0x70a   : > { %2575 = vmatprep.subr.mxu1 %v9403_v55  ;;  %2646 = vmatprep.subr.mxu0 %v9404_v45  ;;  %v9421_v55 = vld [vmem:[#allocation111_spill] sm:$0xff]  ;;  %v9422_v45 = vld [vmem:[#allocation112_spill] sm:$0xff] }
 0x70b   : > { %2576 = vmatpush1.msra.mxu1 %v9405_v56  ;;  %2647 = vmatpush1.msra.mxu0 %v9406_v57  ;;  %v9423_v56 = vld [vmem:[#allocation113_spill] sm:$0xff]  ;;  %v9424_v57 = vld [vmem:[#allocation114_spill] sm:$0xff] }
 0x70c   : > { %2577 = vmatprep.subr.mxu1 %v9407_v58  ;;  %2648 = vmatprep.subr.mxu0 %v9408_v59  ;;  %v9425_v58 = vld [vmem:[#allocation115_spill] sm:$0xff]  ;;  %v9426_v59 = vld [vmem:[#allocation116_spill] sm:$0xff] }
 0x70d   : > { %2578 = vmatpush1.msra.mxu1 %v9409_v60  ;;  %2649 = vmatpush1.msra.mxu0 %v9410_v61  ;;  %v9427_v60 = vld [vmem:[#allocation117_spill] sm:$0xff]  ;;  %v9428_v61 = vld [vmem:[#allocation118_spill] sm:$0xff] }
 0x70e   : > { %2579 = vmatprep.subr.mxu1 %v9411_v62  ;;  %2650 = vmatprep.subr.mxu0 %v9412_v63  ;;  %v9429_v62 = vld [vmem:[#allocation119_spill] sm:$0xff]  ;;  %v9430_v63 = vld [vmem:[#allocation120_spill] sm:$0xff] }
 0x70f   : > { %2580 = vmatpush1.msra.mxu1 %v9413_v0  ;;  %2651 = vmatpush1.msra.mxu0 %v9414_v1  ;;  %v9431_v0 = vld [vmem:[#allocation121_spill] sm:$0xff]  ;;  %v9432_v1 = vld [vmem:[#allocation122_spill] sm:$0xff] }
 0x710   : > { %2581 = vmatprep.subr.mxu1 %v9415_v2  ;;  %2652 = vmatprep.subr.mxu0 %v9416_v26  ;;  %v9433_v2 = vld [vmem:[#allocation123_spill] sm:$0xff]  ;;  %v9434_v26 = vld [vmem:[#allocation124_spill] sm:$0xff] }
 0x711   : > { %2582 = vmatpush1.msra.mxu1 %v9417_v30  ;;  %2653 = vmatpush1.msra.mxu0 %v9418_v46  ;;  %v9435_v30 = vld [vmem:[#allocation125_spill] sm:$0xff]  ;;  %v9436_v46 = vld [vmem:[#allocation126_spill] sm:$0xff] }
 0x712   : > { %2583 = vmatprep.subr.mxu1 %v9419_v48  ;;  %2654 = vmatprep.subr.mxu0 %v9420_v52  ;;  %v9437_v48 = vld [vmem:[#allocation127_spill] sm:$0xff]  ;;  %v9438_v52 = vld [vmem:[#allocation128_spill] sm:$0xff] }
 0x713   : > { %2584 = vmatpush1.msra.mxu1 %v9421_v55  ;;  %2655 = vmatpush1.msra.mxu0 %v9422_v45  ;;  %v9439_v55 = vld [vmem:[#allocation129_spill] sm:$0xff]  ;;  %v9440_v45 = vld [vmem:[#allocation130_spill] sm:$0xff] }
 0x714   : > { %2585 = vmatprep.subr.mxu1 %v9423_v56  ;;  %2656 = vmatprep.subr.mxu0 %v9424_v57  ;;  %v9441_v56 = vld [vmem:[#allocation131_spill] sm:$0xff]  ;;  %v9442_v57 = vld [vmem:[#allocation132_spill] sm:$0xff] }
 0x715   : > { %2586 = vmatpush1.msra.mxu1 %v9425_v58  ;;  %2657 = vmatpush1.msra.mxu0 %v9426_v59  ;;  %v9443_v58 = vld [vmem:[#allocation133_spill] sm:$0xff]  ;;  %v9444_v59 = vld [vmem:[#allocation134_spill] sm:$0xff] }
 0x716   : > { %2587 = vmatprep.subr.mxu1 %v9427_v60  ;;  %2658 = vmatprep.subr.mxu0 %v9428_v61  ;;  %v9445_v60 = vld [vmem:[#allocation135_spill] sm:$0xff]  ;;  %v9446_v61 = vld [vmem:[#allocation136_spill] sm:$0xff] }
 0x717   : > { %2588 = vmatpush1.msra.mxu1 %v9429_v62  ;;  %2659 = vmatpush1.msra.mxu0 %v9430_v63  ;;  %v9447_v62 = vld [vmem:[#allocation137_spill] sm:$0xff]  ;;  %v9448_v63 = vld [vmem:[#allocation138_spill] sm:$0xff] }
 0x718   : > { %2589 = vmatprep.subr.mxu1 %v9431_v0  ;;  %2660 = vmatprep.subr.mxu0 %v9432_v1  ;;  %v9449_v0 = vld [vmem:[#allocation139_spill] sm:$0xff]  ;;  %v9450_v1 = vld [vmem:[#allocation140_spill] sm:$0xff] }
 0x719   : > { %2590 = vmatpush1.msra.mxu1 %v9433_v2  ;;  %2661 = vmatpush1.msra.mxu0 %v9434_v26  ;;  %v9451_v2 = vld [vmem:[#allocation141_spill] sm:$0xff]  ;;  %v9452_v26 = vld [vmem:[#allocation142_spill] sm:$0xff] }
 0x71a   : > { %2591 = vmatprep.subr.mxu1 %v9435_v30  ;;  %2662 = vmatprep.subr.mxu0 %v9436_v46  ;;  %v9453_v30 = vld [vmem:[#allocation143_spill] sm:$0xff]  ;;  %v9454_v46 = vld [vmem:[#allocation144_spill] sm:$0xff] }
 0x71b   : > { %2592 = vmatpush1.msra.mxu1 %v9437_v48  ;;  %2663 = vmatpush1.msra.mxu0 %v9438_v52  ;;  %v9455_v48 = vld [vmem:[#allocation145_spill] sm:$0xff]  ;;  %v9456_v52 = vld [vmem:[#allocation146_spill] sm:$0xff] }
 0x71c   : > { %2593 = vmatprep.subr.mxu1 %v9439_v55  ;;  %2664 = vmatprep.subr.mxu0 %v9440_v45  ;;  %v9457_v55 = vld [vmem:[#allocation147_spill] sm:$0xff]  ;;  %v9458_v45 = vld [vmem:[#allocation148_spill] sm:$0xff] }
 0x71d   : > { %2594 = vmatpush1.msra.mxu1 %v9441_v56  ;;  %2665 = vmatpush1.msra.mxu0 %v9442_v57  ;;  %v9459_v56 = vld [vmem:[#allocation149_spill] sm:$0xff]  ;;  %v9460_v57 = vld [vmem:[#allocation150_spill] sm:$0xff] }
 0x71e   : > { %2595 = vmatprep.subr.mxu1 %v9443_v58  ;;  %2666 = vmatprep.subr.mxu0 %v9444_v59  ;;  %v9462_v58 = vld [vmem:[#allocation152_spill] sm:$0xff]  ;;  %v9463_v59 = vld [vmem:[#allocation153_spill] sm:$0xff] }
 0x71f   : > { %2596 = vmatpush1.msra.mxu1 %v9445_v60  ;;  %2667 = vmatpush1.msra.mxu0 %v9446_v61  ;;  %v9464_v60 = vld [vmem:[#allocation154_spill] sm:$0xff]  ;;  %v9465_v61 = vld [vmem:[#allocation155_spill] sm:$0xff] }
 0x720   : > { %2597 = vmatprep.subr.mxu1 %v9447_v62  ;;  %2668 = vmatprep.subr.mxu0 %v9448_v63  ;;  %v9466_v62 = vld [vmem:[#allocation156_spill] sm:$0xff]  ;;  %v9467_v63 = vld [vmem:[#allocation157_spill] sm:$0xff] }
 0x721   : > { %2598 = vmatpush1.msra.mxu1 %v9449_v0  ;;  %2669 = vmatpush1.msra.mxu0 %v9450_v1  ;;  %v9468_v0 = vld [vmem:[#allocation158_spill] sm:$0xff]  ;;  %v9469_v1 = vld [vmem:[#allocation159_spill] sm:$0xff] }
 0x722   : > { %2599 = vmatprep.subr.mxu1 %v9451_v2  ;;  %2670 = vmatprep.subr.mxu0 %v9452_v26  ;;  %v9470_v2 = vld [vmem:[#allocation160_spill] sm:$0xff]  ;;  %v9471_v26 = vld [vmem:[#allocation161_spill] sm:$0xff] }
 0x723   : > { %2600 = vmatpush1.msra.mxu1 %v9453_v30  ;;  %2671 = vmatpush1.msra.mxu0 %v9454_v46  ;;  %v9472_v30 = vld [vmem:[#allocation162_spill] sm:$0xff]  ;;  %v9473_v46 = vld [vmem:[#allocation163_spill] sm:$0xff] }
 0x724   : > { %2601 = vmatprep.subr.mxu1 %v9455_v48  ;;  %2672 = vmatprep.subr.mxu0 %v9456_v52  ;;  %v9474_v48 = vld [vmem:[#allocation164_spill] sm:$0xff] }
 0x725   : > { %2602 = vmatpush1.msra.mxu1 %v9457_v55  ;;  %2635 = vmatprep.mubr.f32.mxu1 %v9257_v33  ;;  %v7835_v52 = vld [vmem:[#allocation13 + $0x1e8] sm:$0xff]  ;;  %v7852_v55 = vld [vmem:[#allocation13 + $0x1f8] sm:$0xff] }
 0x726   : > { %2673 = vmatpush1.msra.mxu0 %v9458_v45  ;;  %2706 = vmatprep.mubr.f32.mxu0 %v9257_v33  ;;  %9475 = vst [vmem:[#allocation36_spill] sm:$0xff] %v7835_v52  ;;  %9476 = vst [vmem:[#allocation37_spill] sm:$0xff] %v7852_v55 }
 0x727   : > { %2636 = vmatmul.mubr.f32.vlgmr.msra.gmra.mxu1 %v7489_v23  ;;  %2707 = vmatmul.mubr.f32.vlgmr.msra.gmra.mxu0 %v7489_v23  ;;  %v9461_v23 = vld [vmem:[#allocation151_spill] sm:$0xff] }
 0x728   : > { %5153 = vmatprep.subr.mxu1 %v9257_v33  ;;  %5185 = vmatprep.mubr.msk.f32.mxu1 %vm6416_vm0, %v9257_v33 }
 0x729   : > { %5154 = vmatpush3.xpose.msra.mxu1 %v9459_v56  ;;  %5188 = vmatprep.subr.mxu0 %v9257_v33 }
 0x72a   : > { %5155 = vmatprep.subr.mxu1 %v9257_v33  ;;  %5189 = vmatpush3.msra.mxu0 %v9459_v56 }
 0x72b   : > { %5190 = vmatprep.subr.mxu0 %v9257_v33  ;;  %5220 = vmatprep.mubr.msk.f32.mxu0 %vm6416_vm0, %v9257_v33 }
 0x72c   : > { %5191 = vmatpush3.msra.mxu0 %v9460_v57 }
 0x72d   : > { %5156 = vmatpush3.xpose.msra.mxu1 %v9460_v57  ;;  %5192 = vmatprep.subr.mxu0 %v9257_v33 }
 0x72e   : > { %5157 = vmatprep.subr.mxu1 %v9257_v33  ;;  %5193 = vmatpush3.msra.mxu0 %v9461_v23 }
 0x72f   : > { %5194 = vmatprep.subr.mxu0 %v9257_v33 }
 0x730   : > { %5195 = vmatpush3.msra.mxu0 %v9462_v58 }
 0x731   : > { %5158 = vmatpush3.xpose.msra.mxu1 %v9461_v23  ;;  %5196 = vmatprep.subr.mxu0 %v9257_v33 }
 0x732   : > { %5159 = vmatprep.subr.mxu1 %v9257_v33  ;;  %5197 = vmatpush3.msra.mxu0 %v9463_v59 }
 0x733   : > { %5198 = vmatprep.subr.mxu0 %v9257_v33 }
 0x734   : > { %5199 = vmatpush3.msra.mxu0 %v9464_v60 }
 0x735   : > { %5160 = vmatpush3.xpose.msra.mxu1 %v9462_v58  ;;  %5200 = vmatprep.subr.mxu0 %v9257_v33 }
 0x736   : > { %5161 = vmatprep.subr.mxu1 %v9257_v33  ;;  %5201 = vmatpush3.msra.mxu0 %v9465_v61 }
 0x737   : > { %5202 = vmatprep.subr.mxu0 %v9257_v33 }
 0x738   : > { %5203 = vmatpush3.msra.mxu0 %v9466_v62 }
 0x739   : > { %5162 = vmatpush3.xpose.msra.mxu1 %v9463_v59  ;;  %5204 = vmatprep.subr.mxu0 %v9257_v33 }
 0x73a   : > { %5163 = vmatprep.subr.mxu1 %v9257_v33  ;;  %5205 = vmatpush3.msra.mxu0 %v9467_v63 }
 0x73b   : > { %5206 = vmatprep.subr.mxu0 %v9257_v33 }
 0x73c   : > { %5207 = vmatpush3.msra.mxu0 %v9468_v0 }
 0x73d   : > { %5164 = vmatpush3.xpose.msra.mxu1 %v9464_v60  ;;  %5208 = vmatprep.subr.mxu0 %v9257_v33 }
 0x73e   : > { %5165 = vmatprep.subr.mxu1 %v9257_v33  ;;  %5209 = vmatpush3.msra.mxu0 %v9469_v1 }
 0x73f   : > { %5210 = vmatprep.subr.mxu0 %v9257_v33 }
 0x740   : > { %5211 = vmatpush3.msra.mxu0 %v9470_v2 }
 0x741   : > { %5166 = vmatpush3.xpose.msra.mxu1 %v9465_v61  ;;  %5212 = vmatprep.subr.mxu0 %v9257_v33 }
 0x742   : > { %5167 = vmatprep.subr.mxu1 %v9257_v33  ;;  %5213 = vmatpush3.msra.mxu0 %v9471_v26 }
 0x743   : > { %5214 = vmatprep.subr.mxu0 %v9257_v33 }
 0x744   : > { %5215 = vmatpush3.msra.mxu0 %v9472_v30 }
 0x745   : > { %5168 = vmatpush3.xpose.msra.mxu1 %v9466_v62  ;;  %5216 = vmatprep.subr.mxu0 %v9257_v33 }
 0x746   : > { %5169 = vmatprep.subr.mxu1 %v9257_v33  ;;  %5217 = vmatpush3.msra.mxu0 %v9473_v46 }
 0x747   : > { %5218 = vmatprep.subr.mxu0 %v9257_v33 }
 0x748   : > { %5219 = vmatpush3.msra.mxu0 %v9474_v48 }
 0x749   : > { %5170 = vmatpush3.xpose.msra.mxu1 %v9467_v63  ;;  %2898 = vmatprep.subr.mxu0 %v7835_v52 }
 0x74a   : > { %5171 = vmatprep.subr.mxu1 %v9257_v33 }
 0x74d   : > { %5172 = vmatpush3.xpose.msra.mxu1 %v9468_v0 }
 0x74e   : > { %5173 = vmatprep.subr.mxu1 %v9257_v33 }
 0x751   : > { %5174 = vmatpush3.xpose.msra.mxu1 %v9469_v1 }
 0x752   : > { %5175 = vmatprep.subr.mxu1 %v9257_v33 }
 0x755   : > { %5176 = vmatpush3.xpose.msra.mxu1 %v9470_v2 }
 0x756   : > { %5177 = vmatprep.subr.mxu1 %v9257_v33 }
 0x759   : > { %5178 = vmatpush3.xpose.msra.mxu1 %v9471_v26 }
 0x75a   : > { %5179 = vmatprep.subr.mxu1 %v9257_v33 }
 0x75d   : > { %5180 = vmatpush3.xpose.msra.mxu1 %v9472_v30 }
 0x75e   : > { %5181 = vmatprep.subr.mxu1 %v9257_v33 }
 0x761   : > { %5182 = vmatpush3.xpose.msra.mxu1 %v9473_v46 }
 0x762   : > { %5183 = vmatprep.subr.mxu1 %v9257_v33 }
 0x765   : > { %5184 = vmatpush3.xpose.msra.mxu1 %v9474_v48 }
 0x766   : > { %2969 = vmatprep.subr.mxu1 %v7852_v55 }
 0x7a4   : > { %v2353_v45 = vpop.f32.mrf.mxu1  ;;  %v2424_v56 = vpop.f32.mrf.mxu0 }
 0x7a6   : > { %v2355_v57 = vpop.f32.mrf.mxu1  ;;  %v2426_v58 = vpop.f32.mrf.mxu0 }
 0x7c5   : > { %v2495_v23 = vpop.f32.mrf.mxu1  ;;  %v2566_v59 = vpop.f32.mrf.mxu0 }
 0x7c6   : > { %v2496_v61 = vadd.f32 %v2495_v23, %v2353_v45  ;;  %v2567_v24 = vadd.f32 %v2566_v59, %v2424_v56 }
 0x7c7   : > { %v2497_v60 = vpop.f32.mrf.mxu1  ;;  %v2568_v0 = vpop.f32.mrf.mxu0 }
 0x7c8   : > { %v2498_v63 = vadd.f32 %v2497_v60, %v2355_v57  ;;  %v2569_v32 = vadd.f32 %v2568_v0, %v2426_v58 }
 0x7e7   : > { %v2637_v62 = vpop.f32.mrf.mxu1  ;;  %v2708_v30 = vpop.f32.mrf.mxu0 }
 0x7e8   : > { %v2713_v1 = vadd.f32 %v2637_v62, %v2496_v61  ;;  %v2715_v57 = vadd.f32 %v2708_v30, %v2567_v24  ;;  %v7917_v30 = vld [vmem:[#allocation13 + $0x70] sm:$0xff] }
 0x7e9   : > { %v2639_v2 = vpop.f32.mrf.mxu1  ;;  %v2710_v34 = vpop.f32.mrf.mxu0 }
 0x7ea   : > { %v2717_v26 = vadd.f32 %v2713_v1, %v7474_v17  ;;  %v2714_v46 = vadd.f32 %v2639_v2, %v2498_v63  ;;  %v2716_v28 = vadd.f32 %v2710_v34, %v2569_v32  ;;  %v2719_v61 = vadd.f32 %v2715_v57, %v7483_v13  ;;  %v7929_v57 = vld [vmem:[#allocation13 + $0x30] sm:$0xff] }
 0x7ec   : > { %v4651_v48 = vmul.f32 -1.442695, %v2717_v26  ;;  %v2718_v55 = vadd.f32 %v2714_v46, %v7476_v11  ;;  %v2720_v45 = vadd.f32 %v2716_v28, %v7480_v21  ;;  %v7914_v26 = vld [vmem:[#allocation13 + $0x78] sm:$0xff] }
 0x7ed   : > { %v7920_v46 = vld [vmem:[#allocation13 + $0x58] sm:$0xff] }
 0x7ee   : > { %5689 = vpow2.f32 %v4651_v48  ;;  %v4652_v52 = vmul.f32 -1.442695, %v2718_v55  ;;  %v4653_v23 = vmul.f32 -1.442695, %v2720_v45  ;;  %v7923_v48 = vld [vmem:[#allocation13 + $0x50] sm:$0xff]  ;;  %v7926_v45 = vld [vmem:[#allocation13 + $0x38] sm:$0xff] }
 0x7f0   : > { %5691 = vpow2.f32 %v4652_v52 }
 0x7f1   : > { %5693 = vpow2.f32 %v4653_v23  ;;  %v7932_v23 = vld [vmem:[#allocation13 + $0x18] sm:$0xff] }
 0x7fb   : > { %v5690_v60 = vpop.eup %5689 }
 0x7fc   : > { %v2724_v62 = vadd.f32 1.0, %v5690_v60  ;;  %v7935_v60 = vld [vmem:[#allocation13 + $0x10] sm:$0xff] }
 0x7fd   : > { %v5692_v1 = vpop.eup %5691 }
 0x7fe   : > { %5695 = vrcp.f32 %v2724_v62  ;;  %v2730_v63 = vadd.f32 1.0, %v5692_v1  ;;  %v5694_v55 = vpop.eup %5693 }
 0x7ff   : > { %5697 = vtanh.f32 %v2719_v61  ;;  %v2737_v32 = vadd.f32 1.0, %v5694_v55  ;;  %v7938_v61 = vld [vmem:[#allocation12 + $0x1f8] sm:$0xff] }
 0x800   : > { %5699 = vrcp.f32 %v2730_v63 }
 0x801   : > { %5701 = vrcp.f32 %v2737_v32 }
 0x80b   : > { %v5696_v2 = vpop.eup %5695 }
 0x80c   : > { %v5698_v58 = vpop.eup %5697 }
 0x80d   : > { %v5700_v52 = vpop.eup %5699  ;;  %v2741_v34 = vmul.f32 %v5698_v58, %v5696_v2 }
 0x80e   : > { %v2740_v28 = vmul.f32 %v5700_v52, %v7486_v41  ;;  %v5702_v56 = vpop.eup %5701  ;;  %v7878_v41 = vld [vmem:[#allocation13 + $0x138] sm:$0xff] }
 0x810   : > { %v7860_v24 = vadd.f32 %v2741_v34, %v2740_v28 }
 0x812   : > { %5703 = vtanh.f32 %v7860_v24 }
 0x81f   : > { %v5704_v59 = vpop.eup %5703 }
 0x820   : > { %v7863_v0 = vmul.f32 %v5704_v59, %v5702_v56 }
 0x822   : > { %5186 = vmatmul.mubr.f32.vlgmr.msra.gmra.mxu1 %v7863_v0 }
 0x823   : > { %2970 = vmatpush1.msra.mxu1 %v7492_v35  ;;  %3033 = vmatprep.mubr.f32.mxu1 %v9257_v33  ;;  %v7881_v35 = vld [vmem:[#allocation13 + $0x130] sm:$0xff] }
 0x824   : > { %2971 = vmatprep.subr.mxu1 %v7496_v53  ;;  %v7884_v53 = vld [vmem:[#allocation13 + $0x118] sm:$0xff] }
 0x825   : > { %2972 = vmatpush1.msra.mxu1 %v7499_v18  ;;  %v7887_v18 = vld [vmem:[#allocation13 + $0x110] sm:$0xff] }
 0x826   : > { %2973 = vmatprep.subr.mxu1 %v7502_v29  ;;  %v7890_v29 = vld [vmem:[#allocation13 + $0xf8] sm:$0xff] }
 0x827   : > { %2974 = vmatpush1.msra.mxu1 %v7505_v39  ;;  %v7893_v39 = vld [vmem:[#allocation13 + $0xf0] sm:$0xff] }
 0x828   : > { %2975 = vmatprep.subr.mxu1 %v7508_v51  ;;  %v7896_v51 = vld [vmem:[#allocation13 + $0xd8] sm:$0xff] }
 0x829   : > { %2976 = vmatpush1.msra.mxu1 %v7511_v9  ;;  %v7899_v9 = vld [vmem:[#allocation13 + $0xd0] sm:$0xff] }
 0x82a   : > { %2977 = vmatprep.subr.mxu1 %v7514_v7  ;;  %v7902_v7 = vld [vmem:[#allocation13 + $0xb8] sm:$0xff] }
 0x82b   : > { %2978 = vmatpush1.msra.mxu1 %v7517_v43  ;;  %v7905_v43 = vld [vmem:[#allocation13 + $0xb0] sm:$0xff] }
 0x82c   : > { %2979 = vmatprep.subr.mxu1 %v7520_v6  ;;  %v7908_v6 = vld [vmem:[#allocation13 + $0x98] sm:$0xff] }
 0x82d   : > { %2980 = vmatpush1.msra.mxu1 %v7523_v5  ;;  %v7911_v5 = vld [vmem:[#allocation13 + $0x90] sm:$0xff] }
 0x82e   : > { %2981 = vmatprep.subr.mxu1 %v7878_v41 }
 0x82f   : > { %2982 = vmatpush1.msra.mxu1 %v7881_v35 }
 0x830   : > { %2983 = vmatprep.subr.mxu1 %v7884_v53 }
 0x831   : > { %2984 = vmatpush1.msra.mxu1 %v7887_v18 }
 0x832   : > { %2985 = vmatprep.subr.mxu1 %v7890_v29 }
 0x833   : > { %2986 = vmatpush1.msra.mxu1 %v7893_v39 }
 0x834   : > { %2987 = vmatprep.subr.mxu1 %v7896_v51 }
 0x835   : > { %2988 = vmatpush1.msra.mxu1 %v7899_v9 }
 0x836   : > { %2989 = vmatprep.subr.mxu1 %v7902_v7 }
 0x837   : > { %2990 = vmatpush1.msra.mxu1 %v7905_v43 }
 0x838   : > { %2991 = vmatprep.subr.mxu1 %v7908_v6 }
 0x839   : > { %2992 = vmatpush1.msra.mxu1 %v7911_v5 }
 0x83a   : > { %2993 = vmatprep.subr.mxu1 %v7914_v26 }
 0x83b   : > { %2994 = vmatpush1.msra.mxu1 %v7917_v30 }
 0x83c   : > { %2995 = vmatprep.subr.mxu1 %v7920_v46 }
 0x83d   : > { %2996 = vmatpush1.msra.mxu1 %v7923_v48 }
 0x83e   : > { %2997 = vmatprep.subr.mxu1 %v7926_v45 }
 0x83f   : > { %2998 = vmatpush1.msra.mxu1 %v7929_v57 }
 0x840   : > { %2999 = vmatprep.subr.mxu1 %v7932_v23 }
 0x841   : > { %3000 = vmatpush1.msra.mxu1 %v7935_v60 }
 0x842   : > { %3111 = vmatprep.subr.mxu1 %v7938_v61 }
 0x8e2   : > { %v2811_v62 = vpop.f32.mrf.mxu1 }
 0x8e3   : > { %v2815_v1 = vsel %vm2203_vm1, %v2811_v62, -1e+30  ;;  %v8019_v62 = vld [vmem:[#allocation12 + $0x180] sm:$0xff] }
 0x8e4   : > { %2816 = vmax.xlane.f32.xlu1 %v2815_v1  ;;  %v5187_v63 = vpop.f32.mrf.mxu1  ;;  %9485 = vst [vmem:[#allocation40_spill] sm:$0xff] %v8019_v62 }
 0x8e5   : > { %v8025_v63 = vld [vmem:[#allocation12 + $0x168] sm:$0xff] }
 0x8e6   : > { %9487 = vst [vmem:[#allocation42_spill] sm:$0xff] %v8025_v63 }
 0x96d   : > { %v2817_v55 = vpop.xlane.xlu1 %2816 }
 0x96e   : > { %v2818_v2 = vsub.f32 %v2815_v1, %v2817_v55  ;;  %v8022_v1 = vld [vmem:[#allocation12 + $0x190] sm:$0xff]  ;;  %v8028_v55 = vld [vmem:[#allocation12 + $0x178] sm:$0xff] }
 0x96f   : > { %9486 = vst [vmem:[#allocation41_spill] sm:$0xff] %v8022_v1  ;;  %9488 = vst [vmem:[#allocation43_spill] sm:$0xff] %v8028_v55 }
 0x970   : > { %v2819_v58 = vmul.f32 1.442695, %v2818_v2  ;;  %v8031_v2 = vld [vmem:[#allocation12 + $0x160] sm:$0xff] }
 0x971   : > { %9489 = vst [vmem:[#allocation44_spill] sm:$0xff] %v8031_v2 }
 0x972   : > { %5705 = vpow2.f32 %v2819_v58  ;;  %v8034_v58 = vld [vmem:[#allocation12 + $0x170] sm:$0xff] }
 0x973   : > { %9490 = vst [vmem:[#allocation45_spill] sm:$0xff] %v8034_v58 }
 0x97f   : > { %v5706_v52 = vpop.eup %5705 }
 0x980   : > { %v2821_v32 = vmul.f32 %v5706_v52, %v7550_v10  ;;  %v8037_v52 = vld [vmem:[#allocation12 + $0x148] sm:$0xff] }
 0x981   : > { %9491 = vst [vmem:[#allocation46_spill] sm:$0xff] %v8037_v52 }
 0x982   : > { %2822 = vadd.xlane.f32.xlu1 %v2821_v32 }
 0xa0b   : > { %v2823_v34 = vpop.xlane.xlu1 %2822 }
 0xa0c   : > { %vm2824_vm3 = vcmp.gt.f32.partialorder %v2823_v34, 0.0 }
 0xa0d   : > { %v2825_v28 = vsel %vm2824_vm3, %v2823_v34, 1.0  ;;  %v8043_v34 = vld [vmem:[#allocation12 + $0x140] sm:$0xff] }
 0xa0e   : > { %5707 = vrcp.f32 %v2825_v28  ;;  %9493 = vst [vmem:[#allocation48_spill] sm:$0xff] %v8043_v34  ;;  %v8046_v28 = vld [vmem:[#allocation12 + $0x150] sm:$0xff] }
 0xa0f   : > { %9494 = vst [vmem:[#allocation49_spill] sm:$0xff] %v8046_v28 }
 0xa1b   : > { %v5708_v56 = vpop.eup %5707 }
 0xa1c   : > { %v2827_v59 = vmul.f32 %v5708_v56, %v2821_v32  ;;  %v8040_v32 = vld [vmem:[#allocation12 + $0x158] sm:$0xff]  ;;  %v8049_v56 = vld [vmem:[#allocation12 + $0x128] sm:$0xff] }
 0xa1d   : > { %9492 = vst [vmem:[#allocation47_spill] sm:$0xff] %v8040_v32  ;;  %9495 = vst [vmem:[#allocation50_spill] sm:$0xff] %v8049_v56 }
 0xa1e   : > { %5221 = vmatmul.mubr.f32.vlgmr.msra.gmra.mxu0 %v2827_v59  ;;  %v8052_v59 = vld [vmem:[#allocation12 + $0x138] sm:$0xff] }
 0xa1f   : > { %2899 = vmatpush1.msra.mxu0 %v7556_v36  ;;  %2962 = vmatprep.mubr.f32.mxu0 %v9257_v33  ;;  %v9477_v36 = vld [vmem:[#allocation165_spill] sm:$0xff]  ;;  %9496 = vst [vmem:[#allocation51_spill] sm:$0xff] %v8052_v59 }
 0xa20   : > { %2900 = vmatprep.subr.mxu0 %v7560_v38  ;;  %v9478_v38 = vld [vmem:[#allocation166_spill] sm:$0xff] }
 0xa21   : > { %2901 = vmatpush1.msra.mxu0 %v7563_v40  ;;  %v9479_v40 = vld [vmem:[#allocation167_spill] sm:$0xff] }
 0xa22   : > { %2902 = vmatprep.subr.mxu0 %v7566_v42  ;;  %v9480_v42 = vld [vmem:[#allocation168_spill] sm:$0xff] }
 0xa23   : > { %2903 = vmatpush1.msra.mxu0 %v7569_v44  ;;  %v9481_v44 = vld [vmem:[#allocation169_spill] sm:$0xff] }
 0xa24   : > { %2904 = vmatprep.subr.mxu0 %v7572_v47  ;;  %v9482_v47 = vld [vmem:[#allocation170_spill] sm:$0xff] }
 0xa25   : > { %2905 = vmatpush1.msra.mxu0 %v7575_v49  ;;  %v7974_v49 = vld [vmem:[#allocation13 + $0x8] sm:$0xff] }
 0xa26   : > { %2906 = vmatprep.subr.mxu0 %v7578_v54  ;;  %v7977_v54 = vld [vmem:[#allocation13] sm:$0xff] }
 0xa27   : > { %2907 = vmatpush1.msra.mxu0 %v7581_v3  ;;  %v7980_v3 = vld [vmem:[#allocation12 + $0x1e8] sm:$0xff] }
 0xa28   : > { %2908 = vmatprep.subr.mxu0 %v7584_v4 }
 0xa29   : > { %2909 = vmatpush1.msra.mxu0 %v7587_v15  ;;  %v7983_v15 = vld [vmem:[#allocation12 + $0x1e0] sm:$0xff] }
 0xa2a   : > { %2910 = vmatprep.subr.mxu0 %v7590_v25  ;;  %v7986_v25 = vld [vmem:[#allocation12 + $0x1f0] sm:$0xff] }
 0xa2b   : > { %2911 = vmatpush1.msra.mxu0 %v7593_v31 }
 0xa2c   : > { %2912 = vmatprep.subr.mxu0 %v7596_v37  ;;  %v7989_v37 = vld [vmem:[#allocation12 + $0x1c8] sm:$0xff] }
 0xa2d   : > { %2913 = vmatpush1.msra.mxu0 %v7599_v8  ;;  %v7992_v8 = vld [vmem:[#allocation12 + $0x1d8] sm:$0xff] }
 0xa2e   : > { %2914 = vmatprep.subr.mxu0 %v7602_v50  ;;  %v7995_v50 = vld [vmem:[#allocation12 + $0x1c0] sm:$0xff] }
 0xa2f   : > { %2915 = vmatpush1.msra.mxu0 %v7605_v27  ;;  %v7998_v27 = vld [vmem:[#allocation12 + $0x1d0] sm:$0xff] }
 0xa30   : > { %2916 = vmatprep.subr.mxu0 %v7608_v12  ;;  %v8001_v12 = vld [vmem:[#allocation12 + $0x1a8] sm:$0xff] }
 0xa31   : > { %2917 = vmatpush1.msra.mxu0 %v7611_v14  ;;  %v8004_v14 = vld [vmem:[#allocation12 + $0x1b8] sm:$0xff] }
 0xa32   : > { %2918 = vmatprep.subr.mxu0 %v7614_v16  ;;  %v8007_v16 = vld [vmem:[#allocation12 + $0x1a0] sm:$0xff] }
 0xa33   : > { %2919 = vmatpush1.msra.mxu0 %v7617_v19  ;;  %v8010_v19 = vld [vmem:[#allocation12 + $0x1b0] sm:$0xff] }
 0xa34   : > { %2920 = vmatprep.subr.mxu0 %v7620_v20  ;;  %v8013_v20 = vld [vmem:[#allocation12 + $0x188] sm:$0xff] }
 0xa35   : > { %2921 = vmatpush1.msra.mxu0 %v7623_v22  ;;  %9483 = vst [vmem:[#allocation38_spill] sm:$0xff] %v8013_v20  ;;  %v8016_v22 = vld [vmem:[#allocation12 + $0x198] sm:$0xff] }
 0xa36   : > { %2922 = vmatprep.subr.mxu0 %v9477_v36  ;;  %9484 = vst [vmem:[#allocation39_spill] sm:$0xff] %v8016_v22  ;;  %v8055_v36 = vld [vmem:[#allocation12 + $0x120] sm:$0xff] }
 0xa37   : > { %2923 = vmatpush1.msra.mxu0 %v9478_v38  ;;  %9497 = vst [vmem:[#allocation52_spill] sm:$0xff] %v8055_v36  ;;  %v8058_v38 = vld [vmem:[#allocation12 + $0x130] sm:$0xff] }
 0xa38   : > { %2924 = vmatprep.subr.mxu0 %v9479_v40  ;;  %9498 = vst [vmem:[#allocation53_spill] sm:$0xff] %v8058_v38  ;;  %v8061_v40 = vld [vmem:[#allocation12 + $0x108] sm:$0xff] }
 0xa39   : > { %2925 = vmatpush1.msra.mxu0 %v9480_v42  ;;  %9499 = vst [vmem:[#allocation54_spill] sm:$0xff] %v8061_v40  ;;  %v8064_v42 = vld [vmem:[#allocation12 + $0x118] sm:$0xff] }
 0xa3a   : > { %2926 = vmatprep.subr.mxu0 %v9481_v44  ;;  %9500 = vst [vmem:[#allocation55_spill] sm:$0xff] %v8064_v42  ;;  %v8067_v44 = vld [vmem:[#allocation12 + $0x100] sm:$0xff] }
 0xa3b   : > { %2927 = vmatpush1.msra.mxu0 %v9482_v47  ;;  %9501 = vst [vmem:[#allocation56_spill] sm:$0xff] %v8067_v44  ;;  %v8070_v47 = vld [vmem:[#allocation12 + $0x110] sm:$0xff] }
 0xa3c   : > { %2928 = vmatprep.subr.mxu0 %v7974_v49  ;;  %9502 = vst [vmem:[#allocation57_spill] sm:$0xff] %v8070_v47 }
 0xa3d   : > { %2929 = vmatpush1.msra.mxu0 %v7977_v54 }
 0xa3e   : > { %3040 = vmatprep.subr.mxu0 %v7980_v3 }
 0xade   : > { %v2894_v4 = vpop.f32.mrf.mxu0 }
 0xadf   : > { %2963 = vmatmul.mubr.f32.vlgmr.msra.gmra.mxu0 %v2894_v4  ;;  %3034 = vmatmul.mubr.f32.vlgmr.msra.gmra.mxu1 %v2894_v4  ;;  %v8073_v4 = vld [vmem:[#allocation12 + $0xe8] sm:$0xff] }
 0xae0   : > { %3041 = vmatpush1.msra.mxu0 %v7983_v15  ;;  %3112 = vmatpush1.msra.mxu1 %v7986_v25  ;;  %v5222_v31 = vpop.f32.mrf.mxu0  ;;  %9503 = vst [vmem:[#allocation58_spill] sm:$0xff] %v8073_v4 }
 0xae1   : > { %3042 = vmatprep.subr.mxu0 %v7989_v37  ;;  %3113 = vmatprep.subr.mxu1 %v7992_v8  ;;  %v8076_v31 = vld [vmem:[#allocation12 + $0xf8] sm:$0xff] }
 0xae2   : > { %3043 = vmatpush1.msra.mxu0 %v7995_v50  ;;  %3114 = vmatpush1.msra.mxu1 %v7998_v27  ;;  %9504 = vst [vmem:[#allocation59_spill] sm:$0xff] %v8076_v31 }
 0xae3   : > { %3044 = vmatprep.subr.mxu0 %v8001_v12  ;;  %3115 = vmatprep.subr.mxu1 %v8004_v14 }
 0xae4   : > { %3045 = vmatpush1.msra.mxu0 %v8007_v16  ;;  %3116 = vmatpush1.msra.mxu1 %v8010_v19 }
 0xae5   : > { %3046 = vmatprep.subr.mxu0 %v8013_v20  ;;  %3117 = vmatprep.subr.mxu1 %v8016_v22 }
 0xae6   : > { %3047 = vmatpush1.msra.mxu0 %v8019_v62  ;;  %3118 = vmatpush1.msra.mxu1 %v8022_v1 }
 0xae7   : > { %3048 = vmatprep.subr.mxu0 %v8025_v63  ;;  %3119 = vmatprep.subr.mxu1 %v8028_v55 }
 0xae8   : > { %3049 = vmatpush1.msra.mxu0 %v8031_v2  ;;  %3120 = vmatpush1.msra.mxu1 %v8034_v58 }
 0xae9   : > { %3050 = vmatprep.subr.mxu0 %v8037_v52  ;;  %3121 = vmatprep.subr.mxu1 %v8040_v32 }
 0xaea   : > { %3051 = vmatpush1.msra.mxu0 %v8043_v34  ;;  %3122 = vmatpush1.msra.mxu1 %v8046_v28 }
 0xaeb   : > { %3052 = vmatprep.subr.mxu0 %v8049_v56  ;;  %3123 = vmatprep.subr.mxu1 %v8052_v59  ;;  %v9615_v59 = vld [vmem:[#allocation36_spill] sm:$0xff] }
 0xaec   : > { %3053 = vmatpush1.msra.mxu0 %v8055_v36  ;;  %3124 = vmatpush1.msra.mxu1 %v8058_v38  ;;  %v8441_v38 = vld [vmem:[#allocation2 + $0x10] sm:$0xff]  ;;  %v8451_v36 = vld [vmem:[#allocation2] sm:$0xff] }
 0xaed   : > { %3054 = vmatprep.subr.mxu0 %v8061_v40  ;;  %3125 = vmatprep.subr.mxu1 %v8064_v42  ;;  %v8079_v40 = vld [vmem:[#allocation12 + $0xe0] sm:$0xff]  ;;  %v8082_v42 = vld [vmem:[#allocation12 + $0xf0] sm:$0xff]  ;;  %9612 = vst [vmem:[#allocation167_spill] sm:$0xff] %v8441_v38  ;;  %9614 = vst [vmem:[#allocation169_spill] sm:$0xff] %v8451_v36 }
 0xaee   : > { %3055 = vmatpush1.msra.mxu0 %v8067_v44  ;;  %3126 = vmatpush1.msra.mxu1 %v8070_v47  ;;  %9505 = vst [vmem:[#allocation60_spill] sm:$0xff] %v8079_v40  ;;  %9506 = vst [vmem:[#allocation61_spill] sm:$0xff] %v8082_v42  ;;  %v8085_v44 = vld [vmem:[#allocation12 + $0xc8] sm:$0xff]  ;;  %v8088_v47 = vld [vmem:[#allocation12 + $0xd8] sm:$0xff] }
 0xaef   : > { %3056 = vmatprep.subr.mxu0 %v8073_v4  ;;  %3127 = vmatprep.subr.mxu1 %v8076_v31  ;;  %9507 = vst [vmem:[#allocation62_spill] sm:$0xff] %v8085_v44  ;;  %9508 = vst [vmem:[#allocation63_spill] sm:$0xff] %v8088_v47  ;;  %v8091_v4 = vld [vmem:[#allocation12 + $0xc0] sm:$0xff]  ;;  %v8094_v31 = vld [vmem:[#allocation12 + $0xd0] sm:$0xff] }
 0xaf0   : > { %3057 = vmatpush1.msra.mxu0 %v8079_v40  ;;  %3128 = vmatpush1.msra.mxu1 %v8082_v42  ;;  %9509 = vst [vmem:[#allocation64_spill] sm:$0xff] %v8091_v4  ;;  %9510 = vst [vmem:[#allocation65_spill] sm:$0xff] %v8094_v31  ;;  %v8097_v40 = vld [vmem:[#allocation12 + $0xa8] sm:$0xff]  ;;  %v8100_v42 = vld [vmem:[#allocation12 + $0xb8] sm:$0xff] }
 0xaf1   : > { %3058 = vmatprep.subr.mxu0 %v8085_v44  ;;  %3129 = vmatprep.subr.mxu1 %v8088_v47  ;;  %9511 = vst [vmem:[#allocation66_spill] sm:$0xff] %v8097_v40  ;;  %9512 = vst [vmem:[#allocation67_spill] sm:$0xff] %v8100_v42  ;;  %v8103_v44 = vld [vmem:[#allocation12 + $0xa0] sm:$0xff]  ;;  %v8106_v47 = vld [vmem:[#allocation12 + $0xb0] sm:$0xff] }
 0xaf2   : > { %3059 = vmatpush1.msra.mxu0 %v8091_v4  ;;  %3130 = vmatpush1.msra.mxu1 %v8094_v31  ;;  %9513 = vst [vmem:[#allocation68_spill] sm:$0xff] %v8103_v44  ;;  %9514 = vst [vmem:[#allocation69_spill] sm:$0xff] %v8106_v47  ;;  %v8109_v4 = vld [vmem:[#allocation12 + $0x88] sm:$0xff]  ;;  %v8112_v31 = vld [vmem:[#allocation12 + $0x98] sm:$0xff] }
 0xaf3   : > { %3060 = vmatprep.subr.mxu0 %v8097_v40  ;;  %3131 = vmatprep.subr.mxu1 %v8100_v42  ;;  %9515 = vst [vmem:[#allocation70_spill] sm:$0xff] %v8109_v4  ;;  %9516 = vst [vmem:[#allocation71_spill] sm:$0xff] %v8112_v31  ;;  %v8115_v40 = vld [vmem:[#allocation12 + $0x80] sm:$0xff]  ;;  %v8118_v42 = vld [vmem:[#allocation12 + $0x90] sm:$0xff] }
 0xaf4   : > { %3061 = vmatpush1.msra.mxu0 %v8103_v44  ;;  %3132 = vmatpush1.msra.mxu1 %v8106_v47  ;;  %9517 = vst [vmem:[#allocation72_spill] sm:$0xff] %v8115_v40  ;;  %9518 = vst [vmem:[#allocation73_spill] sm:$0xff] %v8118_v42  ;;  %v8121_v44 = vld [vmem:[#allocation12 + $0x68] sm:$0xff]  ;;  %v8124_v47 = vld [vmem:[#allocation12 + $0x78] sm:$0xff] }
 0xaf5   : > { %3062 = vmatprep.subr.mxu0 %v8109_v4  ;;  %3133 = vmatprep.subr.mxu1 %v8112_v31  ;;  %9519 = vst [vmem:[#allocation74_spill] sm:$0xff] %v8121_v44  ;;  %9520 = vst [vmem:[#allocation75_spill] sm:$0xff] %v8124_v47  ;;  %v8127_v4 = vld [vmem:[#allocation12 + $0x60] sm:$0xff]  ;;  %v8130_v31 = vld [vmem:[#allocation12 + $0x70] sm:$0xff] }
 0xaf6   : > { %3063 = vmatpush1.msra.mxu0 %v8115_v40  ;;  %3134 = vmatpush1.msra.mxu1 %v8118_v42  ;;  %9521 = vst [vmem:[#allocation76_spill] sm:$0xff] %v8127_v4  ;;  %9522 = vst [vmem:[#allocation77_spill] sm:$0xff] %v8130_v31  ;;  %v8133_v40 = vld [vmem:[#allocation12 + $0x48] sm:$0xff]  ;;  %v8136_v42 = vld [vmem:[#allocation12 + $0x58] sm:$0xff] }
 0xaf7   : > { %3064 = vmatprep.subr.mxu0 %v8121_v44  ;;  %3135 = vmatprep.subr.mxu1 %v8124_v47  ;;  %9523 = vst [vmem:[#allocation78_spill] sm:$0xff] %v8133_v40  ;;  %9524 = vst [vmem:[#allocation79_spill] sm:$0xff] %v8136_v42  ;;  %v8139_v44 = vld [vmem:[#allocation12 + $0x40] sm:$0xff]  ;;  %v8142_v47 = vld [vmem:[#allocation12 + $0x50] sm:$0xff] }
 0xaf8   : > { %3065 = vmatpush1.msra.mxu0 %v8127_v4  ;;  %3136 = vmatpush1.msra.mxu1 %v8130_v31  ;;  %9525 = vst [vmem:[#allocation80_spill] sm:$0xff] %v8139_v44  ;;  %9526 = vst [vmem:[#allocation81_spill] sm:$0xff] %v8142_v47  ;;  %v8145_v4 = vld [vmem:[#allocation12 + $0x28] sm:$0xff]  ;;  %v8148_v31 = vld [vmem:[#allocation12 + $0x38] sm:$0xff] }
 0xaf9   : > { %3066 = vmatprep.subr.mxu0 %v8133_v40  ;;  %3137 = vmatprep.subr.mxu1 %v8136_v42  ;;  %9527 = vst [vmem:[#allocation82_spill] sm:$0xff] %v8145_v4  ;;  %9528 = vst [vmem:[#allocation83_spill] sm:$0xff] %v8148_v31  ;;  %v8151_v40 = vld [vmem:[#allocation12 + $0x20] sm:$0xff]  ;;  %v8154_v42 = vld [vmem:[#allocation12 + $0x30] sm:$0xff] }
 0xafa   : > { %3067 = vmatpush1.msra.mxu0 %v8139_v44  ;;  %3138 = vmatpush1.msra.mxu1 %v8142_v47  ;;  %9529 = vst [vmem:[#allocation84_spill] sm:$0xff] %v8151_v40  ;;  %9530 = vst [vmem:[#allocation85_spill] sm:$0xff] %v8154_v42  ;;  %v8157_v44 = vld [vmem:[#allocation12 + $0x8] sm:$0xff]  ;;  %v8160_v47 = vld [vmem:[#allocation12 + $0x18] sm:$0xff] }
 0xafb   : > { %3068 = vmatprep.subr.mxu0 %v8145_v4  ;;  %3139 = vmatprep.subr.mxu1 %v8148_v31  ;;  %9531 = vst [vmem:[#allocation86_spill] sm:$0xff] %v8157_v44  ;;  %9532 = vst [vmem:[#allocation87_spill] sm:$0xff] %v8160_v47  ;;  %v8163_v4 = vld [vmem:[#allocation12] sm:$0xff]  ;;  %v8167_v31 = vld [vmem:[#allocation12 + $0x10] sm:$0xff] }
 0xafc   : > { %3069 = vmatpush1.msra.mxu0 %v8151_v40  ;;  %3140 = vmatpush1.msra.mxu1 %v8154_v42  ;;  %9533 = vst [vmem:[#allocation88_spill] sm:$0xff] %v8163_v4  ;;  %9534 = vst [vmem:[#allocation89_spill] sm:$0xff] %v8167_v31  ;;  %v8182_v42 = vld [vmem:[#allocation15 + $0x1f0] sm:$0xff]  ;;  %v8188_v40 = vld [vmem:[#allocation15 + $0x1d8] sm:$0xff] }
 0xafd   : > { %3070 = vmatprep.subr.mxu0 %v8157_v44  ;;  %3141 = vmatprep.subr.mxu1 %v8160_v47  ;;  %v8173_v44 = vld [vmem:[#allocation15 + $0x1e8] sm:$0xff]  ;;  %v8176_v47 = vld [vmem:[#allocation15 + $0x1f8] sm:$0xff]  ;;  %9538 = vst [vmem:[#allocation93_spill] sm:$0xff] %v8182_v42  ;;  %9540 = vst [vmem:[#allocation95_spill] sm:$0xff] %v8188_v40 }
 0xafe   : > { %3071 = vmatpush1.msra.mxu0 %v8163_v4  ;;  %3104 = vmatprep.mubr.f32.mxu0 %v9257_v33  ;;  %9535 = vst [vmem:[#allocation90_spill] sm:$0xff] %v8173_v44  ;;  %9536 = vst [vmem:[#allocation91_spill] sm:$0xff] %v8176_v47  ;;  %v8179_v4 = vld [vmem:[#allocation15 + $0x1e0] sm:$0xff] }
 0xaff   : > { %3142 = vmatpush1.msra.mxu1 %v8167_v31  ;;  %3175 = vmatprep.mubr.f32.mxu1 %v9257_v33  ;;  %9537 = vst [vmem:[#allocation92_spill] sm:$0xff] %v8179_v4  ;;  %v8185_v31 = vld [vmem:[#allocation15 + $0x1c8] sm:$0xff] }
 0xb00   : > { %3105 = vmatmul.mubr.f32.vlgmr.msra.gmra.mxu0 %v7863_v0  ;;  %3176 = vmatmul.mubr.f32.vlgmr.msra.gmra.mxu1 %v7863_v0  ;;  %9539 = vst [vmem:[#allocation94_spill] sm:$0xff] %v8185_v31 }
 0xb01   : > { %3182 = vmatprep.subr.mxu0 %v8173_v44  ;;  %3253 = vmatprep.subr.mxu1 %v8176_v47  ;;  %v8191_v44 = vld [vmem:[#allocation15 + $0x1c0] sm:$0xff]  ;;  %v8194_v47 = vld [vmem:[#allocation15 + $0x1d0] sm:$0xff] }
 0xb02   : > { %3183 = vmatpush1.msra.mxu0 %v8179_v4  ;;  %3254 = vmatpush1.msra.mxu1 %v8182_v42  ;;  %9541 = vst [vmem:[#allocation96_spill] sm:$0xff] %v8191_v44  ;;  %9542 = vst [vmem:[#allocation97_spill] sm:$0xff] %v8194_v47  ;;  %v8197_v4 = vld [vmem:[#allocation15 + $0x1a8] sm:$0xff]  ;;  %v8200_v42 = vld [vmem:[#allocation15 + $0x1b8] sm:$0xff] }
 0xb03   : > { %3184 = vmatprep.subr.mxu0 %v8185_v31  ;;  %3255 = vmatprep.subr.mxu1 %v8188_v40  ;;  %9543 = vst [vmem:[#allocation98_spill] sm:$0xff] %v8197_v4  ;;  %9544 = vst [vmem:[#allocation99_spill] sm:$0xff] %v8200_v42  ;;  %v8203_v31 = vld [vmem:[#allocation15 + $0x1a0] sm:$0xff]  ;;  %v8206_v40 = vld [vmem:[#allocation15 + $0x1b0] sm:$0xff] }
 0xb04   : > { %3185 = vmatpush1.msra.mxu0 %v8191_v44  ;;  %3256 = vmatpush1.msra.mxu1 %v8194_v47  ;;  %9545 = vst [vmem:[#allocation100_spill] sm:$0xff] %v8203_v31  ;;  %9546 = vst [vmem:[#allocation101_spill] sm:$0xff] %v8206_v40  ;;  %v8209_v44 = vld [vmem:[#allocation15 + $0x188] sm:$0xff]  ;;  %v8212_v47 = vld [vmem:[#allocation15 + $0x198] sm:$0xff] }
 0xb05   : > { %3186 = vmatprep.subr.mxu0 %v8197_v4  ;;  %3257 = vmatprep.subr.mxu1 %v8200_v42  ;;  %9547 = vst [vmem:[#allocation102_spill] sm:$0xff] %v8209_v44  ;;  %9548 = vst [vmem:[#allocation103_spill] sm:$0xff] %v8212_v47  ;;  %v8215_v4 = vld [vmem:[#allocation15 + $0x180] sm:$0xff]  ;;  %v8218_v42 = vld [vmem:[#allocation15 + $0x190] sm:$0xff] }
 0xb06   : > { %3187 = vmatpush1.msra.mxu0 %v8203_v31  ;;  %3258 = vmatpush1.msra.mxu1 %v8206_v40  ;;  %9549 = vst [vmem:[#allocation104_spill] sm:$0xff] %v8215_v4  ;;  %9550 = vst [vmem:[#allocation105_spill] sm:$0xff] %v8218_v42  ;;  %v8221_v31 = vld [vmem:[#allocation15 + $0x168] sm:$0xff]  ;;  %v8224_v40 = vld [vmem:[#allocation15 + $0x178] sm:$0xff] }
 0xb07   : > { %3188 = vmatprep.subr.mxu0 %v8209_v44  ;;  %3259 = vmatprep.subr.mxu1 %v8212_v47  ;;  %9551 = vst [vmem:[#allocation106_spill] sm:$0xff] %v8221_v31  ;;  %9552 = vst [vmem:[#allocation107_spill] sm:$0xff] %v8224_v40  ;;  %v8227_v44 = vld [vmem:[#allocation15 + $0x160] sm:$0xff]  ;;  %v8230_v47 = vld [vmem:[#allocation15 + $0x170] sm:$0xff] }
 0xb08   : > { %3189 = vmatpush1.msra.mxu0 %v8215_v4  ;;  %3260 = vmatpush1.msra.mxu1 %v8218_v42  ;;  %9553 = vst [vmem:[#allocation108_spill] sm:$0xff] %v8227_v44  ;;  %9554 = vst [vmem:[#allocation109_spill] sm:$0xff] %v8230_v47  ;;  %v8233_v4 = vld [vmem:[#allocation15 + $0x148] sm:$0xff]  ;;  %v8236_v42 = vld [vmem:[#allocation15 + $0x158] sm:$0xff] }
 0xb09   : > { %3190 = vmatprep.subr.mxu0 %v8221_v31  ;;  %3261 = vmatprep.subr.mxu1 %v8224_v40  ;;  %9555 = vst [vmem:[#allocation110_spill] sm:$0xff] %v8233_v4  ;;  %9556 = vst [vmem:[#allocation111_spill] sm:$0xff] %v8236_v42  ;;  %v8239_v31 = vld [vmem:[#allocation15 + $0x140] sm:$0xff]  ;;  %v8242_v40 = vld [vmem:[#allocation15 + $0x150] sm:$0xff] }
 0xb0a   : > { %3191 = vmatpush1.msra.mxu0 %v8227_v44  ;;  %3262 = vmatpush1.msra.mxu1 %v8230_v47  ;;  %9557 = vst [vmem:[#allocation112_spill] sm:$0xff] %v8239_v31  ;;  %9558 = vst [vmem:[#allocation113_spill] sm:$0xff] %v8242_v40  ;;  %v8245_v44 = vld [vmem:[#allocation15 + $0x128] sm:$0xff]  ;;  %v8248_v47 = vld [vmem:[#allocation15 + $0x138] sm:$0xff] }
 0xb0b   : > { %3192 = vmatprep.subr.mxu0 %v8233_v4  ;;  %3263 = vmatprep.subr.mxu1 %v8236_v42  ;;  %9559 = vst [vmem:[#allocation114_spill] sm:$0xff] %v8245_v44  ;;  %9560 = vst [vmem:[#allocation115_spill] sm:$0xff] %v8248_v47  ;;  %v8251_v4 = vld [vmem:[#allocation15 + $0x120] sm:$0xff]  ;;  %v8254_v42 = vld [vmem:[#allocation15 + $0x130] sm:$0xff] }
 0xb0c   : > { %3193 = vmatpush1.msra.mxu0 %v8239_v31  ;;  %3264 = vmatpush1.msra.mxu1 %v8242_v40  ;;  %9561 = vst [vmem:[#allocation116_spill] sm:$0xff] %v8251_v4  ;;  %9562 = vst [vmem:[#allocation117_spill] sm:$0xff] %v8254_v42  ;;  %v8257_v31 = vld [vmem:[#allocation15 + $0x108] sm:$0xff]  ;;  %v8260_v40 = vld [vmem:[#allocation15 + $0x118] sm:$0xff] }
 0xb0d   : > { %3194 = vmatprep.subr.mxu0 %v8245_v44  ;;  %3265 = vmatprep.subr.mxu1 %v8248_v47  ;;  %9563 = vst [vmem:[#allocation118_spill] sm:$0xff] %v8257_v31  ;;  %9564 = vst [vmem:[#allocation119_spill] sm:$0xff] %v8260_v40  ;;  %v8263_v44 = vld [vmem:[#allocation15 + $0x100] sm:$0xff]  ;;  %v8266_v47 = vld [vmem:[#allocation15 + $0x110] sm:$0xff] }
 0xb0e   : > { %3195 = vmatpush1.msra.mxu0 %v8251_v4  ;;  %3266 = vmatpush1.msra.mxu1 %v8254_v42  ;;  %9565 = vst [vmem:[#allocation120_spill] sm:$0xff] %v8263_v44  ;;  %9566 = vst [vmem:[#allocation121_spill] sm:$0xff] %v8266_v47  ;;  %v8269_v4 = vld [vmem:[#allocation15 + $0xe8] sm:$0xff]  ;;  %v8272_v42 = vld [vmem:[#allocation15 + $0xf8] sm:$0xff] }
 0xb0f   : > { %3196 = vmatprep.subr.mxu0 %v8257_v31  ;;  %3267 = vmatprep.subr.mxu1 %v8260_v40  ;;  %9567 = vst [vmem:[#allocation122_spill] sm:$0xff] %v8269_v4  ;;  %9568 = vst [vmem:[#allocation123_spill] sm:$0xff] %v8272_v42  ;;  %v8275_v31 = vld [vmem:[#allocation15 + $0xe0] sm:$0xff]  ;;  %v8278_v40 = vld [vmem:[#allocation15 + $0xf0] sm:$0xff] }
 0xb10   : > { %3197 = vmatpush1.msra.mxu0 %v8263_v44  ;;  %3268 = vmatpush1.msra.mxu1 %v8266_v47  ;;  %9569 = vst [vmem:[#allocation124_spill] sm:$0xff] %v8275_v31  ;;  %9570 = vst [vmem:[#allocation125_spill] sm:$0xff] %v8278_v40  ;;  %v8281_v44 = vld [vmem:[#allocation15 + $0xc8] sm:$0xff]  ;;  %v8284_v47 = vld [vmem:[#allocation15 + $0xd8] sm:$0xff] }
 0xb11   : > { %3198 = vmatprep.subr.mxu0 %v8269_v4  ;;  %3269 = vmatprep.subr.mxu1 %v8272_v42  ;;  %9571 = vst [vmem:[#allocation126_spill] sm:$0xff] %v8281_v44  ;;  %9572 = vst [vmem:[#allocation127_spill] sm:$0xff] %v8284_v47  ;;  %v8287_v4 = vld [vmem:[#allocation15 + $0xc0] sm:$0xff]  ;;  %v8290_v42 = vld [vmem:[#allocation15 + $0xd0] sm:$0xff] }
 0xb12   : > { %3199 = vmatpush1.msra.mxu0 %v8275_v31  ;;  %3270 = vmatpush1.msra.mxu1 %v8278_v40  ;;  %9573 = vst [vmem:[#allocation128_spill] sm:$0xff] %v8287_v4  ;;  %9574 = vst [vmem:[#allocation129_spill] sm:$0xff] %v8290_v42  ;;  %v8293_v31 = vld [vmem:[#allocation15 + $0xa8] sm:$0xff]  ;;  %v8296_v40 = vld [vmem:[#allocation15 + $0xb8] sm:$0xff] }
 0xb13   : > { %3200 = vmatprep.subr.mxu0 %v8281_v44  ;;  %3271 = vmatprep.subr.mxu1 %v8284_v47  ;;  %9575 = vst [vmem:[#allocation130_spill] sm:$0xff] %v8293_v31  ;;  %9576 = vst [vmem:[#allocation131_spill] sm:$0xff] %v8296_v40  ;;  %v8299_v44 = vld [vmem:[#allocation15 + $0xa0] sm:$0xff]  ;;  %v8302_v47 = vld [vmem:[#allocation15 + $0xb0] sm:$0xff] }
 0xb14   : > { %3201 = vmatpush1.msra.mxu0 %v8287_v4  ;;  %3272 = vmatpush1.msra.mxu1 %v8290_v42  ;;  %9577 = vst [vmem:[#allocation132_spill] sm:$0xff] %v8299_v44  ;;  %9578 = vst [vmem:[#allocation133_spill] sm:$0xff] %v8302_v47  ;;  %v8305_v4 = vld [vmem:[#allocation15 + $0x88] sm:$0xff]  ;;  %v8308_v42 = vld [vmem:[#allocation15 + $0x98] sm:$0xff] }
 0xb15   : > { %3202 = vmatprep.subr.mxu0 %v8293_v31  ;;  %3273 = vmatprep.subr.mxu1 %v8296_v40  ;;  %9579 = vst [vmem:[#allocation134_spill] sm:$0xff] %v8305_v4  ;;  %9580 = vst [vmem:[#allocation135_spill] sm:$0xff] %v8308_v42  ;;  %v8311_v31 = vld [vmem:[#allocation15 + $0x80] sm:$0xff]  ;;  %v8314_v40 = vld [vmem:[#allocation15 + $0x90] sm:$0xff] }
 0xb16   : > { %3203 = vmatpush1.msra.mxu0 %v8299_v44  ;;  %3274 = vmatpush1.msra.mxu1 %v8302_v47  ;;  %9581 = vst [vmem:[#allocation136_spill] sm:$0xff] %v8311_v31  ;;  %9582 = vst [vmem:[#allocation137_spill] sm:$0xff] %v8314_v40  ;;  %v8317_v44 = vld [vmem:[#allocation15 + $0x68] sm:$0xff]  ;;  %v8320_v47 = vld [vmem:[#allocation15 + $0x78] sm:$0xff] }
 0xb17   : > { %3204 = vmatprep.subr.mxu0 %v8305_v4  ;;  %3275 = vmatprep.subr.mxu1 %v8308_v42  ;;  %9583 = vst [vmem:[#allocation138_spill] sm:$0xff] %v8317_v44  ;;  %9584 = vst [vmem:[#allocation139_spill] sm:$0xff] %v8320_v47  ;;  %v8323_v4 = vld [vmem:[#allocation15 + $0x60] sm:$0xff]  ;;  %v8326_v42 = vld [vmem:[#allocation15 + $0x70] sm:$0xff] }
 0xb18   : > { %3205 = vmatpush1.msra.mxu0 %v8311_v31  ;;  %3276 = vmatpush1.msra.mxu1 %v8314_v40  ;;  %9585 = vst [vmem:[#allocation140_spill] sm:$0xff] %v8323_v4  ;;  %9586 = vst [vmem:[#allocation141_spill] sm:$0xff] %v8326_v42  ;;  %v8329_v31 = vld [vmem:[#allocation15 + $0x48] sm:$0xff]  ;;  %v8332_v40 = vld [vmem:[#allocation15 + $0x58] sm:$0xff] }
 0xb19   : > { %3206 = vmatprep.subr.mxu0 %v8317_v44  ;;  %3277 = vmatprep.subr.mxu1 %v8320_v47  ;;  %9587 = vst [vmem:[#allocation142_spill] sm:$0xff] %v8329_v31  ;;  %9588 = vst [vmem:[#allocation143_spill] sm:$0xff] %v8332_v40  ;;  %v8335_v44 = vld [vmem:[#allocation15 + $0x40] sm:$0xff]  ;;  %v8338_v47 = vld [vmem:[#allocation15 + $0x50] sm:$0xff] }
 0xb1a   : > { %3207 = vmatpush1.msra.mxu0 %v8323_v4  ;;  %3278 = vmatpush1.msra.mxu1 %v8326_v42  ;;  %9589 = vst [vmem:[#allocation144_spill] sm:$0xff] %v8335_v44  ;;  %9590 = vst [vmem:[#allocation145_spill] sm:$0xff] %v8338_v47  ;;  %v8341_v4 = vld [vmem:[#allocation15 + $0x28] sm:$0xff]  ;;  %v8344_v42 = vld [vmem:[#allocation15 + $0x38] sm:$0xff] }
 0xb1b   : > { %3208 = vmatprep.subr.mxu0 %v8329_v31  ;;  %3279 = vmatprep.subr.mxu1 %v8332_v40  ;;  %9591 = vst [vmem:[#allocation146_spill] sm:$0xff] %v8341_v4  ;;  %9592 = vst [vmem:[#allocation147_spill] sm:$0xff] %v8344_v42  ;;  %v8347_v31 = vld [vmem:[#allocation15 + $0x20] sm:$0xff]  ;;  %v8350_v40 = vld [vmem:[#allocation15 + $0x30] sm:$0xff] }
 0xb1c   : > { %3209 = vmatpush1.msra.mxu0 %v8335_v44  ;;  %3280 = vmatpush1.msra.mxu1 %v8338_v47  ;;  %9593 = vst [vmem:[#allocation148_spill] sm:$0xff] %v8347_v31  ;;  %9594 = vst [vmem:[#allocation149_spill] sm:$0xff] %v8350_v40  ;;  %v8353_v44 = vld [vmem:[#allocation15 + $0x8] sm:$0xff]  ;;  %v8356_v47 = vld [vmem:[#allocation15 + $0x18] sm:$0xff] }
 0xb1d   : > { %3210 = vmatprep.subr.mxu0 %v8341_v4  ;;  %3281 = vmatprep.subr.mxu1 %v8344_v42  ;;  %9595 = vst [vmem:[#allocation150_spill] sm:$0xff] %v8353_v44  ;;  %9596 = vst [vmem:[#allocation151_spill] sm:$0xff] %v8356_v47  ;;  %v8359_v4 = vld [vmem:[#allocation15] sm:$0xff]  ;;  %v8363_v42 = vld [vmem:[#allocation15 + $0x10] sm:$0xff] }
 0xb1e   : > { %3211 = vmatpush1.msra.mxu0 %v8347_v31  ;;  %3282 = vmatpush1.msra.mxu1 %v8350_v40  ;;  %9597 = vst [vmem:[#allocation152_spill] sm:$0xff] %v8359_v4  ;;  %9598 = vst [vmem:[#allocation153_spill] sm:$0xff] %v8363_v42  ;;  %v8421_v40 = vld [vmem:[#allocation2 + $0x30] sm:$0xff]  ;;  %v8431_v31 = vld [vmem:[#allocation2 + $0x20] sm:$0xff] }
 0xb1f   : > { %3212 = vmatprep.subr.mxu0 %v8353_v44  ;;  %3283 = vmatprep.subr.mxu1 %v8356_v47  ;;  %v8372_v47 = vld [vmem:[#allocation2 + $0x78] sm:$0xff]  ;;  %v8411_v44 = vld [vmem:[#allocation2 + $0x40] sm:$0xff]  ;;  %9608 = vst [vmem:[#allocation163_spill] sm:$0xff] %v8421_v40  ;;  %9610 = vst [vmem:[#allocation165_spill] sm:$0xff] %v8431_v31 }
 0xb20   : > { %3213 = vmatpush1.msra.mxu0 %v8359_v4  ;;  %3246 = vmatprep.mubr.f32.mxu0 %v9257_v33  ;;  %9599 = vst [vmem:[#allocation154_spill] sm:$0xff] %v8372_v47  ;;  %v8401_v4 = vld [vmem:[#allocation2 + $0x50] sm:$0xff]  ;;  %9606 = vst [vmem:[#allocation161_spill] sm:$0xff] %v8411_v44 }
 0xb21   : > { %3284 = vmatpush1.msra.mxu1 %v8363_v42  ;;  %3317 = vmatprep.mubr.f32.mxu1 %v9257_v33  ;;  %v8387_v42 = vld [vmem:[#allocation2 + $0x68] sm:$0xff]  ;;  %9604 = vst [vmem:[#allocation159_spill] sm:$0xff] %v8401_v4 }
 0xb22   : > { %3247 = vmatmul.mubr.f32.vlgmr.msra.gmra.mxu0 %v7863_v0  ;;  %3318 = vmatmul.mubr.f32.vlgmr.msra.gmra.mxu1 %v7863_v0  ;;  %v8381_v0 = vld [vmem:[#allocation2 + $0x70] sm:$0xff]  ;;  %9601 = vst [vmem:[#allocation156_spill] sm:$0xff] %v8387_v42 }
 0xb23   : > { %5223 = vmatprep.subr.mxu0 %v9257_v33  ;;  %5255 = vmatprep.mubr.msk.f32.mxu0 %vm6416_vm0, %v9257_v33  ;;  %9600 = vst [vmem:[#allocation155_spill] sm:$0xff] %v8381_v0 }
 0xb24   : > { %5224 = vmatpush3.xpose.msra.mxu0 %v8372_v47  ;;  %5258 = vmatprep.subr.mxu1 %v9257_v33 }
 0xb25   : > { %5225 = vmatprep.subr.mxu0 %v9257_v33  ;;  %5259 = vmatpush3.msra.mxu1 %v8372_v47  ;;  %v8391_v47 = vld [vmem:[#allocation2 + $0x60] sm:$0xff] }
 0xb26   : > { %5260 = vmatprep.subr.mxu1 %v9257_v33  ;;  %5290 = vmatprep.mubr.msk.f32.mxu1 %vm6416_vm0, %v9257_v33  ;;  %9602 = vst [vmem:[#allocation157_spill] sm:$0xff] %v8391_v47 }
 0xb27   : > { %5261 = vmatpush3.msra.mxu1 %v8381_v0 }
 0xb28   : > { %5226 = vmatpush3.xpose.msra.mxu0 %v8381_v0  ;;  %5262 = vmatprep.subr.mxu1 %v9257_v33  ;;  %v8397_v0 = vld [vmem:[#allocation2 + $0x58] sm:$0xff] }
 0xb29   : > { %5227 = vmatprep.subr.mxu0 %v9257_v33  ;;  %5263 = vmatpush3.msra.mxu1 %v8387_v42  ;;  %9603 = vst [vmem:[#allocation158_spill] sm:$0xff] %v8397_v0 }
 0xb2a   : > { %5264 = vmatprep.subr.mxu1 %v9257_v33 }
 0xb2b   : > { %5265 = vmatpush3.msra.mxu1 %v8391_v47 }
 0xb2c   : > { %5228 = vmatpush3.xpose.msra.mxu0 %v8387_v42  ;;  %5266 = vmatprep.subr.mxu1 %v9257_v33  ;;  %v8407_v42 = vld [vmem:[#allocation2 + $0x48] sm:$0xff] }
 0xb2d   : > { %5229 = vmatprep.subr.mxu0 %v9257_v33  ;;  %5267 = vmatpush3.msra.mxu1 %v8397_v0  ;;  %9605 = vst [vmem:[#allocation160_spill] sm:$0xff] %v8407_v42 }
 0xb2e   : > { %5268 = vmatprep.subr.mxu1 %v9257_v33 }
 0xb2f   : > { %5269 = vmatpush3.msra.mxu1 %v8401_v4 }
 0xb30   : > { %5230 = vmatpush3.xpose.msra.mxu0 %v8391_v47  ;;  %5270 = vmatprep.subr.mxu1 %v9257_v33  ;;  %v8417_v47 = vld [vmem:[#allocation2 + $0x38] sm:$0xff] }
 0xb31   : > { %5231 = vmatprep.subr.mxu0 %v9257_v33  ;;  %5271 = vmatpush3.msra.mxu1 %v8407_v42  ;;  %9607 = vst [vmem:[#allocation162_spill] sm:$0xff] %v8417_v47 }
 0xb32   : > { %5272 = vmatprep.subr.mxu1 %v9257_v33 }
 0xb33   : > { %5273 = vmatpush3.msra.mxu1 %v8411_v44 }
 0xb34   : > { %5232 = vmatpush3.xpose.msra.mxu0 %v8397_v0  ;;  %5274 = vmatprep.subr.mxu1 %v9257_v33  ;;  %v8427_v0 = vld [vmem:[#allocation2 + $0x28] sm:$0xff] }
 0xb35   : > { %5233 = vmatprep.subr.mxu0 %v9257_v33  ;;  %5275 = vmatpush3.msra.mxu1 %v8417_v47  ;;  %9609 = vst [vmem:[#allocation164_spill] sm:$0xff] %v8427_v0 }
 0xb36   : > { %5276 = vmatprep.subr.mxu1 %v9257_v33 }
 0xb37   : > { %5277 = vmatpush3.msra.mxu1 %v8421_v40 }
 0xb38   : > { %5234 = vmatpush3.xpose.msra.mxu0 %v8401_v4  ;;  %5278 = vmatprep.subr.mxu1 %v9257_v33  ;;  %v8437_v4 = vld [vmem:[#allocation2 + $0x18] sm:$0xff] }
 0xb39   : > { %5235 = vmatprep.subr.mxu0 %v9257_v33  ;;  %5279 = vmatpush3.msra.mxu1 %v8427_v0  ;;  %9611 = vst [vmem:[#allocation166_spill] sm:$0xff] %v8437_v4 }
 0xb3a   : > { %5280 = vmatprep.subr.mxu1 %v9257_v33 }
 0xb3b   : > { %5281 = vmatpush3.msra.mxu1 %v8431_v31 }
 0xb3c   : > { %5236 = vmatpush3.xpose.msra.mxu0 %v8407_v42  ;;  %5282 = vmatprep.subr.mxu1 %v9257_v33  ;;  %v8447_v42 = vld [vmem:[#allocation2 + $0x8] sm:$0xff] }
 0xb3d   : > { %5237 = vmatprep.subr.mxu0 %v9257_v33  ;;  %5283 = vmatpush3.msra.mxu1 %v8437_v4  ;;  %9613 = vst [vmem:[#allocation168_spill] sm:$0xff] %v8447_v42 }
 0xb3e   : > { %5284 = vmatprep.subr.mxu1 %v9257_v33 }
 0xb3f   : > { %5285 = vmatpush3.msra.mxu1 %v8441_v38 }
 0xb40   : > { %5238 = vmatpush3.xpose.msra.mxu0 %v8411_v44  ;;  %5286 = vmatprep.subr.mxu1 %v9257_v33 }
 0xb41   : > { %5239 = vmatprep.subr.mxu0 %v9257_v33  ;;  %5287 = vmatpush3.msra.mxu1 %v8447_v42 }
 0xb42   : > { %5288 = vmatprep.subr.mxu1 %v9257_v33 }
 0xb43   : > { %5289 = vmatpush3.msra.mxu1 %v8451_v36 }
 0xb44   : > { %5240 = vmatpush3.xpose.msra.mxu0 %v8417_v47  ;;  %3509 = vmatprep.subr.mxu1 %v9615_v59  ;;  %v9616_v59 = vld [vmem:[#allocation37_spill] sm:$0xff] }
 0xb45   : > { %5241 = vmatprep.subr.mxu0 %v9257_v33 }
 0xb48   : > { %5242 = vmatpush3.xpose.msra.mxu0 %v8421_v40 }
 0xb49   : > { %5243 = vmatprep.subr.mxu0 %v9257_v33 }
 0xb4c   : > { %5244 = vmatpush3.xpose.msra.mxu0 %v8427_v0 }
 0xb4d   : > { %5245 = vmatprep.subr.mxu0 %v9257_v33 }
 0xb50   : > { %5246 = vmatpush3.xpose.msra.mxu0 %v8431_v31 }
 0xb51   : > { %5247 = vmatprep.subr.mxu0 %v9257_v33 }
 0xb54   : > { %5248 = vmatpush3.xpose.msra.mxu0 %v8437_v4 }
 0xb55   : > { %5249 = vmatprep.subr.mxu0 %v9257_v33 }
 0xb58   : > { %5250 = vmatpush3.xpose.msra.mxu0 %v8441_v38 }
 0xb59   : > { %5251 = vmatprep.subr.mxu0 %v9257_v33 }
 0xb5c   : > { %5252 = vmatpush3.xpose.msra.mxu0 %v8447_v42 }
 0xb5d   : > { %5253 = vmatprep.subr.mxu0 %v9257_v33 }
 0xb60   : > { %5254 = vmatpush3.xpose.msra.mxu0 %v8451_v36 }
 0xb61   : > { %3580 = vmatprep.subr.mxu0 %v9616_v59 }
 0xb9f   : > { %v2964_v0 = vpop.f32.mrf.mxu0  ;;  %v3035_v31 = vpop.f32.mrf.mxu1 }
 0xba1   : > { %v2966_v40 = vpop.f32.mrf.mxu0  ;;  %v3037_v44 = vpop.f32.mrf.mxu1 }
 0xbc0   : > { %v3106_v47 = vpop.f32.mrf.mxu0  ;;  %v3177_v4 = vpop.f32.mrf.mxu1 }
 0xbc1   : > { %v3107_v28 = vadd.f32 %v3106_v47, %v2964_v0  ;;  %v3178_v20 = vadd.f32 %v3177_v4, %v3035_v31  ;;  %v5962_v4 = vld [vmem:[#allocation13 + $0x1d8] sm:$0xff]  ;;  %v5963_v31 = vld [vmem:[#allocation13 + $0x1d0] sm:$0xff] }
 0xbc2   : > { %v3108_v56 = vpop.f32.mrf.mxu0  ;;  %v3179_v32 = vpop.f32.mrf.mxu1 }
 0xbc3   : > { %v3109_v38 = vadd.f32 %v3108_v56, %v2966_v40  ;;  %v3180_v62 = vadd.f32 %v3179_v32, %v3037_v44  ;;  %v5961_v44 = vld [vmem:[#allocation13 + $0x1f0] sm:$0xff] }
 0xbe2   : > { %v3248_v34 = vpop.f32.mrf.mxu0  ;;  %v3319_v2 = vpop.f32.mrf.mxu1 }
 0xbe3   : > { %v3324_v52 = vadd.f32 %v3248_v34, %v3107_v28  ;;  %v3326_v56 = vadd.f32 %v3319_v2, %v3178_v20 }
 0xbe4   : > { %v3250_v58 = vpop.f32.mrf.mxu0  ;;  %v3321_v1 = vpop.f32.mrf.mxu1 }
 0xbe5   : > { %v3328_v42 = vadd.f32 %v3324_v52, %v7474_v17  ;;  %v3325_v55 = vadd.f32 %v3250_v58, %v3109_v38  ;;  %v3327_v22 = vadd.f32 %v3321_v1, %v3180_v62  ;;  %v3330_v28 = vadd.f32 %v3326_v56, %v7483_v13  ;;  %v5967_v56 = vld [vmem:[#allocation13 + $0x190] sm:$0xff] }
 0xbe7   : > { %v4654_v36 = vmul.f32 -1.442695, %v3328_v42  ;;  %v3329_v59 = vadd.f32 %v3325_v55, %v7476_v11  ;;  %v3331_v47 = vadd.f32 %v3327_v22, %v7480_v21 }
 0xbe9   : > { %5709 = vpow2.f32 %v4654_v36  ;;  %v4655_v63 = vmul.f32 -1.442695, %v3329_v59  ;;  %v4656_v40 = vmul.f32 -1.442695, %v3331_v47  ;;  %v5965_v59 = vld [vmem:[#allocation13 + $0x1b0] sm:$0xff]  ;;  %v5966_v47 = vld [vmem:[#allocation13 + $0x198] sm:$0xff] }
 0xbeb   : > { %5711 = vpow2.f32 %v4655_v63 }
 0xbec   : > { %5713 = vpow2.f32 %v4656_v40  ;;  %v5968_v40 = vld [vmem:[#allocation13 + $0x178] sm:$0xff] }
 0xbf6   : > { %v5710_v34 = vpop.eup %5709 }
 0xbf7   : > { %v3335_v52 = vadd.f32 1.0, %v5710_v34  ;;  %v5969_v34 = vld [vmem:[#allocation13 + $0x170] sm:$0xff] }
 0xbf8   : > { %v5712_v0 = vpop.eup %5711 }
 0xbf9   : > { %5715 = vrcp.f32 %v3335_v52  ;;  %v3341_v58 = vadd.f32 1.0, %v5712_v0  ;;  %v5714_v55 = vpop.eup %5713  ;;  %v5971_v52 = vld [vmem:[#allocation13 + $0x150] sm:$0xff]  ;;  %v5981_v0 = vld [vmem:[#allocation13 + $0x160] sm:$0xff] }
 0xbfa   : > { %5717 = vtanh.f32 %v3330_v28  ;;  %v3348_v62 = vadd.f32 1.0, %v5714_v55  ;;  %v5970_v28 = vld [vmem:[#allocation13 + $0x158] sm:$0xff]  ;;  %v5983_v55 = vld [vmem:[#allocation13 + $0x140] sm:$0xff] }
 0xbfb   : > { %5719 = vrcp.f32 %v3341_v58  ;;  %v5982_v58 = vld [vmem:[#allocation13 + $0x148] sm:$0xff] }
 0xbfc   : > { %5721 = vrcp.f32 %v3348_v62  ;;  %v5987_v62 = vld [vmem:[#allocation13 + $0x100] sm:$0xff] }
 0xc06   : > { %v5716_v36 = vpop.eup %5715 }
 0xc07   : > { %v5718_v32 = vpop.eup %5717 }
 0xc08   : > { %v5720_v63 = vpop.eup %5719  ;;  %v3352_v1 = vmul.f32 %v5718_v32, %v5716_v36  ;;  %v5984_v36 = vld [vmem:[#allocation13 + $0x128] sm:$0xff]  ;;  %v5985_v32 = vld [vmem:[#allocation13 + $0x120] sm:$0xff] }
 0xc09   : > { %v3351_v22 = vmul.f32 %v5720_v63, %v7860_v24  ;;  %v5722_v2 = vpop.eup %5721  ;;  %v5964_v24 = vld [vmem:[#allocation13 + $0x1b8] sm:$0xff]  ;;  %v5986_v63 = vld [vmem:[#allocation13 + $0x108] sm:$0xff] }
 0xc0b   : > { %v8476_v20 = vadd.f32 %v3352_v1, %v3351_v22  ;;  %v5988_v1 = vld [vmem:[#allocation13 + $0xe8] sm:$0xff]  ;;  %v5989_v22 = vld [vmem:[#allocation13 + $0xe0] sm:$0xff] }
 0xc0d   : > { %5723 = vtanh.f32 %v8476_v20 }
 0xc1a   : > { %v5724_v38 = vpop.eup %5723 }
 0xc1b   : > { %v8479_v42 = vmul.f32 %v5724_v38, %v5722_v2  ;;  %v5990_v2 = vld [vmem:[#allocation13 + $0xc8] sm:$0xff]  ;;  %v5991_v38 = vld [vmem:[#allocation13 + $0xc0] sm:$0xff] }
 0xc1d   : > { %5256 = vmatmul.mubr.f32.vlgmr.msra.gmra.mxu0 %v8479_v42 }
 0xc1e   : > { %3581 = vmatpush1.msra.mxu0 %v5961_v44  ;;  %3644 = vmatprep.mubr.f32.mxu0 %v9257_v33  ;;  %v5992_v44 = vld [vmem:[#allocation13 + $0xa8] sm:$0xff] }
 0xc1f   : > { %3582 = vmatprep.subr.mxu0 %v5962_v4  ;;  %v5993_v4 = vld [vmem:[#allocation13 + $0xa0] sm:$0xff] }
 0xc20   : > { %3583 = vmatpush1.msra.mxu0 %v5963_v31  ;;  %v5994_v31 = vld [vmem:[#allocation13 + $0x88] sm:$0xff] }
 0xc21   : > { %3584 = vmatprep.subr.mxu0 %v5964_v24  ;;  %v5995_v24 = vld [vmem:[#allocation13 + $0x80] sm:$0xff] }
 0xc22   : > { %3585 = vmatpush1.msra.mxu0 %v5965_v59  ;;  %v5996_v59 = vld [vmem:[#allocation13 + $0x68] sm:$0xff] }
 0xc23   : > { %3586 = vmatprep.subr.mxu0 %v5966_v47  ;;  %v5997_v47 = vld [vmem:[#allocation13 + $0x60] sm:$0xff] }
 0xc24   : > { %3587 = vmatpush1.msra.mxu0 %v5967_v56  ;;  %v5998_v56 = vld [vmem:[#allocation13 + $0x48] sm:$0xff] }
 0xc25   : > { %3588 = vmatprep.subr.mxu0 %v5968_v40  ;;  %v5999_v40 = vld [vmem:[#allocation13 + $0x40] sm:$0xff] }
 0xc26   : > { %3589 = vmatpush1.msra.mxu0 %v5969_v34  ;;  %v6000_v34 = vld [vmem:[#allocation13 + $0x28] sm:$0xff] }
 0xc27   : > { %3590 = vmatprep.subr.mxu0 %v5970_v28  ;;  %v6001_v28 = vld [vmem:[#allocation13 + $0x20] sm:$0xff] }
 0xc28   : > { %3591 = vmatpush1.msra.mxu0 %v5971_v52 }
 0xc29   : > { %3592 = vmatprep.subr.mxu0 %v7878_v41 }
 0xc2a   : > { %3593 = vmatpush1.msra.mxu0 %v7881_v35 }
 0xc2b   : > { %3594 = vmatprep.subr.mxu0 %v7884_v53 }
 0xc2c   : > { %3595 = vmatpush1.msra.mxu0 %v7887_v18 }
 0xc2d   : > { %3596 = vmatprep.subr.mxu0 %v7890_v29 }
 0xc2e   : > { %3597 = vmatpush1.msra.mxu0 %v7893_v39 }
 0xc2f   : > { %3598 = vmatprep.subr.mxu0 %v7896_v51 }
 0xc30   : > { %3599 = vmatpush1.msra.mxu0 %v7899_v9  ;;  %v8509_v9 = vld [vmem:[%s9339_s25] sm:$0xff] }
 0xc31   : > { %3600 = vmatprep.subr.mxu0 %v7902_v7 }
 0xc32   : > { %3601 = vmatpush1.msra.mxu0 %v7905_v43 }
 0xc33   : > { %3602 = vmatprep.subr.mxu0 %v7908_v6 }
 0xc34   : > { %3603 = vmatpush1.msra.mxu0 %v7911_v5 }
 0xc35   : > { %3604 = vmatprep.subr.mxu0 %v7914_v26 }
 0xc36   : > { %3605 = vmatpush1.msra.mxu0 %v7917_v30  ;;  %v5973_v30 = vld [vmem:[#allocation13 + $0x1e0] sm:$0xff] }
 0xc37   : > { %3606 = vmatprep.subr.mxu0 %v7920_v46  ;;  %v5974_v46 = vld [vmem:[#allocation13 + $0x1c8] sm:$0xff] }
 0xc38   : > { %3607 = vmatpush1.msra.mxu0 %v7923_v48  ;;  %v5975_v48 = vld [vmem:[#allocation13 + $0x1c0] sm:$0xff] }
 0xc39   : > { %3608 = vmatprep.subr.mxu0 %v7926_v45  ;;  %v5976_v45 = vld [vmem:[#allocation13 + $0x1a8] sm:$0xff] }
 0xc3a   : > { %3609 = vmatpush1.msra.mxu0 %v7929_v57  ;;  %v5977_v57 = vld [vmem:[#allocation13 + $0x1a0] sm:$0xff] }
 0xc3b   : > { %3610 = vmatprep.subr.mxu0 %v7932_v23  ;;  %v5978_v23 = vld [vmem:[#allocation13 + $0x188] sm:$0xff] }
 0xc3c   : > { %3611 = vmatpush1.msra.mxu0 %v7935_v60  ;;  %v5979_v60 = vld [vmem:[#allocation13 + $0x180] sm:$0xff] }
 0xc3d   : > { %3722 = vmatprep.subr.mxu0 %v7938_v61  ;;  %v5980_v61 = vld [vmem:[#allocation13 + $0x168] sm:$0xff] }
 0xcdd   : > { %v3422_v41 = vpop.f32.mrf.mxu0 }
 0xcde   : > { %v3426_v35 = vsel %vm2203_vm1, %v3422_v41, -1e+30 }
 0xcdf   : > { %3427 = vmax.xlane.f32.xlu0 %v3426_v35  ;;  %v5257_v53 = vpop.f32.mrf.mxu0 }
 0xce0   : > { %v9631_v53 = vld [vmem:[#allocation52_spill] sm:$0xff] }
 0xd68   : > { %v3428_v18 = vpop.xlane.xlu0 %3427 }
 0xd69   : > { %v3429_v29 = vsub.f32 %v3426_v35, %v3428_v18  ;;  %v9630_v35 = vld [vmem:[#allocation51_spill] sm:$0xff]  ;;  %v9632_v18 = vld [vmem:[#allocation53_spill] sm:$0xff] }
 0xd6b   : > { %v3430_v39 = vmul.f32 1.442695, %v3429_v29  ;;  %v9633_v29 = vld [vmem:[#allocation54_spill] sm:$0xff] }
 0xd6d   : > { %5725 = vpow2.f32 %v3430_v39  ;;  %v9634_v39 = vld [vmem:[#allocation55_spill] sm:$0xff] }
 0xd7a   : > { %v5726_v51 = vpop.eup %5725 }
 0xd7b   : > { %v3432_v7 = vmul.f32 %v8509_v9, %v5726_v51  ;;  %v9635_v51 = vld [vmem:[#allocation56_spill] sm:$0xff] }
 0xd7d   : > { %3433 = vadd.xlane.f32.xlu1 %v3432_v7 }
 0xe06   : > { %v3434_v43 = vpop.xlane.xlu1 %3433 }
 0xe07   : > { %vm3435_vm4 = vcmp.gt.f32.partialorder %v3434_v43, 0.0 }
 0xe08   : > { %v3436_v6 = vsel %vm3435_vm4, %v3434_v43, 1.0  ;;  %v9637_v43 = vld [vmem:[#allocation58_spill] sm:$0xff] }
 0xe09   : > { %5727 = vrcp.f32 %v3436_v6  ;;  %v9638_v6 = vld [vmem:[#allocation59_spill] sm:$0xff] }
 0xe16   : > { %v5728_v5 = vpop.eup %5727 }
 0xe17   : > { %v3438_v26 = vmul.f32 %v5728_v5, %v3432_v7  ;;  %v9636_v7 = vld [vmem:[#allocation57_spill] sm:$0xff]  ;;  %v9639_v5 = vld [vmem:[#allocation60_spill] sm:$0xff] }
 0xe19   : > { %5291 = vmatmul.mubr.f32.vlgmr.msra.gmra.mxu1 %v3438_v26  ;;  %v9640_v26 = vld [vmem:[#allocation61_spill] sm:$0xff] }
 0xe1a   : > { %3510 = vmatpush1.msra.mxu1 %v5973_v30  ;;  %3573 = vmatprep.mubr.f32.mxu1 %v9257_v33  ;;  %v9641_v30 = vld [vmem:[#allocation62_spill] sm:$0xff] }
 0xe1b   : > { %3511 = vmatprep.subr.mxu1 %v5974_v46  ;;  %v9642_v46 = vld [vmem:[#allocation63_spill] sm:$0xff] }
 0xe1c   : > { %3512 = vmatpush1.msra.mxu1 %v5975_v48  ;;  %v9643_v48 = vld [vmem:[#allocation64_spill] sm:$0xff] }
 0xe1d   : > { %3513 = vmatprep.subr.mxu1 %v5976_v45  ;;  %v9644_v45 = vld [vmem:[#allocation65_spill] sm:$0xff] }
 0xe1e   : > { %3514 = vmatpush1.msra.mxu1 %v5977_v57  ;;  %v9645_v57 = vld [vmem:[#allocation66_spill] sm:$0xff] }
 0xe1f   : > { %3515 = vmatprep.subr.mxu1 %v5978_v23  ;;  %v9646_v23 = vld [vmem:[#allocation67_spill] sm:$0xff] }
 0xe20   : > { %3516 = vmatpush1.msra.mxu1 %v5979_v60  ;;  %v9647_v60 = vld [vmem:[#allocation68_spill] sm:$0xff] }
 0xe21   : > { %3517 = vmatprep.subr.mxu1 %v5980_v61  ;;  %v9648_v61 = vld [vmem:[#allocation69_spill] sm:$0xff] }
 0xe22   : > { %3518 = vmatpush1.msra.mxu1 %v5981_v0  ;;  %v9649_v0 = vld [vmem:[#allocation70_spill] sm:$0xff] }
 0xe23   : > { %3519 = vmatprep.subr.mxu1 %v5982_v58  ;;  %v9650_v58 = vld [vmem:[#allocation71_spill] sm:$0xff] }
 0xe24   : > { %3520 = vmatpush1.msra.mxu1 %v5983_v55  ;;  %v9651_v55 = vld [vmem:[#allocation72_spill] sm:$0xff] }
 0xe25   : > { %3521 = vmatprep.subr.mxu1 %v5984_v36  ;;  %v9652_v36 = vld [vmem:[#allocation73_spill] sm:$0xff] }
 0xe26   : > { %3522 = vmatpush1.msra.mxu1 %v5985_v32  ;;  %v9653_v32 = vld [vmem:[#allocation74_spill] sm:$0xff] }
 0xe27   : > { %3523 = vmatprep.subr.mxu1 %v5986_v63  ;;  %v9654_v63 = vld [vmem:[#allocation75_spill] sm:$0xff] }
 0xe28   : > { %3524 = vmatpush1.msra.mxu1 %v5987_v62  ;;  %v9655_v62 = vld [vmem:[#allocation76_spill] sm:$0xff] }
 0xe29   : > { %3525 = vmatprep.subr.mxu1 %v5988_v1  ;;  %v9656_v1 = vld [vmem:[#allocation77_spill] sm:$0xff] }
 0xe2a   : > { %3526 = vmatpush1.msra.mxu1 %v5989_v22  ;;  %v9657_v22 = vld [vmem:[#allocation78_spill] sm:$0xff] }
 0xe2b   : > { %3527 = vmatprep.subr.mxu1 %v5990_v2  ;;  %v9658_v2 = vld [vmem:[#allocation79_spill] sm:$0xff] }
 0xe2c   : > { %3528 = vmatpush1.msra.mxu1 %v5991_v38  ;;  %v9659_v38 = vld [vmem:[#allocation80_spill] sm:$0xff] }
 0xe2d   : > { %3529 = vmatprep.subr.mxu1 %v5992_v44  ;;  %v9660_v44 = vld [vmem:[#allocation81_spill] sm:$0xff] }
 0xe2e   : > { %3530 = vmatpush1.msra.mxu1 %v5993_v4  ;;  %v9661_v4 = vld [vmem:[#allocation82_spill] sm:$0xff] }
 0xe2f   : > { %3531 = vmatprep.subr.mxu1 %v5994_v31  ;;  %v9662_v31 = vld [vmem:[#allocation83_spill] sm:$0xff] }
 0xe30   : > { %3532 = vmatpush1.msra.mxu1 %v5995_v24  ;;  %v9663_v24 = vld [vmem:[#allocation84_spill] sm:$0xff] }
 0xe31   : > { %3533 = vmatprep.subr.mxu1 %v5996_v59  ;;  %v9664_v59 = vld [vmem:[#allocation85_spill] sm:$0xff] }
 0xe32   : > { %3534 = vmatpush1.msra.mxu1 %v5997_v47  ;;  %v9665_v47 = vld [vmem:[#allocation86_spill] sm:$0xff] }
 0xe33   : > { %3535 = vmatprep.subr.mxu1 %v5998_v56  ;;  %v9666_v56 = vld [vmem:[#allocation87_spill] sm:$0xff] }
 0xe34   : > { %3536 = vmatpush1.msra.mxu1 %v5999_v40  ;;  %v9667_v40 = vld [vmem:[#allocation88_spill] sm:$0xff] }
 0xe35   : > { %3537 = vmatprep.subr.mxu1 %v6000_v34  ;;  %v9668_v34 = vld [vmem:[#allocation89_spill] sm:$0xff] }
 0xe36   : > { %3538 = vmatpush1.msra.mxu1 %v6001_v28  ;;  %v9669_v28 = vld [vmem:[#allocation90_spill] sm:$0xff] }
 0xe37   : > { %3539 = vmatprep.subr.mxu1 %v7974_v49  ;;  %v9617_v49 = vld [vmem:[#allocation38_spill] sm:$0xff] }
 0xe38   : > { %3540 = vmatpush1.msra.mxu1 %v7977_v54  ;;  %v9618_v54 = vld [vmem:[#allocation39_spill] sm:$0xff] }
 0xe39   : > { %3651 = vmatprep.subr.mxu1 %v7980_v3  ;;  %v9619_v3 = vld [vmem:[#allocation40_spill] sm:$0xff] }
 0xed9   : > { %v3505_v52 = vpop.f32.mrf.mxu1 }
 0xeda   : > { %3574 = vmatmul.mubr.f32.vlgmr.msra.gmra.mxu1 %v3505_v52  ;;  %3645 = vmatmul.mubr.f32.vlgmr.msra.gmra.mxu0 %v3505_v52  ;;  %v9670_v52 = vld [vmem:[#allocation91_spill] sm:$0xff] }
 0xedb   : > { %3652 = vmatpush1.msra.mxu1 %v7983_v15  ;;  %3723 = vmatpush1.msra.mxu0 %v7986_v25  ;;  %v5292_v41 = vpop.f32.mrf.mxu1  ;;  %v9620_v15 = vld [vmem:[#allocation41_spill] sm:$0xff]  ;;  %v9621_v25 = vld [vmem:[#allocation42_spill] sm:$0xff] }
 0xedc   : > { %3653 = vmatprep.subr.mxu1 %v7989_v37  ;;  %3724 = vmatprep.subr.mxu0 %v7992_v8  ;;  %v9622_v37 = vld [vmem:[#allocation43_spill] sm:$0xff]  ;;  %v9623_v8 = vld [vmem:[#allocation44_spill] sm:$0xff] }
 0xedd   : > { %3654 = vmatpush1.msra.mxu1 %v7995_v50  ;;  %3725 = vmatpush1.msra.mxu0 %v7998_v27  ;;  %v9624_v50 = vld [vmem:[#allocation45_spill] sm:$0xff]  ;;  %v9625_v27 = vld [vmem:[#allocation46_spill] sm:$0xff]  ;;  %v9671_v41 = vld [vmem:[#allocation92_spill] sm:$0xff] }
 0xede   : > { %3655 = vmatprep.subr.mxu1 %v8001_v12  ;;  %3726 = vmatprep.subr.mxu0 %v8004_v14  ;;  %v9626_v12 = vld [vmem:[#allocation47_spill] sm:$0xff]  ;;  %v9627_v14 = vld [vmem:[#allocation48_spill] sm:$0xff] }
 0xedf   : > { %3656 = vmatpush1.msra.mxu1 %v8007_v16  ;;  %3727 = vmatpush1.msra.mxu0 %v8010_v19  ;;  %v9628_v16 = vld [vmem:[#allocation49_spill] sm:$0xff]  ;;  %v9629_v19 = vld [vmem:[#allocation50_spill] sm:$0xff] }
 0xee0   : > { %3657 = vmatprep.subr.mxu1 %v9617_v49  ;;  %3728 = vmatprep.subr.mxu0 %v9618_v54  ;;  %v9672_v49 = vld [vmem:[#allocation93_spill] sm:$0xff]  ;;  %v9673_v54 = vld [vmem:[#allocation94_spill] sm:$0xff] }
 0xee1   : > { %3658 = vmatpush1.msra.mxu1 %v9619_v3  ;;  %3729 = vmatpush1.msra.mxu0 %v9620_v15  ;;  %v9674_v3 = vld [vmem:[#allocation95_spill] sm:$0xff]  ;;  %v9675_v15 = vld [vmem:[#allocation96_spill] sm:$0xff] }
 0xee2   : > { %3659 = vmatprep.subr.mxu1 %v9621_v25  ;;  %3730 = vmatprep.subr.mxu0 %v9622_v37  ;;  %v9676_v25 = vld [vmem:[#allocation97_spill] sm:$0xff]  ;;  %v9677_v37 = vld [vmem:[#allocation98_spill] sm:$0xff] }
 0xee3   : > { %3660 = vmatpush1.msra.mxu1 %v9623_v8  ;;  %3731 = vmatpush1.msra.mxu0 %v9624_v50  ;;  %v9678_v8 = vld [vmem:[#allocation99_spill] sm:$0xff]  ;;  %v9679_v50 = vld [vmem:[#allocation100_spill] sm:$0xff] }
 0xee4   : > { %3661 = vmatprep.subr.mxu1 %v9625_v27  ;;  %3732 = vmatprep.subr.mxu0 %v9626_v12  ;;  %v9680_v27 = vld [vmem:[#allocation101_spill] sm:$0xff]  ;;  %v9681_v12 = vld [vmem:[#allocation102_spill] sm:$0xff] }
 0xee5   : > { %3662 = vmatpush1.msra.mxu1 %v9627_v14  ;;  %3733 = vmatpush1.msra.mxu0 %v9628_v16  ;;  %v9682_v14 = vld [vmem:[#allocation103_spill] sm:$0xff]  ;;  %v9683_v16 = vld [vmem:[#allocation104_spill] sm:$0xff] }
 0xee6   : > { %3663 = vmatprep.subr.mxu1 %v9629_v19  ;;  %3734 = vmatprep.subr.mxu0 %v9630_v35  ;;  %v9684_v19 = vld [vmem:[#allocation105_spill] sm:$0xff]  ;;  %v9685_v35 = vld [vmem:[#allocation106_spill] sm:$0xff] }
 0xee7   : > { %3664 = vmatpush1.msra.mxu1 %v9631_v53  ;;  %3735 = vmatpush1.msra.mxu0 %v9632_v18  ;;  %v9686_v53 = vld [vmem:[#allocation107_spill] sm:$0xff]  ;;  %v9687_v18 = vld [vmem:[#allocation108_spill] sm:$0xff] }
 0xee8   : > { %3665 = vmatprep.subr.mxu1 %v9633_v29  ;;  %3736 = vmatprep.subr.mxu0 %v9634_v39  ;;  %v9688_v29 = vld [vmem:[#allocation109_spill] sm:$0xff]  ;;  %v9689_v39 = vld [vmem:[#allocation110_spill] sm:$0xff] }
 0xee9   : > { %3666 = vmatpush1.msra.mxu1 %v9635_v51  ;;  %3737 = vmatpush1.msra.mxu0 %v9636_v7  ;;  %v9690_v51 = vld [vmem:[#allocation111_spill] sm:$0xff]  ;;  %v9691_v7 = vld [vmem:[#allocation112_spill] sm:$0xff] }
 0xeea   : > { %3667 = vmatprep.subr.mxu1 %v9637_v43  ;;  %3738 = vmatprep.subr.mxu0 %v9638_v6  ;;  %v9692_v43 = vld [vmem:[#allocation113_spill] sm:$0xff]  ;;  %v9693_v6 = vld [vmem:[#allocation114_spill] sm:$0xff] }
 0xeeb   : > { %3668 = vmatpush1.msra.mxu1 %v9639_v5  ;;  %3739 = vmatpush1.msra.mxu0 %v9640_v26  ;;  %v9694_v5 = vld [vmem:[#allocation115_spill] sm:$0xff]  ;;  %v9695_v26 = vld [vmem:[#allocation116_spill] sm:$0xff] }
 0xeec   : > { %3669 = vmatprep.subr.mxu1 %v9641_v30  ;;  %3740 = vmatprep.subr.mxu0 %v9642_v46  ;;  %v9696_v30 = vld [vmem:[#allocation117_spill] sm:$0xff]  ;;  %v9697_v46 = vld [vmem:[#allocation118_spill] sm:$0xff] }
 0xeed   : > { %3670 = vmatpush1.msra.mxu1 %v9643_v48  ;;  %3741 = vmatpush1.msra.mxu0 %v9644_v45  ;;  %v9698_v48 = vld [vmem:[#allocation119_spill] sm:$0xff]  ;;  %v9699_v45 = vld [vmem:[#allocation120_spill] sm:$0xff] }
 0xeee   : > { %3671 = vmatprep.subr.mxu1 %v9645_v57  ;;  %3742 = vmatprep.subr.mxu0 %v9646_v23  ;;  %v9700_v57 = vld [vmem:[#allocation121_spill] sm:$0xff]  ;;  %v9701_v23 = vld [vmem:[#allocation122_spill] sm:$0xff] }
 0xeef   : > { %3672 = vmatpush1.msra.mxu1 %v9647_v60  ;;  %3743 = vmatpush1.msra.mxu0 %v9648_v61  ;;  %v9702_v60 = vld [vmem:[#allocation123_spill] sm:$0xff]  ;;  %v9703_v61 = vld [vmem:[#allocation124_spill] sm:$0xff] }
 0xef0   : > { %3673 = vmatprep.subr.mxu1 %v9649_v0  ;;  %3744 = vmatprep.subr.mxu0 %v9650_v58  ;;  %v9704_v0 = vld [vmem:[#allocation125_spill] sm:$0xff]  ;;  %v9705_v58 = vld [vmem:[#allocation126_spill] sm:$0xff] }
 0xef1   : > { %3674 = vmatpush1.msra.mxu1 %v9651_v55  ;;  %3745 = vmatpush1.msra.mxu0 %v9652_v36  ;;  %v9706_v55 = vld [vmem:[#allocation127_spill] sm:$0xff]  ;;  %v9707_v36 = vld [vmem:[#allocation128_spill] sm:$0xff] }
 0xef2   : > { %3675 = vmatprep.subr.mxu1 %v9653_v32  ;;  %3746 = vmatprep.subr.mxu0 %v9654_v63  ;;  %v9708_v32 = vld [vmem:[#allocation129_spill] sm:$0xff]  ;;  %v9709_v63 = vld [vmem:[#allocation130_spill] sm:$0xff] }
 0xef3   : > { %3676 = vmatpush1.msra.mxu1 %v9655_v62  ;;  %3747 = vmatpush1.msra.mxu0 %v9656_v1  ;;  %v9710_v62 = vld [vmem:[#allocation131_spill] sm:$0xff]  ;;  %v9711_v1 = vld [vmem:[#allocation132_spill] sm:$0xff] }
 0xef4   : > { %3677 = vmatprep.subr.mxu1 %v9657_v22  ;;  %3748 = vmatprep.subr.mxu0 %v9658_v2  ;;  %v9712_v22 = vld [vmem:[#allocation133_spill] sm:$0xff]  ;;  %v9713_v2 = vld [vmem:[#allocation134_spill] sm:$0xff] }
 0xef5   : > { %3678 = vmatpush1.msra.mxu1 %v9659_v38  ;;  %3749 = vmatpush1.msra.mxu0 %v9660_v44  ;;  %v9714_v38 = vld [vmem:[#allocation135_spill] sm:$0xff]  ;;  %v9715_v44 = vld [vmem:[#allocation136_spill] sm:$0xff] }
 0xef6   : > { %3679 = vmatprep.subr.mxu1 %v9661_v4  ;;  %3750 = vmatprep.subr.mxu0 %v9662_v31  ;;  %v9716_v4 = vld [vmem:[#allocation137_spill] sm:$0xff]  ;;  %v9717_v31 = vld [vmem:[#allocation138_spill] sm:$0xff] }
 0xef7   : > { %3680 = vmatpush1.msra.mxu1 %v9663_v24  ;;  %3751 = vmatpush1.msra.mxu0 %v9664_v59  ;;  %v9718_v24 = vld [vmem:[#allocation139_spill] sm:$0xff]  ;;  %v9719_v59 = vld [vmem:[#allocation140_spill] sm:$0xff] }
 0xef8   : > { %3681 = vmatprep.subr.mxu1 %v9665_v47  ;;  %3752 = vmatprep.subr.mxu0 %v9666_v56  ;;  %v9720_v47 = vld [vmem:[#allocation141_spill] sm:$0xff]  ;;  %v9721_v56 = vld [vmem:[#allocation142_spill] sm:$0xff] }
 0xef9   : > { %3682 = vmatpush1.msra.mxu1 %v9667_v40  ;;  %3715 = vmatprep.mubr.f32.mxu1 %v9257_v33  ;;  %v9722_v40 = vld [vmem:[#allocation143_spill] sm:$0xff] }
 0xefa   : > { %3753 = vmatpush1.msra.mxu0 %v9668_v34  ;;  %3786 = vmatprep.mubr.f32.mxu0 %v9257_v33  ;;  %v9723_v34 = vld [vmem:[#allocation144_spill] sm:$0xff] }
 0xefb   : > { %3716 = vmatmul.mubr.f32.vlgmr.msra.gmra.mxu1 %v8479_v42  ;;  %3787 = vmatmul.mubr.f32.vlgmr.msra.gmra.mxu0 %v8479_v42 }
 0xefc   : > { %3793 = vmatprep.subr.mxu1 %v9669_v28  ;;  %3864 = vmatprep.subr.mxu0 %v9670_v52  ;;  %v9724_v28 = vld [vmem:[#allocation145_spill] sm:$0xff]  ;;  %v9725_v52 = vld [vmem:[#allocation146_spill] sm:$0xff] }
 0xefd   : > { %3794 = vmatpush1.msra.mxu1 %v9671_v41  ;;  %3865 = vmatpush1.msra.mxu0 %v9672_v49  ;;  %v9726_v41 = vld [vmem:[#allocation147_spill] sm:$0xff]  ;;  %v9727_v49 = vld [vmem:[#allocation148_spill] sm:$0xff] }
 0xefe   : > { %3795 = vmatprep.subr.mxu1 %v9673_v54  ;;  %3866 = vmatprep.subr.mxu0 %v9674_v3  ;;  %v9728_v54 = vld [vmem:[#allocation149_spill] sm:$0xff]  ;;  %v9729_v3 = vld [vmem:[#allocation150_spill] sm:$0xff] }
 0xeff   : > { %3796 = vmatpush1.msra.mxu1 %v9675_v15  ;;  %3867 = vmatpush1.msra.mxu0 %v9676_v25  ;;  %v9730_v15 = vld [vmem:[#allocation151_spill] sm:$0xff]  ;;  %v9731_v25 = vld [vmem:[#allocation152_spill] sm:$0xff] }
 0xf00   : > { %3797 = vmatprep.subr.mxu1 %v9677_v37  ;;  %3868 = vmatprep.subr.mxu0 %v9678_v8  ;;  %v9732_v37 = vld [vmem:[#allocation153_spill] sm:$0xff]  ;;  %v9733_v8 = vld [vmem:[#allocation154_spill] sm:$0xff] }
 0xf01   : > { %3798 = vmatpush1.msra.mxu1 %v9679_v50  ;;  %3869 = vmatpush1.msra.mxu0 %v9680_v27  ;;  %v9734_v50 = vld [vmem:[#allocation155_spill] sm:$0xff]  ;;  %v9736_v27 = vld [vmem:[#allocation157_spill] sm:$0xff] }
 0xf02   : > { %3799 = vmatprep.subr.mxu1 %v9681_v12  ;;  %3870 = vmatprep.subr.mxu0 %v9682_v14  ;;  %v9737_v12 = vld [vmem:[#allocation158_spill] sm:$0xff]  ;;  %v9738_v14 = vld [vmem:[#allocation159_spill] sm:$0xff] }
 0xf03   : > { %3800 = vmatpush1.msra.mxu1 %v9683_v16  ;;  %3871 = vmatpush1.msra.mxu0 %v9684_v19  ;;  %v9739_v16 = vld [vmem:[#allocation160_spill] sm:$0xff]  ;;  %v9740_v19 = vld [vmem:[#allocation161_spill] sm:$0xff] }
 0xf04   : > { %3801 = vmatprep.subr.mxu1 %v9685_v35  ;;  %3872 = vmatprep.subr.mxu0 %v9686_v53  ;;  %v9741_v35 = vld [vmem:[#allocation162_spill] sm:$0xff]  ;;  %v9742_v53 = vld [vmem:[#allocation163_spill] sm:$0xff] }
 0xf05   : > { %3802 = vmatpush1.msra.mxu1 %v9687_v18  ;;  %3873 = vmatpush1.msra.mxu0 %v9688_v29  ;;  %v9743_v18 = vld [vmem:[#allocation164_spill] sm:$0xff]  ;;  %v9744_v29 = vld [vmem:[#allocation165_spill] sm:$0xff] }
 0xf06   : > { %3803 = vmatprep.subr.mxu1 %v9689_v39  ;;  %3874 = vmatprep.subr.mxu0 %v9690_v51  ;;  %v9745_v39 = vld [vmem:[#allocation166_spill] sm:$0xff]  ;;  %v9746_v51 = vld [vmem:[#allocation167_spill] sm:$0xff] }
 0xf07   : > { %3804 = vmatpush1.msra.mxu1 %v9691_v7  ;;  %3875 = vmatpush1.msra.mxu0 %v9692_v43  ;;  %v9747_v7 = vld [vmem:[#allocation168_spill] sm:$0xff]  ;;  %v9748_v43 = vld [vmem:[#allocation169_spill] sm:$0xff] }
 0xf08   : > { %3805 = vmatprep.subr.mxu1 %v9693_v6  ;;  %3876 = vmatprep.subr.mxu0 %v9694_v5 }
 0xf09   : > { %3806 = vmatpush1.msra.mxu1 %v9695_v26  ;;  %3877 = vmatpush1.msra.mxu0 %v9696_v30 }
 0xf0a   : > { %3807 = vmatprep.subr.mxu1 %v9697_v46  ;;  %3878 = vmatprep.subr.mxu0 %v9698_v48 }
 0xf0b   : > { %3808 = vmatpush1.msra.mxu1 %v9699_v45  ;;  %3879 = vmatpush1.msra.mxu0 %v9700_v57 }
 0xf0c   : > { %3809 = vmatprep.subr.mxu1 %v9701_v23  ;;  %3880 = vmatprep.subr.mxu0 %v9702_v60 }
 0xf0d   : > { %3810 = vmatpush1.msra.mxu1 %v9703_v61  ;;  %3881 = vmatpush1.msra.mxu0 %v9704_v0 }
 0xf0e   : > { %3811 = vmatprep.subr.mxu1 %v9705_v58  ;;  %3882 = vmatprep.subr.mxu0 %v9706_v55 }
 0xf0f   : > { %3812 = vmatpush1.msra.mxu1 %v9707_v36  ;;  %3883 = vmatpush1.msra.mxu0 %v9708_v32 }
 0xf10   : > { %3813 = vmatprep.subr.mxu1 %v9709_v63  ;;  %3884 = vmatprep.subr.mxu0 %v9710_v62 }
 0xf11   : > { %3814 = vmatpush1.msra.mxu1 %v9711_v1  ;;  %3885 = vmatpush1.msra.mxu0 %v9712_v22 }
 0xf12   : > { %3815 = vmatprep.subr.mxu1 %v9713_v2  ;;  %3886 = vmatprep.subr.mxu0 %v9714_v38 }
 0xf13   : > { %3816 = vmatpush1.msra.mxu1 %v9715_v44  ;;  %3887 = vmatpush1.msra.mxu0 %v9716_v4 }
 0xf14   : > { %3817 = vmatprep.subr.mxu1 %v9717_v31  ;;  %3888 = vmatprep.subr.mxu0 %v9718_v24 }
 0xf15   : > { %3818 = vmatpush1.msra.mxu1 %v9719_v59  ;;  %3889 = vmatpush1.msra.mxu0 %v9720_v47 }
 0xf16   : > { %3819 = vmatprep.subr.mxu1 %v9721_v56  ;;  %3890 = vmatprep.subr.mxu0 %v9722_v40 }
 0xf17   : > { %3820 = vmatpush1.msra.mxu1 %v9723_v34  ;;  %3891 = vmatpush1.msra.mxu0 %v9724_v28 }
 0xf18   : > { %3821 = vmatprep.subr.mxu1 %v9725_v52  ;;  %3892 = vmatprep.subr.mxu0 %v9726_v41 }
 0xf19   : > { %3822 = vmatpush1.msra.mxu1 %v9727_v49  ;;  %3893 = vmatpush1.msra.mxu0 %v9728_v54 }
 0xf1a   : > { %3823 = vmatprep.subr.mxu1 %v9729_v3  ;;  %3894 = vmatprep.subr.mxu0 %v9730_v15 }
 0xf1b   : > { %3824 = vmatpush1.msra.mxu1 %v9731_v25  ;;  %3857 = vmatprep.mubr.f32.mxu1 %v9257_v33  ;;  %v4135_v25 = vld [vmem:[#allocation16 + $0x78] sm:$0xff] }
 0xf1c   : > { %3895 = vmatpush1.msra.mxu0 %v9732_v37  ;;  %3928 = vmatprep.mubr.f32.mxu0 %v9257_v33  ;;  %v4134_v37 = vld [vmem:[#allocation16 + $0x70] sm:$0xff] }
 0xf1d   : > { %3858 = vmatmul.mubr.f32.vlgmr.msra.gmra.mxu1 %v8479_v42  ;;  %3929 = vmatmul.mubr.f32.vlgmr.msra.gmra.mxu0 %v8479_v42  ;;  %v9735_v42 = vld [vmem:[#allocation156_spill] sm:$0xff] }
 0xf1e   : > { %5293 = vmatprep.subr.mxu1 %v9257_v33  ;;  %5325 = vmatprep.mubr.msk.f32.mxu1 %vm6416_vm0, %v9257_v33 }
 0xf1f   : > { %5294 = vmatpush3.xpose.msra.mxu1 %v9733_v8  ;;  %5328 = vmatprep.subr.mxu0 %v9257_v33 }
 0xf20   : > { %5295 = vmatprep.subr.mxu1 %v9257_v33  ;;  %5329 = vmatpush3.msra.mxu0 %v9733_v8  ;;  %v4133_v8 = vld [vmem:[#allocation16 + $0x68] sm:$0xff] }
 0xf21   : > { %5330 = vmatprep.subr.mxu0 %v9257_v33  ;;  %5360 = vmatprep.mubr.msk.f32.mxu0 %vm6416_vm0, %v9257_v33 }
 0xf22   : > { %5331 = vmatpush3.msra.mxu0 %v9734_v50 }
 0xf23   : > { %5296 = vmatpush3.xpose.msra.mxu1 %v9734_v50  ;;  %5332 = vmatprep.subr.mxu0 %v9257_v33  ;;  %v4131_v50 = vld [vmem:[#allocation16 + $0x58] sm:$0xff] }
 0xf24   : > { %5297 = vmatprep.subr.mxu1 %v9257_v33  ;;  %5333 = vmatpush3.msra.mxu0 %v9735_v42 }
 0xf25   : > { %5334 = vmatprep.subr.mxu0 %v9257_v33 }
 0xf26   : > { %5335 = vmatpush3.msra.mxu0 %v9736_v27 }
 0xf27   : > { %5298 = vmatpush3.xpose.msra.mxu1 %v9735_v42  ;;  %5336 = vmatprep.subr.mxu0 %v9257_v33  ;;  %v4130_v42 = vld [vmem:[#allocation16 + $0x50] sm:$0xff] }
 0xf28   : > { %5299 = vmatprep.subr.mxu1 %v9257_v33  ;;  %5337 = vmatpush3.msra.mxu0 %v9737_v12 }
 0xf29   : > { %5338 = vmatprep.subr.mxu0 %v9257_v33 }
 0xf2a   : > { %5339 = vmatpush3.msra.mxu0 %v9738_v14 }
 0xf2b   : > { %5300 = vmatpush3.xpose.msra.mxu1 %v9736_v27  ;;  %5340 = vmatprep.subr.mxu0 %v9257_v33  ;;  %v4129_v27 = vld [vmem:[#allocation16 + $0x48] sm:$0xff] }
 0xf2c   : > { %5301 = vmatprep.subr.mxu1 %v9257_v33  ;;  %5341 = vmatpush3.msra.mxu0 %v9739_v16 }
 0xf2d   : > { %5342 = vmatprep.subr.mxu0 %v9257_v33 }
 0xf2e   : > { %5343 = vmatpush3.msra.mxu0 %v9740_v19 }
 0xf2f   : > { %5302 = vmatpush3.xpose.msra.mxu1 %v9737_v12  ;;  %5344 = vmatprep.subr.mxu0 %v9257_v33  ;;  %v4128_v12 = vld [vmem:[#allocation16 + $0x40] sm:$0xff] }
 0xf30   : > { %5303 = vmatprep.subr.mxu1 %v9257_v33  ;;  %5345 = vmatpush3.msra.mxu0 %v9741_v35 }
 0xf31   : > { %5346 = vmatprep.subr.mxu0 %v9257_v33 }
 0xf32   : > { %5347 = vmatpush3.msra.mxu0 %v9742_v53 }
 0xf33   : > { %5304 = vmatpush3.xpose.msra.mxu1 %v9738_v14  ;;  %5348 = vmatprep.subr.mxu0 %v9257_v33  ;;  %v4127_v14 = vld [vmem:[#allocation16 + $0x38] sm:$0xff] }
 0xf34   : > { %5305 = vmatprep.subr.mxu1 %v9257_v33  ;;  %5349 = vmatpush3.msra.mxu0 %v9743_v18 }
 0xf35   : > { %5350 = vmatprep.subr.mxu0 %v9257_v33 }
 0xf36   : > { %5351 = vmatpush3.msra.mxu0 %v9744_v29 }
 0xf37   : > { %5306 = vmatpush3.xpose.msra.mxu1 %v9739_v16  ;;  %5352 = vmatprep.subr.mxu0 %v9257_v33  ;;  %v4126_v16 = vld [vmem:[#allocation16 + $0x30] sm:$0xff] }
 0xf38   : > { %5307 = vmatprep.subr.mxu1 %v9257_v33  ;;  %5353 = vmatpush3.msra.mxu0 %v9745_v39 }
 0xf39   : > { %5354 = vmatprep.subr.mxu0 %v9257_v33 }
 0xf3a   : > { %5355 = vmatpush3.msra.mxu0 %v9746_v51 }
 0xf3b   : > { %5308 = vmatpush3.xpose.msra.mxu1 %v9740_v19  ;;  %5356 = vmatprep.subr.mxu0 %v9257_v33  ;;  %v4125_v19 = vld [vmem:[#allocation16 + $0x28] sm:$0xff] }
 0xf3c   : > { %5309 = vmatprep.subr.mxu1 %v9257_v33  ;;  %5357 = vmatpush3.msra.mxu0 %v9747_v7 }
 0xf3d   : > { %5358 = vmatprep.subr.mxu0 %v9257_v33 }
 0xf3e   : > { %5359 = vmatpush3.msra.mxu0 %v9748_v43 }
 0xf3f   : > { %5310 = vmatpush3.xpose.msra.mxu1 %v9741_v35  ;;  %5363 = vmatprep.subr.mxu0 %v9257_v33  ;;  %v4124_v35 = vld [vmem:[#allocation16 + $0x20] sm:$0xff] }
 0xf40   : > { %5311 = vmatprep.subr.mxu1 %v9257_v33 }
 0xf43   : > { %5312 = vmatpush3.xpose.msra.mxu1 %v9742_v53  ;;  %v4123_v53 = vld [vmem:[#allocation16 + $0x18] sm:$0xff] }
 0xf44   : > { %5313 = vmatprep.subr.mxu1 %v9257_v33 }
 0xf47   : > { %5314 = vmatpush3.xpose.msra.mxu1 %v9743_v18  ;;  %v4122_v18 = vld [vmem:[#allocation16 + $0x10] sm:$0xff] }
 0xf48   : > { %5315 = vmatprep.subr.mxu1 %v9257_v33 }
 0xf4b   : > { %5316 = vmatpush3.xpose.msra.mxu1 %v9744_v29  ;;  %v4121_v29 = vld [vmem:[#allocation16 + $0x8] sm:$0xff] }
 0xf4c   : > { %5317 = vmatprep.subr.mxu1 %v9257_v33 }
 0xf4f   : > { %5318 = vmatpush3.xpose.msra.mxu1 %v9745_v39  ;;  %v4120_v39 = vld [vmem:[#allocation16] sm:$0xff] }
 0xf50   : > { %5319 = vmatprep.subr.mxu1 %v9257_v33 }
 0xf53   : > { %5320 = vmatpush3.xpose.msra.mxu1 %v9746_v51 }
 0xf54   : > { %5321 = vmatprep.subr.mxu1 %v9257_v33 }
 0xf57   : > { %5322 = vmatpush3.xpose.msra.mxu1 %v9747_v7 }
 0xf58   : > { %5323 = vmatprep.subr.mxu1 %v9257_v33 }
 0xf5b   : > { %5324 = vmatpush3.xpose.msra.mxu1 %v9748_v43 }
 0xf5c   : > { %5398 = vmatprep.subr.mxu1 %v9257_v33 }
 0xf9a   : > { %v3575_v6 = vpop.f32.mrf.mxu1  ;;  %v3646_v5 = vpop.f32.mrf.mxu0 }
 0xf9c   : > { %v3577_v26 = vpop.f32.mrf.mxu1  ;;  %v3648_v46 = vpop.f32.mrf.mxu0 }
 0xfbb   : > { %v3717_v30 = vpop.f32.mrf.mxu1  ;;  %v3788_v48 = vpop.f32.mrf.mxu0 }
 0xfbc   : > { %v3718_v57 = vadd.f32 %v3717_v30, %v3575_v6  ;;  %v3789_v44 = vadd.f32 %v3788_v48, %v3646_v5 }
 0xfbd   : > { %v3719_v45 = vpop.f32.mrf.mxu1  ;;  %v3790_v61 = vpop.f32.mrf.mxu0 }
 0xfbe   : > { %v3720_v60 = vadd.f32 %v3719_v45, %v3577_v26  ;;  %v3791_v2 = vadd.f32 %v3790_v61, %v3648_v46  ;;  %v4151_v61 = vld [vmem:[#allocation18 + $0x78] sm:$0xff] }
 0xfdd   : > { %v3859_v23 = vpop.f32.mrf.mxu1  ;;  %v3930_v36 = vpop.f32.mrf.mxu0 }
 0xfde   : > { %v3935_v0 = vadd.f32 %v3859_v23, %v3718_v57  ;;  %v3937_v31 = vadd.f32 %v3930_v36, %v3789_v44  ;;  %v4146_v36 = vld [vmem:[#allocation18 + $0x50] sm:$0xff] }
 0xfdf   : > { %v3861_v58 = vpop.f32.mrf.mxu1  ;;  %v3932_v22 = vpop.f32.mrf.mxu0  ;;  %v4138_v44 = vld [vmem:[#allocation18 + $0x10] sm:$0xff] }
 0xfe0   : > { %v3939_v55 = vadd.f32 %v3935_v0, %v7474_v17  ;;  %v3936_v32 = vadd.f32 %v3861_v58, %v3720_v60  ;;  %v3938_v38 = vadd.f32 %v3932_v22, %v3791_v2  ;;  %v3941_v47 = vadd.f32 %v3937_v31, %v7483_v13  ;;  %v4150_v0 = vld [vmem:[#allocation18 + $0x70] sm:$0xff]  ;;  %v4149_v58 = vld [vmem:[#allocation18 + $0x68] sm:$0xff]  ;;  %v4140_v2 = vld [vmem:[#allocation18 + $0x20] sm:$0xff] }
 0xfe1   : > { %v4141_v22 = vld [vmem:[#allocation18 + $0x28] sm:$0xff]  ;;  %v4136_v31 = vld [vmem:[#allocation18] sm:$0xff] }
 0xfe2   : > { %v4657_v63 = vmul.f32 -1.442695, %v3939_v55  ;;  %v3940_v62 = vadd.f32 %v3936_v32, %v7476_v11  ;;  %v3942_v4 = vadd.f32 %v3938_v38, %v7480_v21  ;;  %v4147_v55 = vld [vmem:[#allocation18 + $0x58] sm:$0xff]  ;;  %v4145_v32 = vld [vmem:[#allocation18 + $0x48] sm:$0xff] }
 0xfe3   : > { %v4139_v38 = vld [vmem:[#allocation18 + $0x18] sm:$0xff] }
 0xfe4   : > { %5729 = vpow2.f32 %v4657_v63  ;;  %v4658_v1 = vmul.f32 -1.442695, %v3940_v62  ;;  %v4659_v24 = vmul.f32 -1.442695, %v3942_v4  ;;  %v4144_v63 = vld [vmem:[#allocation18 + $0x40] sm:$0xff]  ;;  %v4143_v62 = vld [vmem:[#allocation18 + $0x38] sm:$0xff] }
 0xfe5   : > { %v4137_v4 = vld [vmem:[#allocation18 + $0x8] sm:$0xff] }
 0xfe6   : > { %5731 = vpow2.f32 %v4658_v1  ;;  %v4142_v1 = vld [vmem:[#allocation18 + $0x30] sm:$0xff] }
 0xfe7   : > { %5733 = vpow2.f32 %v4659_v24  ;;  %v4316_v24 = vld [vmem:[#allocation19 + $0x78] sm:$0xff] }
 0xff1   : > { %v5730_v59 = vpop.eup %5729 }
 0xff2   : > { %v3946_v17 = vadd.f32 1.0, %v5730_v59 }
 0xff3   : > { %v5732_v56 = vpop.eup %5731 }
 0xff4   : > { %5735 = vrcp.f32 %v3946_v17  ;;  %v3952_v40 = vadd.f32 1.0, %v5732_v56  ;;  %v5734_v11 = vpop.eup %5733  ;;  %v4314_v56 = vld [vmem:[#allocation19 + $0x68] sm:$0xff] }
 0xff5   : > { %5737 = vtanh.f32 %v3941_v47  ;;  %v3959_v41 = vadd.f32 1.0, %v5734_v11  ;;  %v4315_v47 = vld [vmem:[#allocation19 + $0x70] sm:$0xff]  ;;  %v4312_v11 = vld [vmem:[#allocation19 + $0x58] sm:$0xff] }
 0xff6   : > { %5739 = vrcp.f32 %v3952_v40  ;;  %v4313_v40 = vld [vmem:[#allocation19 + $0x60] sm:$0xff] }
 0xff7   : > { %5741 = vrcp.f32 %v3959_v41  ;;  %v4308_v41 = vld [vmem:[#allocation19 + $0x38] sm:$0xff] }
0x1001   : > { %v5736_v34 = vpop.eup %5735 }
0x1002   : > { %v5738_v28 = vpop.eup %5737 }
0x1003   : > { %v5740_v52 = vpop.eup %5739  ;;  %v3963_v49 = vmul.f32 %v5738_v28, %v5736_v34  ;;  %v4311_v34 = vld [vmem:[#allocation19 + $0x50] sm:$0xff]  ;;  %v4310_v28 = vld [vmem:[#allocation19 + $0x48] sm:$0xff] }
0x1004   : > { %v3962_v21 = vmul.f32 %v5740_v52, %v8476_v20  ;;  %v5742_v3 = vpop.eup %5741  ;;  %v4132_v20 = vld [vmem:[#allocation16 + $0x60] sm:$0xff] }
0x1005   : > { %v4309_v52 = vld [vmem:[#allocation19 + $0x40] sm:$0xff] }
0x1006   : > { %v3964_v54 = vadd.f32 %v3963_v49, %v3962_v21  ;;  %v4307_v49 = vld [vmem:[#allocation19 + $0x30] sm:$0xff]  ;;  %v4306_v21 = vld [vmem:[#allocation19 + $0x28] sm:$0xff] }
0x1008   : > { %5743 = vtanh.f32 %v3964_v54  ;;  %v4305_v54 = vld [vmem:[#allocation19 + $0x20] sm:$0xff] }
0x1015   : > { %v5744_v13 = vpop.eup %5743 }
0x1016   : > { %v3966_v15 = vmul.f32 %v5744_v13, %v5742_v3  ;;  %v4304_v3 = vld [vmem:[#allocation19 + $0x18] sm:$0xff]  ;;  %v4303_v13 = vld [vmem:[#allocation19 + $0x10] sm:$0xff] }
0x1018   : > { %5326 = vmatmul.mubr.f32.vlgmr.msra.gmra.mxu1 %v3966_v15 }
0x1019   : > { %5399 = vmatpush3.msra.mxu1 %v4135_v25  ;;  %5430 = vmatprep.mubr.msk.f32.mxu1 %vm6416_vm0, %v9257_v33  ;;  %v4301_v25 = vld [vmem:[#allocation19] sm:$0xff] }
0x101a   : > { %5400 = vmatprep.subr.mxu1 %v9257_v33 }
0x101b   : > { %5401 = vmatpush3.msra.mxu1 %v4134_v37 }
0x101c   : > { %5402 = vmatprep.subr.mxu1 %v9257_v33 }
0x101d   : > { %5403 = vmatpush3.msra.mxu1 %v4133_v8  ;;  %v4660_v8 = vld [vmem:[%s9749_s9] ss:$0 sm:$0xff] }
0x101e   : > { %5404 = vmatprep.subr.mxu1 %v9257_v33 }
0x101f   : > { %5405 = vmatpush3.msra.mxu1 %v4132_v20 }
0x1020   : > { %5406 = vmatprep.subr.mxu1 %v9257_v33 }
0x1021   : > { %5407 = vmatpush3.msra.mxu1 %v4131_v50 }
0x1022   : > { %5408 = vmatprep.subr.mxu1 %v9257_v33 }
0x1023   : > { %5409 = vmatpush3.msra.mxu1 %v4130_v42 }
0x1024   : > { %5410 = vmatprep.subr.mxu1 %v9257_v33 }
0x1025   : > { %5411 = vmatpush3.msra.mxu1 %v4129_v27 }
0x1026   : > { %5412 = vmatprep.subr.mxu1 %v9257_v33 }
0x1027   : > { %5413 = vmatpush3.msra.mxu1 %v4128_v12  ;;  %v4661_v12 = vld [vmem:[%s9750_s16] ss:$0 sm:$0xff] }
0x1028   : > { %5414 = vmatprep.subr.mxu1 %v9257_v33 }
0x1029   : > { %5415 = vmatpush3.msra.mxu1 %v4127_v14 }
0x102a   : > { %5416 = vmatprep.subr.mxu1 %v9257_v33 }
0x102b   : > { %5417 = vmatpush3.msra.mxu1 %v4126_v16 }
0x102c   : > { %5418 = vmatprep.subr.mxu1 %v9257_v33 }
0x102d   : > { %5419 = vmatpush3.msra.mxu1 %v4125_v19 }
0x102e   : > { %5420 = vmatprep.subr.mxu1 %v9257_v33 }
0x102f   : > { %5421 = vmatpush3.msra.mxu1 %v4124_v35 }
0x1030   : > { %5422 = vmatprep.subr.mxu1 %v9257_v33 }
0x1031   : > { %5423 = vmatpush3.msra.mxu1 %v4123_v53 }
0x1032   : > { %5424 = vmatprep.subr.mxu1 %v9257_v33 }
0x1033   : > { %5425 = vmatpush3.msra.mxu1 %v4122_v18 }
0x1034   : > { %5426 = vmatprep.subr.mxu1 %v9257_v33 }
0x1035   : > { %5427 = vmatpush3.msra.mxu1 %v4121_v29 }
0x1036   : > { %5428 = vmatprep.subr.mxu1 %v9257_v33 }
0x1037   : > { %5429 = vmatpush3.msra.mxu1 %v4120_v39 }
0x1038   : > { %5431 = vmatmul.mubr.f32.vlgmr.msra.gmra.mxu1 %v3966_v15  ;;  %v4302_v15 = vld [vmem:[#allocation19 + $0x8] sm:$0xff] }
0x10d8   : > { %v4033_v51 = vpop.f32.mrf.mxu1 }
0x10d9   : > { %v4037_v7 = vsel %vm2203_vm1, %v4033_v51, -1e+30 }
0x10da   : > { %4038 = vmax.xlane.f32.xlu0 %v4037_v7  ;;  %v5327_v43 = vpop.f32.mrf.mxu1 }
0x10f8   : > { %v8744_v6 = vpop.f32.mrf.mxu1 }
0x10fa   : > { %v5432_v5 = vpop.f32.mrf.mxu1 }
0x1163   : > { %v4039_v26 = vpop.xlane.xlu0 %4038 }
0x1164   : > { %v4040_v30 = vsub.f32 %v4037_v7, %v4039_v26 }
0x1166   : > { %v4041_v46 = vmul.f32 1.442695, %v4040_v30 }
0x1168   : > { %5745 = vpow2.f32 %v4041_v46 }
0x1175   : > { %v5746_v48 = vpop.eup %5745 }
0x1176   : > { %v4043_v45 = vmul.f32 %v8509_v9, %v5746_v48  ;;  %v4148_v9 = vld [vmem:[#allocation18 + $0x60] sm:$0xff] }
0x1178   : > { %4044 = vadd.xlane.f32.xlu1 %v4043_v45 }
0x1201   : > { %v4045_v57 = vpop.xlane.xlu1 %4044 }
0x1202   : > { %vm4046_vm5 = vcmp.gt.f32.partialorder %v4045_v57, 0.0 }
0x1203   : > { %v4047_v23 = vsel %vm4046_vm5, %v4045_v57, 1.0 }
0x1204   : > { %5747 = vrcp.f32 %v4047_v23 }
0x1211   : > { %v5748_v60 = vpop.eup %5747 }
0x1212   : > { %v4049_v10 = vmul.f32 %v5748_v60, %v4043_v45 }
0x1214   : > { %5361 = vmatmul.mubr.f32.vlgmr.msra.gmra.mxu0 %v4049_v10 }
0x1215   : > { %5364 = vmatpush3.msra.mxu0 %v4151_v61  ;;  %5395 = vmatprep.mubr.msk.f32.mxu0 %vm6416_vm0, %v9257_v33 }
0x1216   : > { %5365 = vmatprep.subr.mxu0 %v9257_v33 }
0x1217   : > { %5366 = vmatpush3.msra.mxu0 %v4150_v0 }
0x1218   : > { %5367 = vmatprep.subr.mxu0 %v9257_v33 }
0x1219   : > { %5368 = vmatpush3.msra.mxu0 %v4149_v58 }
0x121a   : > { %5369 = vmatprep.subr.mxu0 %v9257_v33 }
0x121b   : > { %5370 = vmatpush3.msra.mxu0 %v4148_v9 }
0x121c   : > { %5371 = vmatprep.subr.mxu0 %v9257_v33 }
0x121d   : > { %5372 = vmatpush3.msra.mxu0 %v4147_v55 }
0x121e   : > { %5373 = vmatprep.subr.mxu0 %v9257_v33 }
0x121f   : > { %5374 = vmatpush3.msra.mxu0 %v4146_v36 }
0x1220   : > { %5375 = vmatprep.subr.mxu0 %v9257_v33 }
0x1221   : > { %5376 = vmatpush3.msra.mxu0 %v4145_v32 }
0x1222   : > { %5377 = vmatprep.subr.mxu0 %v9257_v33 }
0x1223   : > { %5378 = vmatpush3.msra.mxu0 %v4144_v63 }
0x1224   : > { %5379 = vmatprep.subr.mxu0 %v9257_v33 }
0x1225   : > { %5380 = vmatpush3.msra.mxu0 %v4143_v62 }
0x1226   : > { %5381 = vmatprep.subr.mxu0 %v9257_v33 }
0x1227   : > { %5382 = vmatpush3.msra.mxu0 %v4142_v1 }
0x1228   : > { %5383 = vmatprep.subr.mxu0 %v9257_v33 }
0x1229   : > { %5384 = vmatpush3.msra.mxu0 %v4141_v22 }
0x122a   : > { %5385 = vmatprep.subr.mxu0 %v9257_v33 }
0x122b   : > { %5386 = vmatpush3.msra.mxu0 %v4140_v2 }
0x122c   : > { %5387 = vmatprep.subr.mxu0 %v9257_v33 }
0x122d   : > { %5388 = vmatpush3.msra.mxu0 %v4139_v38 }
0x122e   : > { %5389 = vmatprep.subr.mxu0 %v9257_v33 }
0x122f   : > { %5390 = vmatpush3.msra.mxu0 %v4138_v44 }
0x1230   : > { %5391 = vmatprep.subr.mxu0 %v9257_v33 }
0x1231   : > { %5392 = vmatpush3.msra.mxu0 %v4137_v4 }
0x1232   : > { %5393 = vmatprep.subr.mxu0 %v9257_v33 }
0x1233   : > { %5394 = vmatpush3.msra.mxu0 %v4136_v31 }
0x1234   : > { %5433 = vmatprep.subr.mxu0 %v9257_v33 }
0x12d4   : > { %v4116_v59 = vpop.f32.mrf.mxu0 }
0x12d5   : > { %5396 = vmatmul.mubr.f32.vlgmr.msra.gmra.mxu0 %v4116_v59 }
0x12d6   : > { %v5362_v17 = vpop.f32.mrf.mxu0  ;;  %5434 = vmatpush3.msra.mxu0 %v4316_v24  ;;  %5465 = vmatprep.mubr.msk.f32.mxu0 %vm6416_vm0, %v9257_v33 }
0x12d7   : > { %5435 = vmatprep.subr.mxu0 %v9257_v33 }
0x12d8   : > { %5436 = vmatpush3.msra.mxu0 %v4315_v47 }
0x12d9   : > { %5437 = vmatprep.subr.mxu0 %v9257_v33 }
0x12da   : > { %5438 = vmatpush3.msra.mxu0 %v4314_v56 }
0x12db   : > { %5439 = vmatprep.subr.mxu0 %v9257_v33 }
0x12dc   : > { %5440 = vmatpush3.msra.mxu0 %v4313_v40 }
0x12dd   : > { %5441 = vmatprep.subr.mxu0 %v9257_v33 }
0x12de   : > { %5442 = vmatpush3.msra.mxu0 %v4312_v11 }
0x12df   : > { %5443 = vmatprep.subr.mxu0 %v9257_v33 }
0x12e0   : > { %5444 = vmatpush3.msra.mxu0 %v4311_v34 }
0x12e1   : > { %5445 = vmatprep.subr.mxu0 %v9257_v33 }
0x12e2   : > { %5446 = vmatpush3.msra.mxu0 %v4310_v28 }
0x12e3   : > { %5447 = vmatprep.subr.mxu0 %v9257_v33 }
0x12e4   : > { %5448 = vmatpush3.msra.mxu0 %v4309_v52 }
0x12e5   : > { %5449 = vmatprep.subr.mxu0 %v9257_v33 }
0x12e6   : > { %5450 = vmatpush3.msra.mxu0 %v4308_v41 }
0x12e7   : > { %5451 = vmatprep.subr.mxu0 %v9257_v33 }
0x12e8   : > { %5452 = vmatpush3.msra.mxu0 %v4307_v49 }
0x12e9   : > { %5453 = vmatprep.subr.mxu0 %v9257_v33 }
0x12ea   : > { %5454 = vmatpush3.msra.mxu0 %v4306_v21 }
0x12eb   : > { %5455 = vmatprep.subr.mxu0 %v9257_v33 }
0x12ec   : > { %5456 = vmatpush3.msra.mxu0 %v4305_v54 }
0x12ed   : > { %5457 = vmatprep.subr.mxu0 %v9257_v33 }
0x12ee   : > { %5458 = vmatpush3.msra.mxu0 %v4304_v3 }
0x12ef   : > { %5459 = vmatprep.subr.mxu0 %v9257_v33 }
0x12f0   : > { %5460 = vmatpush3.msra.mxu0 %v4303_v13 }
0x12f1   : > { %5461 = vmatprep.subr.mxu0 %v9257_v33 }
0x12f2   : > { %5462 = vmatpush3.msra.mxu0 %v4302_v15 }
0x12f3   : > { %5463 = vmatprep.subr.mxu0 %v9257_v33 }
0x12f4   : > { %5464 = vmatpush3.msra.mxu0 %v4301_v25 }
0x1395   : > { %v4218_v37 = vpop.f32.mrf.mxu0 }
0x1396   : > { %v4289_v20 = vadd.f32 %v8744_v6, %v4218_v37 }
0x1397   : > { %v5397_v50 = vpop.f32.mrf.mxu0 }
0x1398   : > { %v4299_v42 = vadd.f32 %v4660_v8, %v4289_v20 }
0x139a   : > { %v4300_v27 = vmax.f32 %v4299_v42, 0.0 }
0x139c   : > { %5466 = vmatmul.mubr.f32.vlgmr.msra.gmra.mxu0 %v4300_v27 }
0x145c   : > { %v4390_v14 = vpop.f32.mrf.mxu0 }
0x145d   : > { %v4391_v16 = vadd.f32 %v4661_v12, %v4390_v14 }
0x145e   : > { %v5467_v19 = vpop.f32.mrf.mxu0 }
0x145f   : > { %4394 = vmax.xlane.f32.xlu0 %v4391_v16 }
0x14e8   : > { %v4395_v33 = vpop.xlane.xlu0 %4394 }
0x14e9   : > { %v4396_v35 = vsub.f32 %v4391_v16, %v4395_v33 }
0x14eb   : > { %v4397_v53 = vmul.f32 1.442695, %v4396_v35 }
0x14ed   : > { %5749 = vpow2.f32 %v4397_v53 }
0x14fa   : > { %v5750_v18 = vpop.eup %5749 }
0x14fb   : > { %4399 = vadd.xlane.f32.xlu1 %v5750_v18 }
0x1584   : > { %v4400_v29 = vpop.xlane.xlu1 %4399 }
0x1585   : > { %5751 = vlog2.f32 %v4400_v29 }
0x1592   : > { %v5752_v39 = vpop.eup %5751 }
0x1593   : > { %v4402_v51 = vmul.f32 0.6931472, %v5752_v39 }
0x1595   : > { %v4403_v7 = vsub.f32 %v4396_v35, %v4402_v51 }
0x1597   : > { %4404 = vst [vmem:[#allocation21] sm:$0xff] %v4403_v7 }
0x1598 PF: > { %p5594_p13 = scmp.eq.s32.totalorder %s6529_s24, 3  ;;  %s6417_s12 = smov [#allocation21]  }
0x1599   : > { %s4412_s2 = sshll.u32 %s6417_s12, 4  ;;  %s4413_s2 = int_to_ptr.vmem [resolvable:$true] %s4412_s2 }
0x159a   : > { %s6294_s0 = scalar_lea.vmem %s4413_s2, 128  ;;  %p6301_p10 = scmp.lt.s32.totalorder %s4413_s2, %s4413_s2 }
0x159b   : > { %p6295_p8 = scmp.ne.s32.totalorder %s4413_s2, %s6294_s0  ;;  %p6302_p9 = scmp.lt.s32.totalorder %s6294_s0, %s6294_s0 }
0x159d   : > { %p6296_p12 = pnand %p6295_p8, %p5594_p13  ;;  %p6303_p0 = por %p6302_p9, %p6301_p10 }
0x159f   : > { %p6297_p6 = pneg %p6296_p12 }
0x15a1   : > { %p6304_p2 = pnand %p6303_p0, %p6297_p6 }
0x15a3   : > { %6307 = shalt.err (!%p6304_p2)
}
0x15a4   : > { %s9751_s1 = sld [smem:[#allocation178_spill]] }
0x15aa   : > { %5539 = dma.vmem_to_hbm [thread:$0]  (%p5594_p13), %s4413_s2, 128, %s9751_s1, [#allocation6]  }
0x15ab   : > { %6371 = dma.done.wait (%p5594_p13), [#allocation6], 128  }
0x15ac   : > { %6373 = vsyncadd (%p5594_p13), [#allocation6], 4294967168 }
0x15ad PF: > { %s9752_s30 = sld [smem:[#allocation32_spill]]  ;;  %s9756_s19 = smov %s6384_s20 }
0x15ae   : > { %s9753_s18 = sld [smem:[#allocation30_spill]]  ;;  %s9758_s21 = smov %s6392_s22 }
0x15af   : > { %s9754_s27 = sld [smem:[#allocation35_spill]] }
0x15b0   : > { %s9755_s26 = sld [smem:[#allocation33_spill]] }
0x15b3   : > { %s31_s23 = sadd.s32 1, %s9752_s30  }
0x15b4   : > { %p28_p5 = scmp.ge.s32.totalorder %s31_s23, 6  }
0x15b5   : > { %s9757_s20 = smov %s9754_s27 }
0x15b6   : > { %s9759_s22 = smov %s9755_s26  ;;  %30 = sbr.rel (!%p28_p5) target bundleno = 17 (0x11), region = 190 }
0x15bb   :  { %4425 = vsyncpa [#allocation5], 1 }
0x15bc   :  { %4427 = vsyncpa [#allocation5 + $0x1], 1 }
0x15bd   :  { %4428 = vsyncpa [#allocation8], 1 }
0x15be   :  { %4429 = vsyncpa [#allocation14], 1 }
0x15bf   :  { %4430 = vsyncpa [#allocation17], 1 }
0x15c0   :  { %4431 = vsyncpa [#allocation20], 1 }
0x15c1   :  { %4432 = vsyncpa [#allocation6], 1 }
0x15c2   :  { %4434 = vsyncpa [#allocation6 + $0x1], 1 }

</bundles_post_ra>
